<compile_context>
chip_gen: v5e
topology: v5e:2x2
jax: 0.10.0
libtpu: 0.0.40
codegen_flags: <defaults>
</compile_context>

<pallas_src>
import math
from functools import partial

import jax
import jax.numpy as jnp
from jax.experimental import pallas as pl
from jax.experimental.pallas import tpu as pltpu

_GN_EPS = 1e-6   # GroupNorm eps in Normalize()
_LN_EPS = 1e-5   # torch.nn.LayerNorm default eps


# ----------------------------------------------------------------------------
# Fused per-image kernel (one grid step == one batch element)
# ----------------------------------------------------------------------------
def make_fused_kernel(*, n_tokens, heads, d_head, has_context, n_ctx=None):
    inner = heads * d_head
    scale = d_head ** (-0.5)

    def _layernorm(x2, g_ref, b_ref):
        mu = jnp.mean(x2, axis=-1, keepdims=True)
        var = jnp.mean((x2 - mu) ** 2, axis=-1, keepdims=True)
        return (x2 - mu) * jax.lax.rsqrt(var + _LN_EPS) * g_ref[...] + b_ref[...]

    def _attention(xn2, kv2, wq_ref, wk_ref, wv_ref, wo_ref, bo_ref):
        """Multi-head attention.

        Q/K/V are produced by full-width (d_in, inner) bf16 matmuls (good MXU
        shapes); per-head score/softmax/PV uses static lane slices.  QK^T and
        softmax stay f32 (ATTN_PRECISION='fp32'); PV and projections use bf16
        MXU operands with f32 accumulation.  The head concat is folded into the
        output projection via the pre-split (H, dh, inner) Wo."""
        q = jnp.dot(xn2.astype(jnp.bfloat16), wq_ref[...],
                    preferred_element_type=jnp.float32)            # (N, inner)
        kv_b = kv2.astype(jnp.bfloat16)
        k = jnp.dot(kv_b, wk_ref[...], preferred_element_type=jnp.float32)
        v = jnp.dot(kv_b, wv_ref[...], preferred_element_type=jnp.float32)
        acc = jnp.zeros((n_tokens, inner), jnp.float32)
        # TODO(synk): at H=8 use lax.fori_loop + a VMEM scratch accumulator to
        # bound vreg live ranges; static unroll is fine at H=2.
        for h in range(heads):
            sl = slice(h * d_head, (h + 1) * d_head)
            qh, kh, vh = q[:, sl], k[:, sl], v[:, sl]
            s = jnp.einsum("id,jd->ij", qh, kh,
                           preferred_element_type=jnp.float32) * scale
            s = s - jnp.max(s, axis=-1, keepdims=True)
            e = jnp.exp(s)
            # approx reciprocal: EUP slot; ~1e-4 relative error vs exact softmax.
            p = e * pl.reciprocal(jnp.sum(e, axis=-1, keepdims=True), approx=True)
            oh = jnp.dot(p.astype(jnp.bfloat16), vh.astype(jnp.bfloat16),
                         preferred_element_type=jnp.float32)       # (N, dh)
            acc = acc + jnp.dot(oh.astype(jnp.bfloat16), wo_ref[h],
                                preferred_element_type=jnp.float32)
        return acc + bo_ref[...]

    def body(x_ref, ctx_ref,
             gn_g, gn_b, gn_avg, wpi, bpi,
             a1g, a1b, a1wq, a1wk, a1wv, a1wo, a1bo,
             a2g, a2b, a2wq, a2wk, a2wv, a2wo, a2bo,
             ffg, ffb, ffwv, ffbv, ffwg, ffbg, ffw2, ffb2,
             wpo, bpo, o_ref):
        x3 = x_ref[...]                                   # (1, N, C) f32
        c_in = x3.shape[-1]
        x2 = x3.reshape(n_tokens, c_in)                   # image residual

        # ---- GroupNorm(32): per-group stats over this image's (N, C_group).
        # Group averaging via a (C, C) block matrix; two-pass centred variance.
        mean_c = jnp.dot(jnp.mean(x2, axis=0, keepdims=True), gn_avg[...],
                         preferred_element_type=jnp.float32)        # (1, C)
        xc = x2 - mean_c
        var_c = jnp.dot(jnp.mean(xc * xc, axis=0, keepdims=True), gn_avg[...],
                        preferred_element_type=jnp.float32)         # (1, C)
        xn = xc * jax.lax.rsqrt(var_c + _GN_EPS) * gn_g[...] + gn_b[...]

        # ---- proj_in: 1x1 conv == channel matmul
        t = jnp.dot(xn.astype(jnp.bfloat16), wpi[...],
                    preferred_element_type=jnp.float32) + bpi[...]  # (N, inner)

        # ---- BasicTransformerBlock (depth=1) ----
        # attn1: self-attention
        h1 = _layernorm(t, a1g, a1b)
        t = t + _attention(h1, h1, a1wq, a1wk, a1wv, a1wo, a1bo)

        # attn2: cross-attention if a context was provided, else self-attention
        h2 = _layernorm(t, a2g, a2b)
        if has_context:
            kv2 = ctx_ref[...].reshape(n_ctx, ctx_ref.shape[-1])
        else:
            kv2 = h2
        t = t + _attention(h2, kv2, a2wq, a2wk, a2wv, a2wo, a2bo)

        # ---- FeedForward with GEGLU: value/gate halves kept separate so the
        # (N, 2*ff_inner) pre-activation is never materialised.
        h3 = _layernorm(t, ffg, ffb)
        h3b = h3.astype(jnp.bfloat16)
        val = jnp.dot(h3b, ffwv[...], preferred_element_type=jnp.float32) + ffbv[...]
        gate = jnp.dot(h3b, ffwg[...], preferred_element_type=jnp.float32) + ffbg[...]
        # tanh-approx GELU (EUP); small intentional deviation from torch's erf GELU.
        hgl = val * jax.nn.gelu(gate, approximate=True)
        t = t + (jnp.dot(hgl.astype(jnp.bfloat16), ffw2[...],
                         preferred_element_type=jnp.float32) + ffb2[...])

        # ---- proj_out (zero-initialised 1x1 conv) + residual with original input
        y = jnp.dot(t.astype(jnp.bfloat16), wpo[...],
                    preferred_element_type=jnp.float32) + bpo[...]  # (N, C)
        o_ref[...] = (y + x2).reshape(1, n_tokens, c_in)

    if has_context:
        def kernel(x_ref, ctx_ref, *rest):
            body(x_ref, ctx_ref, *rest)
    else:
        def kernel(x_ref, *rest):
            body(x_ref, None, *rest)
    return kernel


# ----------------------------------------------------------------------------
# pallas_call wrapper
# ----------------------------------------------------------------------------
def _resident_spec(arr):
    """Full-array block with a constant index_map: fetched once, stays resident."""
    nd = arr.ndim
    return pl.BlockSpec(tuple(arr.shape), lambda b, _nd=nd: (0,) * _nd)


def spatial_transformer_forward(params, x_nchw, context=None, *, n_heads, d_head):
    b, c, h, w = x_nchw.shape
    n = h * w
    inner = n_heads * d_head
    assert n % 8 == 0, "H*W must be a multiple of 8 (sublane tiling)"

    # 'b c h w -> b (h w) c'
    x_tok = jnp.transpose(x_nchw, (0, 2, 3, 1)).reshape(b, n, c)

    has_ctx = context is not None
    n_ctx = d_ctx = None
    if has_ctx:
        assert context.ndim == 3 and context.shape[0] == b
        n_ctx, d_ctx = context.shape[1], context.shape[2]
        # TODO(synk): CLIP contexts (length 77) need padding to a multiple of 8.
        assert n_ctx % 8 == 0, "context length must be a multiple of 8"

    # Pre-split the per-head output projection ((H*dh, inner) -> (H, dh, inner))
    # and cast all matmul weights to bf16 (halves weight DMA bytes).
    def split_out(wmat):
        return wmat.reshape(n_heads, d_head, wmat.shape[1]).astype(jnp.bfloat16)

    ffi = params["ff_w1"].shape[1] // 2
    args = [x_tok]
    if has_ctx:
        args.append(context.astype(jnp.float32))
    args += [params["gn_gamma"], params["gn_beta"], params["gn_groupavg"],
             params["wp_in"].astype(jnp.bfloat16), params["bp_in"]]
    for name in ("attn1", "attn2"):
        args += [params[f"{name}_ln_g"], params[f"{name}_ln_b"],
                 params[f"{name}_wq"].astype(jnp.bfloat16),
                 params[f"{name}_wk"].astype(jnp.bfloat16),
                 params[f"{name}_wv"].astype(jnp.bfloat16),
                 split_out(params[f"{name}_wo"]),
                 params[f"{name}_bo"]]
    args += [params["ff_ln_g"], params["ff_ln_b"],
             params["ff_w1"][:, :ffi].astype(jnp.bfloat16), params["ff_b1"][:, :ffi],
             params["ff_w1"][:, ffi:].astype(jnp.bfloat16), params["ff_b1"][:, ffi:],
             params["ff_w2"].astype(jnp.bfloat16), params["ff_b2"],
             params["wp_out"].astype(jnp.bfloat16), params["bp_out"]]

    kernel = make_fused_kernel(n_tokens=n, heads=n_heads, d_head=d_head,
                               has_context=has_ctx, n_ctx=n_ctx)

    # Block specs: x / context / output streamed per batch element; everything
    # else (weights, biases) is a constant-index resident block.
    n_streamed = 2 if has_ctx else 1
    in_specs = [pl.BlockSpec((1, n, c), lambda bb: (bb, 0, 0))]
    if has_ctx:
        in_specs.append(pl.BlockSpec((1, n_ctx, d_ctx), lambda bb: (bb, 0, 0)))
    in_specs += [_resident_spec(a) for a in args[n_streamed:]]
    out_spec = pl.BlockSpec((1, n, c), lambda bb: (bb, 0, 0))

    # Advisory cost estimate so XLA can schedule the surrounding graph.
    ff_inner = 2 * ffi
    m_kv = n_ctx if has_ctx else n
    d_kv = d_ctx if has_ctx else inner
    flops = b * (
        2 * n * c * inner                                       # proj_in
        + 3 * 2 * n * inner * inner + 4 * n * n * inner         # attn1 qkv + scores/pv
        + 2 * n * inner * inner                                 # attn1 out-proj
        + 2 * n * inner * inner + 4 * m_kv * d_kv * inner       # attn2 q + kv
        + 4 * n * m_kv * inner + 2 * n * inner * inner          # attn2 scores/pv + out
        + 4 * n * inner * ff_inner + 2 * n * ff_inner * inner   # GEGLU FF
        + 2 * n * inner * c)                                    # proj_out
    transcendentals = b * (n_heads * n * (n + m_kv) + n * ff_inner)
    bytes_accessed = sum(int(a.size) * a.dtype.itemsize for a in args) + b * n * c * 4
    cost = pl.CostEstimate(flops=int(flops), transcendentals=int(transcendentals),
                           bytes_accessed=int(bytes_accessed))

    y_tok = pl.pallas_call(
        kernel,
        out_shape=jax.ShapeDtypeStruct((b, n, c), jnp.float32),
        grid=(b,),
        in_specs=in_specs,
        out_specs=out_spec,
        compiler_params=pltpu.CompilerParams(
            dimension_semantics=("parallel",),      # megacore split on v7x
            vmem_limit_bytes=32 * 1024 * 1024),
        cost_estimate=cost,
    )(*args)

    # 'b (h w) c -> b c h w'
    return jnp.transpose(y_tok.reshape(b, h, w, c), (0, 3, 1, 2))


# ----------------------------------------------------------------------------
# Pure-JAX reference (same mixed precision, exact-erf GELU) for validation
# ----------------------------------------------------------------------------
def reference_forward(params, x_nchw, context=None, *, n_heads, d_head):
    b, c, h, w = x_nchw.shape
    n = h * w
    x_tok = jnp.transpose(x_nchw, (0, 2, 3, 1)).reshape(b, n, c)

    def mm(a, wmat):
        return jnp.dot(a.astype(jnp.bfloat16), wmat.astype(jnp.bfloat16),
                       preferred_element_type=jnp.float32)

    def layernorm(x, g, bta):
        mu = jnp.mean(x, -1, keepdims=True)
        var = jnp.mean((x - mu) ** 2, -1, keepdims=True)
        return (x - mu) * jax.lax.rsqrt(var + _LN_EPS) * g + bta

    def attn(xn, kv, name):
        scale = d_head ** (-0.5)
        q = mm(xn, params[f"{name}_wq"])
        k = mm(kv, params[f"{name}_wk"])
        v = mm(kv, params[f"{name}_wv"])
        split = lambda t: t.reshape(t.shape[0], t.shape[1], n_heads, d_head)
        qh, kh, vh = split(q), split(k), split(v)
        s = jnp.einsum("bihd,bjhd->bhij", qh, kh,
                       preferred_element_type=jnp.float32) * scale
        p = jax.nn.softmax(s, axis=-1)
        o = jnp.einsum("bhij,bjhd->bihd", p.astype(jnp.bfloat16),
                       vh.astype(jnp.bfloat16),
                       preferred_element_type=jnp.float32)
        o = o.reshape(o.shape[0], o.shape[1], n_heads * d_head)
        return mm(o, params[f"{name}_wo"]) + params[f"{name}_bo"]

    # GroupNorm(32)
    groups = 32
    cs = c // groups
    xg = x_tok.reshape(b, n, groups, cs)
    mu = jnp.mean(xg, axis=(1, 3), keepdims=True)
    var = jnp.mean((xg - mu) ** 2, axis=(1, 3), keepdims=True)
    xn = ((xg - mu) * jax.lax.rsqrt(var + _GN_EPS)).reshape(b, n, c)
    xn = xn * params["gn_gamma"] + params["gn_beta"]

    t = mm(xn, params["wp_in"]) + params["bp_in"]
    h1 = layernorm(t, params["attn1_ln_g"], params["attn1_ln_b"])
    t = t + attn(h1, h1, "attn1")
    h2 = layernorm(t, params["attn2_ln_g"], params["attn2_ln_b"])
    kv = h2 if context is None else context
    t = t + attn(h2, kv, "attn2")
    h3 = layernorm(t, params["ff_ln_g"], params["ff_ln_b"])
    proj = mm(h3, params["ff_w1"]) + params["ff_b1"]
    a_half, gate = jnp.split(proj, 2, axis=-1)
    gelu_gate = 0.5 * gate * (1.0 + jax.lax.erf(gate * (1.0 / math.sqrt(2.0))))
    t = t + mm(a_half * gelu_gate, params["ff_w2"]) + params["ff_b2"]
    y = mm(t, params["wp_out"]) + params["bp_out"] + x_tok
    return jnp.transpose(y.reshape(b, h, w, c), (0, 3, 1, 2))


# ----------------------------------------------------------------------------
# Parameters (deterministic, in-script)
# ----------------------------------------------------------------------------
def init_params(key, in_channels, n_heads, d_head, context_dim=None):
    inner = n_heads * d_head
    ctx_dim = inner if context_dim is None else context_dim
    ff_inner = inner * 4
    keys = iter(jax.random.split(key, 24))

    def lin(fan_in, fan_out):      # torch Linear-style init, stored as (in, out)
        bound = 1.0 / math.sqrt(fan_in)
        return jax.random.uniform(next(keys), (fan_in, fan_out), jnp.float32,
                                  -bound, bound)

    def bias(fan_in, ncols):
        bound = 1.0 / math.sqrt(fan_in)
        return jax.random.uniform(next(keys), (1, ncols), jnp.float32,
                                  -bound, bound)

    p = {}
    # GroupNorm(32, C) affine params (torch default: w=1, b=0)
    p["gn_gamma"] = jnp.ones((1, in_channels), jnp.float32)
    p["gn_beta"] = jnp.zeros((1, in_channels), jnp.float32)
    groups = 32
    assert in_channels % groups == 0
    cs = in_channels // groups
    gid = jnp.arange(in_channels) // cs
    # (C, C) block matrix averaging each channel's value over its group.
    p["gn_groupavg"] = (gid[:, None] == gid[None, :]).astype(jnp.float32) / cs
    # proj_in: Conv2d(C, inner, 1)
    p["wp_in"] = lin(in_channels, inner)
    p["bp_in"] = bias(in_channels, inner)
    # attn1 (self) / attn2 (self if context_dim is None else cross)
    for name, kv_dim in (("attn1", inner), ("attn2", ctx_dim)):
        p[f"{name}_ln_g"] = jnp.ones((1, inner), jnp.float32)
        p[f"{name}_ln_b"] = jnp.zeros((1, inner), jnp.float32)
        p[f"{name}_wq"] = lin(inner, inner)
        p[f"{name}_wk"] = lin(kv_dim, inner)
        p[f"{name}_wv"] = lin(kv_dim, inner)
        p[f"{name}_wo"] = lin(inner, inner)
        p[f"{name}_bo"] = bias(inner, inner)
    # FeedForward with GEGLU
    p["ff_ln_g"] = jnp.ones((1, inner), jnp.float32)
    p["ff_ln_b"] = jnp.zeros((1, inner), jnp.float32)
    p["ff_w1"] = lin(inner, 2 * ff_inner)
    p["ff_b1"] = bias(inner, 2 * ff_inner)
    p["ff_w2"] = lin(ff_inner, inner)
    p["ff_b2"] = bias(ff_inner, inner)
    # proj_out: Conv2d(inner, C, 1) wrapped in zero_module -> all zeros
    p["wp_out"] = jnp.zeros((inner, in_channels), jnp.float32)
    p["bp_out"] = jnp.zeros((1, in_channels), jnp.float32)
    return p


# ----------------------------------------------------------------------------
if __name__ == "__main__":
    key = jax.random.PRNGKey(0)
    k_x, k_p, k_o, k_c, k_p2 = jax.random.split(key, 5)

    # SpatialTransformer(in_channels=64, n_heads=2, d_head=32) on a 2x64x8x8 input.
    B, C, H, W = 2, 64, 8, 8       # GroupNorm(32) requires C % 32 == 0
    N_HEADS, D_HEAD = 2, 32        # inner_dim = 64
    x = jax.random.normal(k_x, (B, C, H, W), jnp.float32)

    fwd = jax.jit(partial(spatial_transformer_forward,
                          n_heads=N_HEADS, d_head=D_HEAD))
    ref = jax.jit(partial(reference_forward, n_heads=N_HEADS, d_head=D_HEAD))

    # 1) Faithful init (zero_module'd proj_out): the module is exactly identity.
    params = init_params(k_p, C, N_HEADS, D_HEAD)
    y = fwd(params, x)
    jax.block_until_ready(y)
    assert y.shape == x.shape and y.dtype == x.dtype
    assert bool(jnp.allclose(y, x, atol=1e-6)), "zero-init proj_out must be identity"

    # 2) Numerics vs. pure-JAX reference with a non-zero proj_out (validates the
    #    whole attention / GEGLU path, not just the zero shortcut).
    bound = 1.0 / math.sqrt(N_HEADS * D_HEAD)
    params_nz = dict(params)
    params_nz["wp_out"] = jax.random.uniform(k_o, (N_HEADS * D_HEAD, C),
                                             jnp.float32, -bound, bound)
    params_nz["bp_out"] = jax.random.uniform(jax.random.fold_in(k_o, 1), (1, C),
                                             jnp.float32, -bound, bound)
    y_k = fwd(params_nz, x)
    y_r = ref(params_nz, x)
    jax.block_until_ready((y_k, y_r))
    err = float(jnp.max(jnp.abs(y_k - y_r)))
    assert bool(jnp.allclose(y_k, y_r, atol=2e-2, rtol=2e-2)), \
        f"self-attn kernel vs reference mismatch (max abs err {err})"

    # 3) Cross-attention path for attn2 (text-like context).
    CTX_LEN, CTX_DIM = 32, 96
    params_x = init_params(k_p2, C, N_HEADS, D_HEAD, context_dim=CTX_DIM)
    params_x["wp_out"] = params_nz["wp_out"]
    params_x["bp_out"] = params_nz["bp_out"]
    ctx = jax.random.normal(k_c, (B, CTX_LEN, CTX_DIM), jnp.float32)
    y_kx = fwd(params_x, x, ctx)
    y_rx = ref(params_x, x, ctx)
    jax.block_until_ready((y_kx, y_rx))
    err_x = float(jnp.max(jnp.abs(y_kx - y_rx)))
    assert bool(jnp.allclose(y_kx, y_rx, atol=2e-2, rtol=2e-2)), \
        f"cross-attn kernel vs reference mismatch (max abs err {err_x})"

    print("KERNEL_OK")
</pallas_src>

<mosaic_0001>
module attributes {stable_mosaic.version = 11 : i64} {
  func.func @kernel(%arg0: i32, %arg1: memref<1x64x64xf32, #tpu.memory_space<vmem>>, %arg2: memref<1x64xf32, #tpu.memory_space<vmem>>, %arg3: memref<1x64xf32, #tpu.memory_space<vmem>>, %arg4: memref<64x64xf32, #tpu.memory_space<vmem>>, %arg5: memref<64x64xbf16, #tpu.memory_space<vmem>>, %arg6: memref<1x64xf32, #tpu.memory_space<vmem>>, %arg7: memref<1x64xf32, #tpu.memory_space<vmem>>, %arg8: memref<1x64xf32, #tpu.memory_space<vmem>>, %arg9: memref<64x64xbf16, #tpu.memory_space<vmem>>, %arg10: memref<64x64xbf16, #tpu.memory_space<vmem>>, %arg11: memref<64x64xbf16, #tpu.memory_space<vmem>>, %arg12: memref<2x32x64xbf16, #tpu.memory_space<vmem>>, %arg13: memref<1x64xf32, #tpu.memory_space<vmem>>, %arg14: memref<1x64xf32, #tpu.memory_space<vmem>>, %arg15: memref<1x64xf32, #tpu.memory_space<vmem>>, %arg16: memref<64x64xbf16, #tpu.memory_space<vmem>>, %arg17: memref<64x64xbf16, #tpu.memory_space<vmem>>, %arg18: memref<64x64xbf16, #tpu.memory_space<vmem>>, %arg19: memref<2x32x64xbf16, #tpu.memory_space<vmem>>, %arg20: memref<1x64xf32, #tpu.memory_space<vmem>>, %arg21: memref<1x64xf32, #tpu.memory_space<vmem>>, %arg22: memref<1x64xf32, #tpu.memory_space<vmem>>, %arg23: memref<64x256xbf16, #tpu.memory_space<vmem>>, %arg24: memref<1x256xf32, #tpu.memory_space<vmem>>, %arg25: memref<64x256xbf16, #tpu.memory_space<vmem>>, %arg26: memref<1x256xf32, #tpu.memory_space<vmem>>, %arg27: memref<256x64xbf16, #tpu.memory_space<vmem>>, %arg28: memref<1x64xf32, #tpu.memory_space<vmem>>, %arg29: memref<64x64xbf16, #tpu.memory_space<vmem>>, %arg30: memref<1x64xf32, #tpu.memory_space<vmem>>, %arg31: memref<1x64x64xf32, #tpu.memory_space<vmem>>) attributes {dimension_semantics = [#tpu.dimension_semantics<parallel>], iteration_bounds = array<i64: 2>, scalar_prefetch = 0 : i64, scratch_operands = 0 : i64, tpu.core_type = #tpu.core_type<tc>, window_params = [{transform_indices = @transform_0, window_bounds = array<i64: 1, 64, 64>}, {pipeline_mode = #tpu.pipeline_mode<synchronous>, transform_indices = @transform_1, window_bounds = array<i64: 1, 64>}, {pipeline_mode = #tpu.pipeline_mode<synchronous>, transform_indices = @transform_2, window_bounds = array<i64: 1, 64>}, {pipeline_mode = #tpu.pipeline_mode<synchronous>, transform_indices = @transform_3, window_bounds = array<i64: 64, 64>}, {pipeline_mode = #tpu.pipeline_mode<synchronous>, transform_indices = @transform_4, window_bounds = array<i64: 64, 64>}, {pipeline_mode = #tpu.pipeline_mode<synchronous>, transform_indices = @transform_5, window_bounds = array<i64: 1, 64>}, {pipeline_mode = #tpu.pipeline_mode<synchronous>, transform_indices = @transform_6, window_bounds = array<i64: 1, 64>}, {pipeline_mode = #tpu.pipeline_mode<synchronous>, transform_indices = @transform_7, window_bounds = array<i64: 1, 64>}, {pipeline_mode = #tpu.pipeline_mode<synchronous>, transform_indices = @transform_8, window_bounds = array<i64: 64, 64>}, {pipeline_mode = #tpu.pipeline_mode<synchronous>, transform_indices = @transform_9, window_bounds = array<i64: 64, 64>}, {pipeline_mode = #tpu.pipeline_mode<synchronous>, transform_indices = @transform_10, window_bounds = array<i64: 64, 64>}, {pipeline_mode = #tpu.pipeline_mode<synchronous>, transform_indices = @transform_11, window_bounds = array<i64: 2, 32, 64>}, {pipeline_mode = #tpu.pipeline_mode<synchronous>, transform_indices = @transform_12, window_bounds = array<i64: 1, 64>}, {pipeline_mode = #tpu.pipeline_mode<synchronous>, transform_indices = @transform_13, window_bounds = array<i64: 1, 64>}, {pipeline_mode = #tpu.pipeline_mode<synchronous>, transform_indices = @transform_14, window_bounds = array<i64: 1, 64>}, {pipeline_mode = #tpu.pipeline_mode<synchronous>, transform_indices = @transform_15, window_bounds = array<i64: 64, 64>}, {pipeline_mode = #tpu.pipeline_mode<synchronous>, transform_indices = @transform_16, window_bounds = array<i64: 64, 64>}, {pipeline_mode = #tpu.pipeline_mode<synchronous>, transform_indices = @transform_17, window_bounds = array<i64: 64, 64>}, {pipeline_mode = #tpu.pipeline_mode<synchronous>, transform_indices = @transform_18, window_bounds = array<i64: 2, 32, 64>}, {pipeline_mode = #tpu.pipeline_mode<synchronous>, transform_indices = @transform_19, window_bounds = array<i64: 1, 64>}, {pipeline_mode = #tpu.pipeline_mode<synchronous>, transform_indices = @transform_20, window_bounds = array<i64: 1, 64>}, {pipeline_mode = #tpu.pipeline_mode<synchronous>, transform_indices = @transform_21, window_bounds = array<i64: 1, 64>}, {pipeline_mode = #tpu.pipeline_mode<synchronous>, transform_indices = @transform_22, window_bounds = array<i64: 64, 256>}, {pipeline_mode = #tpu.pipeline_mode<synchronous>, transform_indices = @transform_23, window_bounds = array<i64: 1, 256>}, {pipeline_mode = #tpu.pipeline_mode<synchronous>, transform_indices = @transform_24, window_bounds = array<i64: 64, 256>}, {pipeline_mode = #tpu.pipeline_mode<synchronous>, transform_indices = @transform_25, window_bounds = array<i64: 1, 256>}, {pipeline_mode = #tpu.pipeline_mode<synchronous>, transform_indices = @transform_26, window_bounds = array<i64: 256, 64>}, {pipeline_mode = #tpu.pipeline_mode<synchronous>, transform_indices = @transform_27, window_bounds = array<i64: 1, 64>}, {pipeline_mode = #tpu.pipeline_mode<synchronous>, transform_indices = @transform_28, window_bounds = array<i64: 64, 64>}, {pipeline_mode = #tpu.pipeline_mode<synchronous>, transform_indices = @transform_29, window_bounds = array<i64: 1, 64>}, {transform_indices = @transform_30, window_bounds = array<i64: 1, 64, 64>}]} {
    %c0 = arith.constant 0 : index
    %c0_0 = arith.constant 0 : index
    %c0_1 = arith.constant 0 : index
    %0 = vector.load %arg1[%c0, %c0_0, %c0_1] : memref<1x64x64xf32, #tpu.memory_space<vmem>>, vector<1x64x64xf32>
    %1 = vector.shape_cast %0 : vector<1x64x64xf32> to vector<64x64xf32>
    %cst = arith.constant dense<0.000000e+00> : vector<64xf32>
    %2 = vector.multi_reduction <add>, %1, %cst [0] : vector<64x64xf32> to vector<64xf32>
    %3 = vector.shape_cast %2 : vector<64xf32> to vector<1x64xf32>
    %cst_2 = arith.constant 6.400000e+01 : f32
    %4 = vector.broadcast %cst_2 : f32 to vector<1x64xf32>
    %5 = arith.divf %3, %4 : vector<1x64xf32>
    %c0_3 = arith.constant 0 : index
    %c0_4 = arith.constant 0 : index
    %6 = vector.load %arg4[%c0_3, %c0_4] : memref<64x64xf32, #tpu.memory_space<vmem>>, vector<64x64xf32>
    %cst_5 = arith.constant dense<0.000000e+00> : vector<1x64xf32>
    %7 = tpu.matmul %5, %6, %cst_5 {dimension_numbers = #tpu.dot_dimension_numbers<[1], [0], [0], [1], [0, 0, 1, 1], [], []>} : vector<1x64xf32>, vector<64x64xf32>, vector<1x64xf32> -> vector<1x64xf32>
    %8 = vector.broadcast %7 : vector<1x64xf32> to vector<64x64xf32>
    %9 = arith.subf %1, %8 : vector<64x64xf32>
    %10 = arith.mulf %9, %9 : vector<64x64xf32>
    %cst_6 = arith.constant dense<0.000000e+00> : vector<64xf32>
    %11 = vector.multi_reduction <add>, %10, %cst_6 [0] : vector<64x64xf32> to vector<64xf32>
    %12 = vector.shape_cast %11 : vector<64xf32> to vector<1x64xf32>
    %cst_7 = arith.constant 6.400000e+01 : f32
    %13 = vector.broadcast %cst_7 : f32 to vector<1x64xf32>
    %14 = arith.divf %12, %13 : vector<1x64xf32>
    %c0_8 = arith.constant 0 : index
    %c0_9 = arith.constant 0 : index
    %15 = vector.load %arg4[%c0_8, %c0_9] : memref<64x64xf32, #tpu.memory_space<vmem>>, vector<64x64xf32>
    %cst_10 = arith.constant dense<0.000000e+00> : vector<1x64xf32>
    %16 = tpu.matmul %14, %15, %cst_10 {dimension_numbers = #tpu.dot_dimension_numbers<[1], [0], [0], [1], [0, 0, 1, 1], [], []>} : vector<1x64xf32>, vector<64x64xf32>, vector<1x64xf32> -> vector<1x64xf32>
    %cst_11 = arith.constant 9.99999997E-7 : f32
    %17 = vector.broadcast %cst_11 : f32 to vector<1x64xf32>
    %18 = arith.addf %16, %17 : vector<1x64xf32>
    %19 = math.rsqrt %18 : vector<1x64xf32>
    %20 = vector.broadcast %19 : vector<1x64xf32> to vector<64x64xf32>
    %21 = arith.mulf %9, %20 : vector<64x64xf32>
    %c0_12 = arith.constant 0 : index
    %c0_13 = arith.constant 0 : index
    %22 = vector.load %arg2[%c0_12, %c0_13] : memref<1x64xf32, #tpu.memory_space<vmem>>, vector<1x64xf32>
    %23 = vector.broadcast %22 : vector<1x64xf32> to vector<64x64xf32>
    %24 = arith.mulf %21, %23 : vector<64x64xf32>
    %c0_14 = arith.constant 0 : index
    %c0_15 = arith.constant 0 : index
    %25 = vector.load %arg3[%c0_14, %c0_15] : memref<1x64xf32, #tpu.memory_space<vmem>>, vector<1x64xf32>
    %26 = vector.broadcast %25 : vector<1x64xf32> to vector<64x64xf32>
    %27 = arith.addf %24, %26 : vector<64x64xf32>
    %28 = arith.truncf %27 : vector<64x64xf32> to vector<64x64xbf16>
    %c0_16 = arith.constant 0 : index
    %c0_17 = arith.constant 0 : index
    %29 = vector.load %arg5[%c0_16, %c0_17] : memref<64x64xbf16, #tpu.memory_space<vmem>>, vector<64x64xbf16>
    %cst_18 = arith.constant dense<0.000000e+00> : vector<64x64xf32>
    %30 = tpu.matmul %28, %29, %cst_18 {dimension_numbers = #tpu.dot_dimension_numbers<[1], [0], [0], [1], [0, 0, 1, 1], [], []>} : vector<64x64xbf16>, vector<64x64xbf16>, vector<64x64xf32> -> vector<64x64xf32>
    %c0_19 = arith.constant 0 : index
    %c0_20 = arith.constant 0 : index
    %31 = vector.load %arg6[%c0_19, %c0_20] : memref<1x64xf32, #tpu.memory_space<vmem>>, vector<1x64xf32>
    %32 = vector.broadcast %31 : vector<1x64xf32> to vector<64x64xf32>
    %33 = arith.addf %30, %32 : vector<64x64xf32>
    %cst_21 = arith.constant dense<0.000000e+00> : vector<64xf32>
    %34 = vector.multi_reduction <add>, %33, %cst_21 [1] : vector<64x64xf32> to vector<64xf32>
    %35 = vector.shape_cast %34 : vector<64xf32> to vector<64x1xf32>
    %cst_22 = arith.constant 6.400000e+01 : f32
    %36 = vector.broadcast %cst_22 : f32 to vector<64x1xf32>
    %37 = arith.divf %35, %36 : vector<64x1xf32>
    %38 = vector.broadcast %37 : vector<64x1xf32> to vector<64x64xf32>
    %39 = arith.subf %33, %38 : vector<64x64xf32>
    %40 = arith.mulf %39, %39 : vector<64x64xf32>
    %cst_23 = arith.constant dense<0.000000e+00> : vector<64xf32>
    %41 = vector.multi_reduction <add>, %40, %cst_23 [1] : vector<64x64xf32> to vector<64xf32>
    %42 = vector.shape_cast %41 : vector<64xf32> to vector<64x1xf32>
    %cst_24 = arith.constant 6.400000e+01 : f32
    %43 = vector.broadcast %cst_24 : f32 to vector<64x1xf32>
    %44 = arith.divf %42, %43 : vector<64x1xf32>
    %45 = vector.broadcast %37 : vector<64x1xf32> to vector<64x64xf32>
    %46 = arith.subf %33, %45 : vector<64x64xf32>
    %cst_25 = arith.constant 9.99999974E-6 : f32
    %47 = vector.broadcast %cst_25 : f32 to vector<64x1xf32>
    %48 = arith.addf %44, %47 : vector<64x1xf32>
    %49 = math.rsqrt %48 : vector<64x1xf32>
    %50 = vector.broadcast %49 : vector<64x1xf32> to vector<64x64xf32>
    %51 = arith.mulf %46, %50 : vector<64x64xf32>
    %c0_26 = arith.constant 0 : index
    %c0_27 = arith.constant 0 : index
    %52 = vector.load %arg7[%c0_26, %c0_27] : memref<1x64xf32, #tpu.memory_space<vmem>>, vector<1x64xf32>
    %53 = vector.broadcast %52 : vector<1x64xf32> to vector<64x64xf32>
    %54 = arith.mulf %51, %53 : vector<64x64xf32>
    %c0_28 = arith.constant 0 : index
    %c0_29 = arith.constant 0 : index
    %55 = vector.load %arg8[%c0_28, %c0_29] : memref<1x64xf32, #tpu.memory_space<vmem>>, vector<1x64xf32>
    %56 = vector.broadcast %55 : vector<1x64xf32> to vector<64x64xf32>
    %57 = arith.addf %54, %56 : vector<64x64xf32>
    %58 = arith.truncf %57 : vector<64x64xf32> to vector<64x64xbf16>
    %c0_30 = arith.constant 0 : index
    %c0_31 = arith.constant 0 : index
    %59 = vector.load %arg9[%c0_30, %c0_31] : memref<64x64xbf16, #tpu.memory_space<vmem>>, vector<64x64xbf16>
    %cst_32 = arith.constant dense<0.000000e+00> : vector<64x64xf32>
    %60 = tpu.matmul %58, %59, %cst_32 {dimension_numbers = #tpu.dot_dimension_numbers<[1], [0], [0], [1], [0, 0, 1, 1], [], []>} : vector<64x64xbf16>, vector<64x64xbf16>, vector<64x64xf32> -> vector<64x64xf32>
    %61 = arith.truncf %57 : vector<64x64xf32> to vector<64x64xbf16>
    %c0_33 = arith.constant 0 : index
    %c0_34 = arith.constant 0 : index
    %62 = vector.load %arg10[%c0_33, %c0_34] : memref<64x64xbf16, #tpu.memory_space<vmem>>, vector<64x64xbf16>
    %cst_35 = arith.constant dense<0.000000e+00> : vector<64x64xf32>
    %63 = tpu.matmul %61, %62, %cst_35 {dimension_numbers = #tpu.dot_dimension_numbers<[1], [0], [0], [1], [0, 0, 1, 1], [], []>} : vector<64x64xbf16>, vector<64x64xbf16>, vector<64x64xf32> -> vector<64x64xf32>
    %c0_36 = arith.constant 0 : index
    %c0_37 = arith.constant 0 : index
    %64 = vector.load %arg11[%c0_36, %c0_37] : memref<64x64xbf16, #tpu.memory_space<vmem>>, vector<64x64xbf16>
    %cst_38 = arith.constant dense<0.000000e+00> : vector<64x64xf32>
    %65 = tpu.matmul %61, %64, %cst_38 {dimension_numbers = #tpu.dot_dimension_numbers<[1], [0], [0], [1], [0, 0, 1, 1], [], []>} : vector<64x64xbf16>, vector<64x64xbf16>, vector<64x64xf32> -> vector<64x64xf32>
    %cst_39 = arith.constant 0.000000e+00 : f32
    %66 = vector.broadcast %cst_39 : f32 to vector<64x64xf32>
    %67 = vector.extract_strided_slice %60 {offsets = [0, 0], sizes = [64, 32], strides = [1, 1]} : vector<64x64xf32> to vector<64x32xf32>
    %68 = vector.extract_strided_slice %63 {offsets = [0, 0], sizes = [64, 32], strides = [1, 1]} : vector<64x64xf32> to vector<64x32xf32>
    %69 = vector.extract_strided_slice %65 {offsets = [0, 0], sizes = [64, 32], strides = [1, 1]} : vector<64x64xf32> to vector<64x32xf32>
    "tpu.trace_start"() <{level = 10 : i32, message = "id,jd->ij"}> : () -> ()
    %cst_40 = arith.constant dense<0.000000e+00> : vector<64x64xf32>
    %70 = tpu.matmul %67, %68, %cst_40 {dimension_numbers = #tpu.dot_dimension_numbers<[1], [1], [0], [0], [0, 0, 1, 0], [], []>} : vector<64x32xf32>, vector<64x32xf32>, vector<64x64xf32> -> vector<64x64xf32>
    "tpu.trace_stop"() : () -> ()
    %cst_41 = arith.constant 0.176776692 : f32
    %71 = vector.broadcast %cst_41 : f32 to vector<64x64xf32>
    %72 = arith.mulf %70, %71 : vector<64x64xf32>
    %cst_42 = arith.constant dense<0xFF800000> : vector<64xf32>
    %73 = vector.multi_reduction <maximumf>, %72, %cst_42 [1] : vector<64x64xf32> to vector<64xf32>
    %74 = vector.shape_cast %73 : vector<64xf32> to vector<64x1xf32>
    %75 = vector.broadcast %74 : vector<64x1xf32> to vector<64x64xf32>
    %76 = arith.subf %72, %75 : vector<64x64xf32>
    %77 = math.exp %76 : vector<64x64xf32>
    %cst_43 = arith.constant dense<0.000000e+00> : vector<64xf32>
    %78 = vector.multi_reduction <add>, %77, %cst_43 [1] : vector<64x64xf32> to vector<64xf32>
    %79 = vector.shape_cast %78 : vector<64xf32> to vector<64x1xf32>
    %80 = tpu.reciprocal %79 {approx = true} : vector<64x1xf32> -> vector<64x1xf32>
    %81 = vector.broadcast %80 : vector<64x1xf32> to vector<64x64xf32>
    %82 = arith.mulf %77, %81 : vector<64x64xf32>
    %83 = arith.truncf %82 : vector<64x64xf32> to vector<64x64xbf16>
    %84 = arith.truncf %69 : vector<64x32xf32> to vector<64x32xbf16>
    %cst_44 = arith.constant dense<0.000000e+00> : vector<64x32xf32>
    %85 = tpu.matmul %83, %84, %cst_44 {dimension_numbers = #tpu.dot_dimension_numbers<[1], [0], [0], [1], [0, 0, 1, 1], [], []>} : vector<64x64xbf16>, vector<64x32xbf16>, vector<64x32xf32> -> vector<64x32xf32>
    %86 = arith.truncf %85 : vector<64x32xf32> to vector<64x32xbf16>
    %c0_45 = arith.constant 0 : index
    %c0_46 = arith.constant 0 : index
    %c0_47 = arith.constant 0 : index
    %87 = vector.load %arg12[%c0_45, %c0_46, %c0_47] : memref<2x32x64xbf16, #tpu.memory_space<vmem>>, vector<1x32x64xbf16>
    %88 = vector.shape_cast %87 : vector<1x32x64xbf16> to vector<32x64xbf16>
    %cst_48 = arith.constant dense<0.000000e+00> : vector<64x64xf32>
    %89 = tpu.matmul %86, %88, %cst_48 {dimension_numbers = #tpu.dot_dimension_numbers<[1], [0], [0], [1], [0, 0, 1, 1], [], []>} : vector<64x32xbf16>, vector<32x64xbf16>, vector<64x64xf32> -> vector<64x64xf32>
    %90 = arith.addf %66, %89 : vector<64x64xf32>
    %91 = vector.extract_strided_slice %60 {offsets = [0, 32], sizes = [64, 32], strides = [1, 1]} : vector<64x64xf32> to vector<64x32xf32>
    %92 = vector.extract_strided_slice %63 {offsets = [0, 32], sizes = [64, 32], strides = [1, 1]} : vector<64x64xf32> to vector<64x32xf32>
    %93 = vector.extract_strided_slice %65 {offsets = [0, 32], sizes = [64, 32], strides = [1, 1]} : vector<64x64xf32> to vector<64x32xf32>
    "tpu.trace_start"() <{level = 10 : i32, message = "id,jd->ij"}> : () -> ()
    %cst_49 = arith.constant dense<0.000000e+00> : vector<64x64xf32>
    %94 = tpu.matmul %91, %92, %cst_49 {dimension_numbers = #tpu.dot_dimension_numbers<[1], [1], [0], [0], [0, 0, 1, 0], [], []>} : vector<64x32xf32>, vector<64x32xf32>, vector<64x64xf32> -> vector<64x64xf32>
    "tpu.trace_stop"() : () -> ()
    %cst_50 = arith.constant 0.176776692 : f32
    %95 = vector.broadcast %cst_50 : f32 to vector<64x64xf32>
    %96 = arith.mulf %94, %95 : vector<64x64xf32>
    %cst_51 = arith.constant dense<0xFF800000> : vector<64xf32>
    %97 = vector.multi_reduction <maximumf>, %96, %cst_51 [1] : vector<64x64xf32> to vector<64xf32>
    %98 = vector.shape_cast %97 : vector<64xf32> to vector<64x1xf32>
    %99 = vector.broadcast %98 : vector<64x1xf32> to vector<64x64xf32>
    %100 = arith.subf %96, %99 : vector<64x64xf32>
    %101 = math.exp %100 : vector<64x64xf32>
    %cst_52 = arith.constant dense<0.000000e+00> : vector<64xf32>
    %102 = vector.multi_reduction <add>, %101, %cst_52 [1] : vector<64x64xf32> to vector<64xf32>
    %103 = vector.shape_cast %102 : vector<64xf32> to vector<64x1xf32>
    %104 = tpu.reciprocal %103 {approx = true} : vector<64x1xf32> -> vector<64x1xf32>
    %105 = vector.broadcast %104 : vector<64x1xf32> to vector<64x64xf32>
    %106 = arith.mulf %101, %105 : vector<64x64xf32>
    %107 = arith.truncf %106 : vector<64x64xf32> to vector<64x64xbf16>
    %108 = arith.truncf %93 : vector<64x32xf32> to vector<64x32xbf16>
    %cst_53 = arith.constant dense<0.000000e+00> : vector<64x32xf32>
    %109 = tpu.matmul %107, %108, %cst_53 {dimension_numbers = #tpu.dot_dimension_numbers<[1], [0], [0], [1], [0, 0, 1, 1], [], []>} : vector<64x64xbf16>, vector<64x32xbf16>, vector<64x32xf32> -> vector<64x32xf32>
    %110 = arith.truncf %109 : vector<64x32xf32> to vector<64x32xbf16>
    %c1 = arith.constant 1 : index
    %c0_54 = arith.constant 0 : index
    %c0_55 = arith.constant 0 : index
    %111 = vector.load %arg12[%c1, %c0_54, %c0_55] : memref<2x32x64xbf16, #tpu.memory_space<vmem>>, vector<1x32x64xbf16>
    %112 = vector.shape_cast %111 : vector<1x32x64xbf16> to vector<32x64xbf16>
    %cst_56 = arith.constant dense<0.000000e+00> : vector<64x64xf32>
    %113 = tpu.matmul %110, %112, %cst_56 {dimension_numbers = #tpu.dot_dimension_numbers<[1], [0], [0], [1], [0, 0, 1, 1], [], []>} : vector<64x32xbf16>, vector<32x64xbf16>, vector<64x64xf32> -> vector<64x64xf32>
    %114 = arith.addf %90, %113 : vector<64x64xf32>
    %c0_57 = arith.constant 0 : index
    %c0_58 = arith.constant 0 : index
    %115 = vector.load %arg13[%c0_57, %c0_58] : memref<1x64xf32, #tpu.memory_space<vmem>>, vector<1x64xf32>
    %116 = vector.broadcast %115 : vector<1x64xf32> to vector<64x64xf32>
    %117 = arith.addf %114, %116 : vector<64x64xf32>
    %118 = arith.addf %33, %117 : vector<64x64xf32>
    %cst_59 = arith.constant dense<0.000000e+00> : vector<64xf32>
    %119 = vector.multi_reduction <add>, %118, %cst_59 [1] : vector<64x64xf32> to vector<64xf32>
    %120 = vector.shape_cast %119 : vector<64xf32> to vector<64x1xf32>
    %cst_60 = arith.constant 6.400000e+01 : f32
    %121 = vector.broadcast %cst_60 : f32 to vector<64x1xf32>
    %122 = arith.divf %120, %121 : vector<64x1xf32>
    %123 = vector.broadcast %122 : vector<64x1xf32> to vector<64x64xf32>
    %124 = arith.subf %118, %123 : vector<64x64xf32>
    %125 = arith.mulf %124, %124 : vector<64x64xf32>
    %cst_61 = arith.constant dense<0.000000e+00> : vector<64xf32>
    %126 = vector.multi_reduction <add>, %125, %cst_61 [1] : vector<64x64xf32> to vector<64xf32>
    %127 = vector.shape_cast %126 : vector<64xf32> to vector<64x1xf32>
    %cst_62 = arith.constant 6.400000e+01 : f32
    %128 = vector.broadcast %cst_62 : f32 to vector<64x1xf32>
    %129 = arith.divf %127, %128 : vector<64x1xf32>
    %130 = vector.broadcast %122 : vector<64x1xf32> to vector<64x64xf32>
    %131 = arith.subf %118, %130 : vector<64x64xf32>
    %cst_63 = arith.constant 9.99999974E-6 : f32
    %132 = vector.broadcast %cst_63 : f32 to vector<64x1xf32>
    %133 = arith.addf %129, %132 : vector<64x1xf32>
    %134 = math.rsqrt %133 : vector<64x1xf32>
    %135 = vector.broadcast %134 : vector<64x1xf32> to vector<64x64xf32>
    %136 = arith.mulf %131, %135 : vector<64x64xf32>
    %c0_64 = arith.constant 0 : index
    %c0_65 = arith.constant 0 : index
    %137 = vector.load %arg14[%c0_64, %c0_65] : memref<1x64xf32, #tpu.memory_space<vmem>>, vector<1x64xf32>
    %138 = vector.broadcast %137 : vector<1x64xf32> to vector<64x64xf32>
    %139 = arith.mulf %136, %138 : vector<64x64xf32>
    %c0_66 = arith.constant 0 : index
    %c0_67 = arith.constant 0 : index
    %140 = vector.load %arg15[%c0_66, %c0_67] : memref<1x64xf32, #tpu.memory_space<vmem>>, vector<1x64xf32>
    %141 = vector.broadcast %140 : vector<1x64xf32> to vector<64x64xf32>
    %142 = arith.addf %139, %141 : vector<64x64xf32>
    %143 = arith.truncf %142 : vector<64x64xf32> to vector<64x64xbf16>
    %c0_68 = arith.constant 0 : index
    %c0_69 = arith.constant 0 : index
    %144 = vector.load %arg16[%c0_68, %c0_69] : memref<64x64xbf16, #tpu.memory_space<vmem>>, vector<64x64xbf16>
    %cst_70 = arith.constant dense<0.000000e+00> : vector<64x64xf32>
    %145 = tpu.matmul %143, %144, %cst_70 {dimension_numbers = #tpu.dot_dimension_numbers<[1], [0], [0], [1], [0, 0, 1, 1], [], []>} : vector<64x64xbf16>, vector<64x64xbf16>, vector<64x64xf32> -> vector<64x64xf32>
    %146 = arith.truncf %142 : vector<64x64xf32> to vector<64x64xbf16>
    %c0_71 = arith.constant 0 : index
    %c0_72 = arith.constant 0 : index
    %147 = vector.load %arg17[%c0_71, %c0_72] : memref<64x64xbf16, #tpu.memory_space<vmem>>, vector<64x64xbf16>
    %cst_73 = arith.constant dense<0.000000e+00> : vector<64x64xf32>
    %148 = tpu.matmul %146, %147, %cst_73 {dimension_numbers = #tpu.dot_dimension_numbers<[1], [0], [0], [1], [0, 0, 1, 1], [], []>} : vector<64x64xbf16>, vector<64x64xbf16>, vector<64x64xf32> -> vector<64x64xf32>
    %c0_74 = arith.constant 0 : index
    %c0_75 = arith.constant 0 : index
    %149 = vector.load %arg18[%c0_74, %c0_75] : memref<64x64xbf16, #tpu.memory_space<vmem>>, vector<64x64xbf16>
    %cst_76 = arith.constant dense<0.000000e+00> : vector<64x64xf32>
    %150 = tpu.matmul %146, %149, %cst_76 {dimension_numbers = #tpu.dot_dimension_numbers<[1], [0], [0], [1], [0, 0, 1, 1], [], []>} : vector<64x64xbf16>, vector<64x64xbf16>, vector<64x64xf32> -> vector<64x64xf32>
    %cst_77 = arith.constant 0.000000e+00 : f32
    %151 = vector.broadcast %cst_77 : f32 to vector<64x64xf32>
    %152 = vector.extract_strided_slice %145 {offsets = [0, 0], sizes = [64, 32], strides = [1, 1]} : vector<64x64xf32> to vector<64x32xf32>
    %153 = vector.extract_strided_slice %148 {offsets = [0, 0], sizes = [64, 32], strides = [1, 1]} : vector<64x64xf32> to vector<64x32xf32>
    %154 = vector.extract_strided_slice %150 {offsets = [0, 0], sizes = [64, 32], strides = [1, 1]} : vector<64x64xf32> to vector<64x32xf32>
    "tpu.trace_start"() <{level = 10 : i32, message = "id,jd->ij"}> : () -> ()
    %cst_78 = arith.constant dense<0.000000e+00> : vector<64x64xf32>
    %155 = tpu.matmul %152, %153, %cst_78 {dimension_numbers = #tpu.dot_dimension_numbers<[1], [1], [0], [0], [0, 0, 1, 0], [], []>} : vector<64x32xf32>, vector<64x32xf32>, vector<64x64xf32> -> vector<64x64xf32>
    "tpu.trace_stop"() : () -> ()
    %cst_79 = arith.constant 0.176776692 : f32
    %156 = vector.broadcast %cst_79 : f32 to vector<64x64xf32>
    %157 = arith.mulf %155, %156 : vector<64x64xf32>
    %cst_80 = arith.constant dense<0xFF800000> : vector<64xf32>
    %158 = vector.multi_reduction <maximumf>, %157, %cst_80 [1] : vector<64x64xf32> to vector<64xf32>
    %159 = vector.shape_cast %158 : vector<64xf32> to vector<64x1xf32>
    %160 = vector.broadcast %159 : vector<64x1xf32> to vector<64x64xf32>
    %161 = arith.subf %157, %160 : vector<64x64xf32>
    %162 = math.exp %161 : vector<64x64xf32>
    %cst_81 = arith.constant dense<0.000000e+00> : vector<64xf32>
    %163 = vector.multi_reduction <add>, %162, %cst_81 [1] : vector<64x64xf32> to vector<64xf32>
    %164 = vector.shape_cast %163 : vector<64xf32> to vector<64x1xf32>
    %165 = tpu.reciprocal %164 {approx = true} : vector<64x1xf32> -> vector<64x1xf32>
    %166 = vector.broadcast %165 : vector<64x1xf32> to vector<64x64xf32>
    %167 = arith.mulf %162, %166 : vector<64x64xf32>
    %168 = arith.truncf %167 : vector<64x64xf32> to vector<64x64xbf16>
    %169 = arith.truncf %154 : vector<64x32xf32> to vector<64x32xbf16>
    %cst_82 = arith.constant dense<0.000000e+00> : vector<64x32xf32>
    %170 = tpu.matmul %168, %169, %cst_82 {dimension_numbers = #tpu.dot_dimension_numbers<[1], [0], [0], [1], [0, 0, 1, 1], [], []>} : vector<64x64xbf16>, vector<64x32xbf16>, vector<64x32xf32> -> vector<64x32xf32>
    %171 = arith.truncf %170 : vector<64x32xf32> to vector<64x32xbf16>
    %c0_83 = arith.constant 0 : index
    %c0_84 = arith.constant 0 : index
    %c0_85 = arith.constant 0 : index
    %172 = vector.load %arg19[%c0_83, %c0_84, %c0_85] : memref<2x32x64xbf16, #tpu.memory_space<vmem>>, vector<1x32x64xbf16>
    %173 = vector.shape_cast %172 : vector<1x32x64xbf16> to vector<32x64xbf16>
    %cst_86 = arith.constant dense<0.000000e+00> : vector<64x64xf32>
    %174 = tpu.matmul %171, %173, %cst_86 {dimension_numbers = #tpu.dot_dimension_numbers<[1], [0], [0], [1], [0, 0, 1, 1], [], []>} : vector<64x32xbf16>, vector<32x64xbf16>, vector<64x64xf32> -> vector<64x64xf32>
    %175 = arith.addf %151, %174 : vector<64x64xf32>
    %176 = vector.extract_strided_slice %145 {offsets = [0, 32], sizes = [64, 32], strides = [1, 1]} : vector<64x64xf32> to vector<64x32xf32>
    %177 = vector.extract_strided_slice %148 {offsets = [0, 32], sizes = [64, 32], strides = [1, 1]} : vector<64x64xf32> to vector<64x32xf32>
    %178 = vector.extract_strided_slice %150 {offsets = [0, 32], sizes = [64, 32], strides = [1, 1]} : vector<64x64xf32> to vector<64x32xf32>
    "tpu.trace_start"() <{level = 10 : i32, message = "id,jd->ij"}> : () -> ()
    %cst_87 = arith.constant dense<0.000000e+00> : vector<64x64xf32>
    %179 = tpu.matmul %176, %177, %cst_87 {dimension_numbers = #tpu.dot_dimension_numbers<[1], [1], [0], [0], [0, 0, 1, 0], [], []>} : vector<64x32xf32>, vector<64x32xf32>, vector<64x64xf32> -> vector<64x64xf32>
    "tpu.trace_stop"() : () -> ()
    %cst_88 = arith.constant 0.176776692 : f32
    %180 = vector.broadcast %cst_88 : f32 to vector<64x64xf32>
    %181 = arith.mulf %179, %180 : vector<64x64xf32>
    %cst_89 = arith.constant dense<0xFF800000> : vector<64xf32>
    %182 = vector.multi_reduction <maximumf>, %181, %cst_89 [1] : vector<64x64xf32> to vector<64xf32>
    %183 = vector.shape_cast %182 : vector<64xf32> to vector<64x1xf32>
    %184 = vector.broadcast %183 : vector<64x1xf32> to vector<64x64xf32>
    %185 = arith.subf %181, %184 : vector<64x64xf32>
    %186 = math.exp %185 : vector<64x64xf32>
    %cst_90 = arith.constant dense<0.000000e+00> : vector<64xf32>
    %187 = vector.multi_reduction <add>, %186, %cst_90 [1] : vector<64x64xf32> to vector<64xf32>
    %188 = vector.shape_cast %187 : vector<64xf32> to vector<64x1xf32>
    %189 = tpu.reciprocal %188 {approx = true} : vector<64x1xf32> -> vector<64x1xf32>
    %190 = vector.broadcast %189 : vector<64x1xf32> to vector<64x64xf32>
    %191 = arith.mulf %186, %190 : vector<64x64xf32>
    %192 = arith.truncf %191 : vector<64x64xf32> to vector<64x64xbf16>
    %193 = arith.truncf %178 : vector<64x32xf32> to vector<64x32xbf16>
    %cst_91 = arith.constant dense<0.000000e+00> : vector<64x32xf32>
    %194 = tpu.matmul %192, %193, %cst_91 {dimension_numbers = #tpu.dot_dimension_numbers<[1], [0], [0], [1], [0, 0, 1, 1], [], []>} : vector<64x64xbf16>, vector<64x32xbf16>, vector<64x32xf32> -> vector<64x32xf32>
    %195 = arith.truncf %194 : vector<64x32xf32> to vector<64x32xbf16>
    %c1_92 = arith.constant 1 : index
    %c0_93 = arith.constant 0 : index
    %c0_94 = arith.constant 0 : index
    %196 = vector.load %arg19[%c1_92, %c0_93, %c0_94] : memref<2x32x64xbf16, #tpu.memory_space<vmem>>, vector<1x32x64xbf16>
    %197 = vector.shape_cast %196 : vector<1x32x64xbf16> to vector<32x64xbf16>
    %cst_95 = arith.constant dense<0.000000e+00> : vector<64x64xf32>
    %198 = tpu.matmul %195, %197, %cst_95 {dimension_numbers = #tpu.dot_dimension_numbers<[1], [0], [0], [1], [0, 0, 1, 1], [], []>} : vector<64x32xbf16>, vector<32x64xbf16>, vector<64x64xf32> -> vector<64x64xf32>
    %199 = arith.addf %175, %198 : vector<64x64xf32>
    %c0_96 = arith.constant 0 : index
    %c0_97 = arith.constant 0 : index
    %200 = vector.load %arg20[%c0_96, %c0_97] : memref<1x64xf32, #tpu.memory_space<vmem>>, vector<1x64xf32>
    %201 = vector.broadcast %200 : vector<1x64xf32> to vector<64x64xf32>
    %202 = arith.addf %199, %201 : vector<64x64xf32>
    %203 = arith.addf %118, %202 : vector<64x64xf32>
    %cst_98 = arith.constant dense<0.000000e+00> : vector<64xf32>
    %204 = vector.multi_reduction <add>, %203, %cst_98 [1] : vector<64x64xf32> to vector<64xf32>
    %205 = vector.shape_cast %204 : vector<64xf32> to vector<64x1xf32>
    %cst_99 = arith.constant 6.400000e+01 : f32
    %206 = vector.broadcast %cst_99 : f32 to vector<64x1xf32>
    %207 = arith.divf %205, %206 : vector<64x1xf32>
    %208 = vector.broadcast %207 : vector<64x1xf32> to vector<64x64xf32>
    %209 = arith.subf %203, %208 : vector<64x64xf32>
    %210 = arith.mulf %209, %209 : vector<64x64xf32>
    %cst_100 = arith.constant dense<0.000000e+00> : vector<64xf32>
    %211 = vector.multi_reduction <add>, %210, %cst_100 [1] : vector<64x64xf32> to vector<64xf32>
    %212 = vector.shape_cast %211 : vector<64xf32> to vector<64x1xf32>
    %cst_101 = arith.constant 6.400000e+01 : f32
    %213 = vector.broadcast %cst_101 : f32 to vector<64x1xf32>
    %214 = arith.divf %212, %213 : vector<64x1xf32>
    %215 = vector.broadcast %207 : vector<64x1xf32> to vector<64x64xf32>
    %216 = arith.subf %203, %215 : vector<64x64xf32>
    %cst_102 = arith.constant 9.99999974E-6 : f32
    %217 = vector.broadcast %cst_102 : f32 to vector<64x1xf32>
    %218 = arith.addf %214, %217 : vector<64x1xf32>
    %219 = math.rsqrt %218 : vector<64x1xf32>
    %220 = vector.broadcast %219 : vector<64x1xf32> to vector<64x64xf32>
    %221 = arith.mulf %216, %220 : vector<64x64xf32>
    %c0_103 = arith.constant 0 : index
    %c0_104 = arith.constant 0 : index
    %222 = vector.load %arg21[%c0_103, %c0_104] : memref<1x64xf32, #tpu.memory_space<vmem>>, vector<1x64xf32>
    %223 = vector.broadcast %222 : vector<1x64xf32> to vector<64x64xf32>
    %224 = arith.mulf %221, %223 : vector<64x64xf32>
    %c0_105 = arith.constant 0 : index
    %c0_106 = arith.constant 0 : index
    %225 = vector.load %arg22[%c0_105, %c0_106] : memref<1x64xf32, #tpu.memory_space<vmem>>, vector<1x64xf32>
    %226 = vector.broadcast %225 : vector<1x64xf32> to vector<64x64xf32>
    %227 = arith.addf %224, %226 : vector<64x64xf32>
    %228 = arith.truncf %227 : vector<64x64xf32> to vector<64x64xbf16>
    %c0_107 = arith.constant 0 : index
    %c0_108 = arith.constant 0 : index
    %229 = vector.load %arg23[%c0_107, %c0_108] : memref<64x256xbf16, #tpu.memory_space<vmem>>, vector<64x256xbf16>
    %cst_109 = arith.constant dense<0.000000e+00> : vector<64x256xf32>
    %230 = tpu.matmul %228, %229, %cst_109 {dimension_numbers = #tpu.dot_dimension_numbers<[1], [0], [0], [1], [0, 0, 1, 1], [], []>} : vector<64x64xbf16>, vector<64x256xbf16>, vector<64x256xf32> -> vector<64x256xf32>
    %c0_110 = arith.constant 0 : index
    %c0_111 = arith.constant 0 : index
    %231 = vector.load %arg24[%c0_110, %c0_111] : memref<1x256xf32, #tpu.memory_space<vmem>>, vector<1x256xf32>
    %232 = vector.broadcast %231 : vector<1x256xf32> to vector<64x256xf32>
    %233 = arith.addf %230, %232 : vector<64x256xf32>
    %c0_112 = arith.constant 0 : index
    %c0_113 = arith.constant 0 : index
    %234 = vector.load %arg25[%c0_112, %c0_113] : memref<64x256xbf16, #tpu.memory_space<vmem>>, vector<64x256xbf16>
    %cst_114 = arith.constant dense<0.000000e+00> : vector<64x256xf32>
    %235 = tpu.matmul %228, %234, %cst_114 {dimension_numbers = #tpu.dot_dimension_numbers<[1], [0], [0], [1], [0, 0, 1, 1], [], []>} : vector<64x64xbf16>, vector<64x256xbf16>, vector<64x256xf32> -> vector<64x256xf32>
    %c0_115 = arith.constant 0 : index
    %c0_116 = arith.constant 0 : index
    %236 = vector.load %arg26[%c0_115, %c0_116] : memref<1x256xf32, #tpu.memory_space<vmem>>, vector<1x256xf32>
    %237 = vector.broadcast %236 : vector<1x256xf32> to vector<64x256xf32>
    %238 = arith.addf %235, %237 : vector<64x256xf32>
    %239 = arith.mulf %238, %238 : vector<64x256xf32>
    %240 = arith.mulf %238, %239 : vector<64x256xf32>
    %cst_117 = arith.constant 4.471500e-02 : f32
    %241 = vector.broadcast %cst_117 : f32 to vector<64x256xf32>
    %242 = arith.mulf %241, %240 : vector<64x256xf32>
    %243 = arith.addf %238, %242 : vector<64x256xf32>
    %cst_118 = arith.constant 0.797884583 : f32
    %244 = vector.broadcast %cst_118 : f32 to vector<64x256xf32>
    %245 = arith.mulf %244, %243 : vector<64x256xf32>
    %246 = math.tanh %245 : vector<64x256xf32>
    %cst_119 = arith.constant 1.000000e+00 : f32
    %247 = vector.broadcast %cst_119 : f32 to vector<64x256xf32>
    %248 = arith.addf %247, %246 : vector<64x256xf32>
    %cst_120 = arith.constant 5.000000e-01 : f32
    %249 = vector.broadcast %cst_120 : f32 to vector<64x256xf32>
    %250 = arith.mulf %249, %248 : vector<64x256xf32>
    %251 = arith.mulf %238, %250 : vector<64x256xf32>
    %252 = arith.mulf %233, %251 : vector<64x256xf32>
    %253 = arith.truncf %252 : vector<64x256xf32> to vector<64x256xbf16>
    %c0_121 = arith.constant 0 : index
    %c0_122 = arith.constant 0 : index
    %254 = vector.load %arg27[%c0_121, %c0_122] : memref<256x64xbf16, #tpu.memory_space<vmem>>, vector<256x64xbf16>
    %cst_123 = arith.constant dense<0.000000e+00> : vector<64x64xf32>
    %255 = tpu.matmul %253, %254, %cst_123 {dimension_numbers = #tpu.dot_dimension_numbers<[1], [0], [0], [1], [0, 0, 1, 1], [], []>} : vector<64x256xbf16>, vector<256x64xbf16>, vector<64x64xf32> -> vector<64x64xf32>
    %c0_124 = arith.constant 0 : index
    %c0_125 = arith.constant 0 : index
    %256 = vector.load %arg28[%c0_124, %c0_125] : memref<1x64xf32, #tpu.memory_space<vmem>>, vector<1x64xf32>
    %257 = vector.broadcast %256 : vector<1x64xf32> to vector<64x64xf32>
    %258 = arith.addf %255, %257 : vector<64x64xf32>
    %259 = arith.addf %203, %258 : vector<64x64xf32>
    %260 = arith.truncf %259 : vector<64x64xf32> to vector<64x64xbf16>
    %c0_126 = arith.constant 0 : index
    %c0_127 = arith.constant 0 : index
    %261 = vector.load %arg29[%c0_126, %c0_127] : memref<64x64xbf16, #tpu.memory_space<vmem>>, vector<64x64xbf16>
    %cst_128 = arith.constant dense<0.000000e+00> : vector<64x64xf32>
    %262 = tpu.matmul %260, %261, %cst_128 {dimension_numbers = #tpu.dot_dimension_numbers<[1], [0], [0], [1], [0, 0, 1, 1], [], []>} : vector<64x64xbf16>, vector<64x64xbf16>, vector<64x64xf32> -> vector<64x64xf32>
    %c0_129 = arith.constant 0 : index
    %c0_130 = arith.constant 0 : index
    %263 = vector.load %arg30[%c0_129, %c0_130] : memref<1x64xf32, #tpu.memory_space<vmem>>, vector<1x64xf32>
    %264 = vector.broadcast %263 : vector<1x64xf32> to vector<64x64xf32>
    %265 = arith.addf %262, %264 : vector<64x64xf32>
    %266 = arith.addf %265, %1 : vector<64x64xf32>
    %267 = vector.shape_cast %266 : vector<64x64xf32> to vector<1x64x64xf32>
    %c0_131 = arith.constant 0 : index
    %c0_132 = arith.constant 0 : index
    %c0_133 = arith.constant 0 : index
    %268 = vector.load %arg31[%c0_131, %c0_132, %c0_133] : memref<1x64x64xf32, #tpu.memory_space<vmem>>, vector<1x64x64xf32>
    tpu.vector_store %arg31[%c0_131, %c0_132, %c0_133], %267 {strides = array<i32>} : memref<1x64x64xf32, #tpu.memory_space<vmem>>, vector<1x64x64xf32>,
    return
  }
  func.func @transform_0(%arg0: i32) -> (i32, i32, i32) {
    %c0_i32 = arith.constant 0 : i32
    %c0_i32_0 = arith.constant 0 : i32
    %c0_i32_1 = arith.constant 0 : i32
    return %arg0, %c0_i32, %c0_i32_0 : i32, i32, i32
  }
  func.func @transform_1(%arg0: i32) -> (i32, i32) {
    %c0_i32 = arith.constant 0 : i32
    %c0_i32_0 = arith.constant 0 : i32
    %c0_i32_1 = arith.constant 0 : i32
    return %c0_i32, %c0_i32_0 : i32, i32
  }
  func.func @transform_2(%arg0: i32) -> (i32, i32) {
    %c0_i32 = arith.constant 0 : i32
    %c0_i32_0 = arith.constant 0 : i32
    %c0_i32_1 = arith.constant 0 : i32
    return %c0_i32, %c0_i32_0 : i32, i32
  }
  func.func @transform_3(%arg0: i32) -> (i32, i32) {
    %c0_i32 = arith.constant 0 : i32
    %c0_i32_0 = arith.constant 0 : i32
    %c0_i32_1 = arith.constant 0 : i32
    return %c0_i32, %c0_i32_0 : i32, i32
  }
  func.func @transform_4(%arg0: i32) -> (i32, i32) {
    %c0_i32 = arith.constant 0 : i32
    %c0_i32_0 = arith.constant 0 : i32
    %c0_i32_1 = arith.constant 0 : i32
    return %c0_i32, %c0_i32_0 : i32, i32
  }
  func.func @transform_5(%arg0: i32) -> (i32, i32) {
    %c0_i32 = arith.constant 0 : i32
    %c0_i32_0 = arith.constant 0 : i32
    %c0_i32_1 = arith.constant 0 : i32
    return %c0_i32, %c0_i32_0 : i32, i32
  }
  func.func @transform_6(%arg0: i32) -> (i32, i32) {
    %c0_i32 = arith.constant 0 : i32
    %c0_i32_0 = arith.constant 0 : i32
    %c0_i32_1 = arith.constant 0 : i32
    return %c0_i32, %c0_i32_0 : i32, i32
  }
  func.func @transform_7(%arg0: i32) -> (i32, i32) {
    %c0_i32 = arith.constant 0 : i32
    %c0_i32_0 = arith.constant 0 : i32
    %c0_i32_1 = arith.constant 0 : i32
    return %c0_i32, %c0_i32_0 : i32, i32
  }
  func.func @transform_8(%arg0: i32) -> (i32, i32) {
    %c0_i32 = arith.constant 0 : i32
    %c0_i32_0 = arith.constant 0 : i32
    %c0_i32_1 = arith.constant 0 : i32
    return %c0_i32, %c0_i32_0 : i32, i32
  }
  func.func @transform_9(%arg0: i32) -> (i32, i32) {
    %c0_i32 = arith.constant 0 : i32
    %c0_i32_0 = arith.constant 0 : i32
    %c0_i32_1 = arith.constant 0 : i32
    return %c0_i32, %c0_i32_0 : i32, i32
  }
  func.func @transform_10(%arg0: i32) -> (i32, i32) {
    %c0_i32 = arith.constant 0 : i32
    %c0_i32_0 = arith.constant 0 : i32
    %c0_i32_1 = arith.constant 0 : i32
    return %c0_i32, %c0_i32_0 : i32, i32
  }
  func.func @transform_11(%arg0: i32) -> (i32, i32, i32) {
    %c0_i32 = arith.constant 0 : i32
    %c0_i32_0 = arith.constant 0 : i32
    %c0_i32_1 = arith.constant 0 : i32
    %c0_i32_2 = arith.constant 0 : i32
    return %c0_i32, %c0_i32_0, %c0_i32_1 : i32, i32, i32
  }
  func.func @transform_12(%arg0: i32) -> (i32, i32) {
    %c0_i32 = arith.constant 0 : i32
    %c0_i32_0 = arith.constant 0 : i32
    %c0_i32_1 = arith.constant 0 : i32
    return %c0_i32, %c0_i32_0 : i32, i32
  }
  func.func @transform_13(%arg0: i32) -> (i32, i32) {
    %c0_i32 = arith.constant 0 : i32
    %c0_i32_0 = arith.constant 0 : i32
    %c0_i32_1 = arith.constant 0 : i32
    return %c0_i32, %c0_i32_0 : i32, i32
  }
  func.func @transform_14(%arg0: i32) -> (i32, i32) {
    %c0_i32 = arith.constant 0 : i32
    %c0_i32_0 = arith.constant 0 : i32
    %c0_i32_1 = arith.constant 0 : i32
    return %c0_i32, %c0_i32_0 : i32, i32
  }
  func.func @transform_15(%arg0: i32) -> (i32, i32) {
    %c0_i32 = arith.constant 0 : i32
    %c0_i32_0 = arith.constant 0 : i32
    %c0_i32_1 = arith.constant 0 : i32
    return %c0_i32, %c0_i32_0 : i32, i32
  }
  func.func @transform_16(%arg0: i32) -> (i32, i32) {
    %c0_i32 = arith.constant 0 : i32
    %c0_i32_0 = arith.constant 0 : i32
    %c0_i32_1 = arith.constant 0 : i32
    return %c0_i32, %c0_i32_0 : i32, i32
  }
  func.func @transform_17(%arg0: i32) -> (i32, i32) {
    %c0_i32 = arith.constant 0 : i32
    %c0_i32_0 = arith.constant 0 : i32
    %c0_i32_1 = arith.constant 0 : i32
    return %c0_i32, %c0_i32_0 : i32, i32
  }
  func.func @transform_18(%arg0: i32) -> (i32, i32, i32) {
    %c0_i32 = arith.constant 0 : i32
    %c0_i32_0 = arith.constant 0 : i32
    %c0_i32_1 = arith.constant 0 : i32
    %c0_i32_2 = arith.constant 0 : i32
    return %c0_i32, %c0_i32_0, %c0_i32_1 : i32, i32, i32
  }
  func.func @transform_19(%arg0: i32) -> (i32, i32) {
    %c0_i32 = arith.constant 0 : i32
    %c0_i32_0 = arith.constant 0 : i32
    %c0_i32_1 = arith.constant 0 : i32
    return %c0_i32, %c0_i32_0 : i32, i32
  }
  func.func @transform_20(%arg0: i32) -> (i32, i32) {
    %c0_i32 = arith.constant 0 : i32
    %c0_i32_0 = arith.constant 0 : i32
    %c0_i32_1 = arith.constant 0 : i32
    return %c0_i32, %c0_i32_0 : i32, i32
  }
  func.func @transform_21(%arg0: i32) -> (i32, i32) {
    %c0_i32 = arith.constant 0 : i32
    %c0_i32_0 = arith.constant 0 : i32
    %c0_i32_1 = arith.constant 0 : i32
    return %c0_i32, %c0_i32_0 : i32, i32
  }
  func.func @transform_22(%arg0: i32) -> (i32, i32) {
    %c0_i32 = arith.constant 0 : i32
    %c0_i32_0 = arith.constant 0 : i32
    %c0_i32_1 = arith.constant 0 : i32
    return %c0_i32, %c0_i32_0 : i32, i32
  }
  func.func @transform_23(%arg0: i32) -> (i32, i32) {
    %c0_i32 = arith.constant 0 : i32
    %c0_i32_0 = arith.constant 0 : i32
    %c0_i32_1 = arith.constant 0 : i32
    return %c0_i32, %c0_i32_0 : i32, i32
  }
  func.func @transform_24(%arg0: i32) -> (i32, i32) {
    %c0_i32 = arith.constant 0 : i32
    %c0_i32_0 = arith.constant 0 : i32
    %c0_i32_1 = arith.constant 0 : i32
    return %c0_i32, %c0_i32_0 : i32, i32
  }
  func.func @transform_25(%arg0: i32) -> (i32, i32) {
    %c0_i32 = arith.constant 0 : i32
    %c0_i32_0 = arith.constant 0 : i32
    %c0_i32_1 = arith.constant 0 : i32
    return %c0_i32, %c0_i32_0 : i32, i32
  }
  func.func @transform_26(%arg0: i32) -> (i32, i32) {
    %c0_i32 = arith.constant 0 : i32
    %c0_i32_0 = arith.constant 0 : i32
    %c0_i32_1 = arith.constant 0 : i32
    return %c0_i32, %c0_i32_0 : i32, i32
  }
  func.func @transform_27(%arg0: i32) -> (i32, i32) {
    %c0_i32 = arith.constant 0 : i32
    %c0_i32_0 = arith.constant 0 : i32
    %c0_i32_1 = arith.constant 0 : i32
    return %c0_i32, %c0_i32_0 : i32, i32
  }
  func.func @transform_28(%arg0: i32) -> (i32, i32) {
    %c0_i32 = arith.constant 0 : i32
    %c0_i32_0 = arith.constant 0 : i32
    %c0_i32_1 = arith.constant 0 : i32
    return %c0_i32, %c0_i32_0 : i32, i32
  }
  func.func @transform_29(%arg0: i32) -> (i32, i32) {
    %c0_i32 = arith.constant 0 : i32
    %c0_i32_0 = arith.constant 0 : i32
    %c0_i32_1 = arith.constant 0 : i32
    return %c0_i32, %c0_i32_0 : i32, i32
  }
  func.func @transform_30(%arg0: i32) -> (i32, i32, i32) {
    %c0_i32 = arith.constant 0 : i32
    %c0_i32_0 = arith.constant 0 : i32
    %c0_i32_1 = arith.constant 0 : i32
    return %arg0, %c0_i32, %c0_i32_0 : i32, i32, i32
  }
}

</mosaic_0001>

<bundles_post_ra>
// kernel: spatial_transformer_forward.1
= control target key start
LH: loop header
LB: loop body
LE: loop exit
PB: predicated region body
PF: predicated region fallthrough
CT: control target
= control target key end

     0   :  { %s5179_s6 = smov 1   ;;  %s5180_s10 = smov 2   ;;  %s6702_s0 = inlined_call_operand.smem [shape: u32[31], index: -1, kind: input, shape index: {}] }
   0x1   :  { %s5221_s5 = sld [smem:[%s6702_s0]]   ;;  %s5181_s14 = smov 3  }
   0x2   :  { %s5226_s9 = sld [smem:[%s6702_s0 + %s5179_s6]]   ;;  %s5182_s18 = smov 4  }
   0x3   :  { %s5231_s13 = sld [smem:[%s6702_s0 + %s5180_s10]]   ;;  %s5183_s22 = smov 5  }
   0x4   :  { %s5236_s17 = sld [smem:[%s6702_s0 + %s5181_s14]]   ;;  %s5184_s26 = smov 6  }
   0x5   :  { %s5241_s21 = sld [smem:[%s6702_s0 + %s5182_s18]]   ;;  %s5185_s30 = smov 7  }
   0x6   :  { %s5246_s25 = sld [smem:[%s6702_s0 + %s5183_s22]]   ;;  %s5186_s4 = smov 8  }
   0x7   :  { %6718 = sst [smem:[#allocation5_spill]] %s5221_s5  ;;  %s5187_s10 = smov 9  }
   0x8   :  { %6719 = sst [smem:[#allocation6_spill]] %s5226_s9  ;;  %s5188_s15 = smov 10  }
   0x9   :  { %s5251_s29 = sld [smem:[%s6702_s0 + %s5184_s26]]   ;;  %s5189_s20 = smov 11  }
   0xa   :  { %s5256_s3 = sld [smem:[%s6702_s0 + %s5185_s30]]   ;;  %s5190_s26 = smov 12  }
   0xb   :  { %s5261_s8 = sld [smem:[%s6702_s0 + %s5186_s4]]   ;;  %s5191_s1 = smov 13  }
   0xc   :  { %s5266_s14 = sld [smem:[%s6702_s0 + %s5187_s10]]   ;;  %s5192_s7 = smov 14  }
   0xd   :  { %s5271_s19 = sld [smem:[%s6702_s0 + %s5188_s15]]   ;;  %s5193_s15 = smov 15  }
   0xe   :  { %s5276_s24 = sld [smem:[%s6702_s0 + %s5189_s20]]   ;;  %s5194_s22 = smov 16  }
   0xf   :  { %s5281_s30 = sld [smem:[%s6702_s0 + %s5190_s26]]   ;;  %s5195_s28 = smov 17  }
  0x10   :  { %6720 = sst [smem:[#allocation7_spill]] %s5256_s3 }
  0x11   :  { %6721 = sst [smem:[#allocation8_spill]] %s5261_s8 }
  0x12   :  { %s5286_s6 = sld [smem:[%s6702_s0 + %s5191_s1]]  }
  0x13   :  { %s5291_s12 = sld [smem:[%s6702_s0 + %s5192_s7]]   ;;  %s5196_s7 = smov 18  }
  0x14   :  { %s5296_s20 = sld [smem:[%s6702_s0 + %s5193_s15]]   ;;  %s5197_s15 = smov 19  }
  0x15   :  { %s5301_s27 = sld [smem:[%s6702_s0 + %s5194_s22]]   ;;  %s5198_s22 = smov 20  }
  0x16   :  { %s5306_s4 = sld [smem:[%s6702_s0 + %s5195_s28]]   ;;  %s5199_s28 = smov 21  }
  0x18   :  { %6722 = sst [smem:[#allocation9_spill]] %s5286_s6 }
  0x19   :  { %6723 = sst [smem:[#allocation10_spill]] %s5291_s12 }
  0x1a   :  { %s5311_s12 = sld [smem:[%s6702_s0 + %s5196_s7]]   ;;  %s5200_s7 = smov 22  }
  0x1b   :  { %6724 = sst [smem:[#allocation11_spill]] %s5301_s27 }
  0x1c   :  { %6725 = sst [smem:[#allocation12_spill]] %s5306_s4 }
  0x1d   :  { %s5316_s6 = sld [smem:[%s6702_s0 + %s5197_s15]]   ;;  %s5201_s15 = smov 23  }
  0x1e   :  { %s5321_s27 = sld [smem:[%s6702_s0 + %s5198_s22]]   ;;  %s5202_s22 = smov 24  }
  0x1f   :  { %s5326_s4 = sld [smem:[%s6702_s0 + %s5199_s28]]   ;;  %s5203_s28 = smov 25  }
  0x20   :  { %6726 = sst [smem:[#allocation13_spill]] %s5311_s12 }
  0x21   :  { %s5331_s12 = sld [smem:[%s6702_s0 + %s5200_s7]]   ;;  %s5204_s7 = smov 26  }
  0x23   :  { %6727 = sst [smem:[#allocation14_spill]] %s5316_s6 }
  0x24   :  { %6728 = sst [smem:[#allocation15_spill]] %s5321_s27 }
  0x25   :  { %6729 = sst [smem:[#allocation16_spill]] %s5326_s4 }
  0x26   :  { %s5336_s6 = sld [smem:[%s6702_s0 + %s5201_s15]]   ;;  %s5205_s15 = smov 27  }
  0x27   :  { %6730 = sst [smem:[#allocation17_spill]] %s5331_s12 }
  0x28   :  { %s5341_s27 = sld [smem:[%s6702_s0 + %s5202_s22]]   ;;  %s5206_s22 = smov 28  }
  0x29   :  { %s5346_s4 = sld [smem:[%s6702_s0 + %s5203_s28]]   ;;  %s5207_s28 = smov 29  }
  0x2a   :  { %s5351_s12 = sld [smem:[%s6702_s0 + %s5204_s7]]   ;;  %s5208_s7 = smov 30  }
  0x2c   :  { %6731 = sst [smem:[#allocation18_spill]] %s5336_s6 }
  0x2d   :  { %s5356_s6 = sld [smem:[%s6702_s0 + %s5205_s15]]  }
  0x2e   :  { %6732 = sst [smem:[#allocation19_spill]] %s5341_s27 }
  0x2f   :  { %6733 = sst [smem:[#allocation20_spill]] %s5346_s4 }
  0x30   :  { %6734 = sst [smem:[#allocation21_spill]] %s5351_s12 }
  0x31   :  { %s5361_s27 = sld [smem:[%s6702_s0 + %s5206_s22]]  }
  0x32   :  { %s5366_s4 = sld [smem:[%s6702_s0 + %s5207_s28]]  }
  0x33   :  { %6735 = sst [smem:[#allocation22_spill]] %s5356_s6 }
  0x34   :  { %s5371_s12 = sld [smem:[%s6702_s0 + %s5208_s7]]  }
  0x38   :  { %6736 = sst [smem:[#allocation23_spill]] %s5366_s4 }
  0x39   :  { %66 = vsyncpa [#allocation3], 0 }
  0x3a   :  { %68 = vsyncpa [#allocation3 + $0x1], 0  ;;  %s5373_s15 = smov 0   ;;  %s5375_s16 = smov 0  }
  0x3b   :  { %s5377_s18 = smov 0   ;;  %s5379_s22 = smov 0  }
  0x3c LB: > { %s6737_s8 = sld [smem:[#allocation8_spill]]  ;;  %s5394_s0 = sadd.s32 4294967295, %s5177_s22   ;;  %s5165_s15 = sphi %s5373_s15, %s6760_s15   ;;  %s5177_s22 = sphi %s5379_s22, %s6763_s22   ;;  %s5173_s18 = sphi %s5377_s18, %s6762_s18   ;;  %s5169_s16 = sphi %s5375_s16, %s6761_s16  }
  0x3d   : > { %s4273_s23 = sadd.s32 4294967294, %s5177_s22   ;;  %s5398_s26 = sadd.s32 1, %s5177_s22  }
  0x3e   : > { %s716_s28 = sadd.s32 1, %s5173_s18  ;;  %s713_s1 = ssub.s32 %s5177_s22, %s5398_s26 }
  0x3f   : > { %p726_p0 = scmp.ne.s32.totalorder %s5173_s18, %s5169_s16  ;;  %p714_p1 = scmp.eq.s32.totalorder %s713_s1, 0 }
  0x40   : > { %p727_p2 = scmp.eq.s32.totalorder %s5394_s0, 1  ;;  %p732_p3 = scmp.ne.s32.totalorder %s5169_s16, %s5165_s15 }
  0x41   : > { %p733_p4 = scmp.eq.s32.totalorder %s4273_s23, 1  ;;  %p4276_p7 = scmp.ge.s32.totalorder %s5177_s22, 1 }
  0x42   : > { %s5409_s2 = scalar_select %p714_p1, %s5173_s18, %s716_s28  }
  0x43   : > { %p5411_p5 = por %p727_p2, %p726_p0  ;;  %p5415_p6 = por %p733_p4, %p732_p3 }
  0x44   : > { %p846_p8 = scmp.lt.s32.totalorder %s5177_s22, 3 }
  0x46   : > { %p847_p9 = pnand %p4276_p7, %p846_p8 }
  0x47   : > { %s6740_s5 = sld [smem:[#allocation5_spill]] (!%p847_p9)  ;;  %p924_p10 = scmp.lt.s32.totalorder (!%p847_p9), %s5394_s0, 1 }
  0x48   : > { %850 = sbr.rel (%p847_p9) target bundleno = 4174 (0x104e), region = 140  ;;  %s6741_s9 = sld [smem:[#allocation6_spill]] (!%p847_p9) }
  0x49   : > { %s6742_s3 = sld [smem:[#allocation7_spill]] (!%p847_p9)  ;;  %s6709_s1 = smov (!%p847_p9), 96  }
  0x4a   : > { %s6757_s6 = sld [smem:[#allocation22_spill]] (!%p847_p9) }
  0x4b   : > { %s6758_s4 = sld [smem:[#allocation23_spill]] (!%p847_p9) }
  0x4d   : > { %v975_v0 = vld [vmem:[%s5236_s17 + $0x38] sm:$0xff]  ;;  %v974_v1 = vld [vmem:[%s5236_s17 + $0x30] sm:$0xff]  ;;  %v973_v2 = vld [vmem:[%s5236_s17 + $0x28] sm:$0xff]  ;;  %s925_s11 = scalar_select %p924_p10, %s5394_s0, 1  ;;  %vm938_vm0 = vcmask 523264   ;;  %v5209_v8 = vmov 64.0  }
  0x4e   : > { %987 = vmatpush.msra.mxu0 %v975_v0  ;;  %1049 = vmatpush.msra.mxu1 %v975_v0  ;;  %v972_v3 = vld [vmem:[%s5236_s17 + $0x20] sm:$0xff]  ;;  %v971_v4 = vld [vmem:[%s5236_s17 + $0x18] sm:$0xff]  ;;  %4895 = vrcp.f32 %v5209_v8  ;;  %v970_v13 = vld [vmem:[%s5236_s17 + $0x10] sm:$0xff] }
  0x4f   : > { %s4727_s23 = sshll.u32 %s925_s11, 6  ;;  %v969_v16 = vld [vmem:[%s5236_s17 + $0x8] sm:$0xff]  ;;  %v968_v22 = vld [vmem:[%s5236_s17] sm:$0xff]  ;;  %s6743_s11 = sld [smem:[#allocation11_spill]] }
  0x50   : > { %988 = vmatpush.msra.mxu0 %v974_v1  ;;  %1050 = vmatpush.msra.mxu1 %v974_v1  ;;  %s5429_s28 = scalar_lea.vmem %s6740_s5, %s4727_s23  ;;  %s6744_s23 = sld [smem:[#allocation12_spill]] }
  0x51   : > { %v930_v5 = vld [vmem:[%s5429_s28] sm:$0xff]  ;;  %v931_v6 = vld [vmem:[%s5429_s28 + $0x8] sm:$0xff]  ;;  %v932_v7 = vld [vmem:[%s5429_s28 + $0x10] sm:$0xff] }
  0x52   : > { %989 = vmatpush.msra.mxu0 %v973_v2  ;;  %1051 = vmatpush.msra.mxu1 %v973_v2  ;;  %v933_v9 = vld [vmem:[%s5429_s28 + $0x18] sm:$0xff]  ;;  %v939_v10 = vsel %vm938_vm0, %v930_v5, 0.0  ;;  %v940_v11 = vsel %vm938_vm0, %v931_v6, 0.0  ;;  %v942_v12 = vsel %vm938_vm0, %v932_v7, 0.0  ;;  %v934_v14 = vld [vmem:[%s5429_s28 + $0x20] sm:$0xff]  ;;  %v935_v17 = vld [vmem:[%s5429_s28 + $0x28] sm:$0xff] }
  0x53   : > { %v941_v15 = vadd.f32 %v940_v11, %v939_v10  ;;  %v944_v18 = vsel %vm938_vm0, %v933_v9, 0.0  ;;  %v946_v20 = vsel %vm938_vm0, %v934_v14, 0.0  ;;  %v936_v23 = vld [vmem:[%s5429_s28 + $0x30] sm:$0xff]  ;;  %v948_v25 = vsel %vm938_vm0, %v935_v17, 0.0  ;;  %v937_v26 = vld [vmem:[%s5429_s28 + $0x38] sm:$0xff] }
  0x54   : > { %990 = vmatpush.msra.mxu0 %v972_v3  ;;  %1052 = vmatpush.msra.mxu1 %v972_v3  ;;  %v4896_v21 = vpop.eup %4895  ;;  %v950_v28 = vsel %vm938_vm0, %v936_v23, 0.0  ;;  %v952_v31 = vsel %vm938_vm0, %v937_v26, 0.0 }
  0x55   : > { %v943_v19 = vadd.f32 %v942_v12, %v941_v15  ;;  %v961_v29 = vmul.f32 64.0, %v4896_v21  ;;  %vm965_vm1 = vweird.f32 %v4896_v21 }
  0x56   : > { %991 = vmatpush.msra.mxu0 %v971_v4  ;;  %1053 = vmatpush.msra.mxu1 %v971_v4 }
  0x57   : > { %v945_v24 = vadd.f32 %v944_v18, %v943_v19  ;;  %v962_v33 = vsub.f32 1.0, %v961_v29 }
  0x58   : > { %992 = vmatpush.msra.mxu0 %v970_v13  ;;  %1054 = vmatpush.msra.mxu1 %v970_v13 }
  0x59   : > { %v947_v27 = vadd.f32 %v946_v20, %v945_v24  ;;  %v963_v36 = vmul.f32 %v4896_v21, %v962_v33  ;;  %v4728_v24 = vld [vmem:[%s5241_s21] sm:$0xff] }
  0x5a   : > { %993 = vmatpush.msra.mxu0 %v969_v16  ;;  %1055 = vmatpush.msra.mxu1 %v969_v16 }
  0x5b   : > { %v949_v30 = vadd.f32 %v948_v25, %v947_v27  ;;  %v964_v39 = vadd.f32 %v4896_v21, %v963_v36 }
  0x5c   : > { %994 = vmatpush.msra.mxu0 %v968_v22  ;;  %1056 = vmatpush.msra.mxu1 %v968_v22  ;;  %v4730_v22 = vld [vmem:[%s5241_s21 + $0x10] sm:$0xff] }
  0x5d   : > { %v951_v32 = vadd.f32 %v950_v28, %v949_v30  ;;  %v5450_v42 = vsel %vm965_vm1, %v4896_v21, %v964_v39  ;;  %v4731_v21 = vld [vmem:[%s5241_s21 + $0x18] sm:$0xff] }
  0x5e   : > { %1160 = vmatpush.bf16.msrb.mxu0 %v4731_v21  ;;  %4801 = vmatpush.bf16.msra.mxu2 %v4731_v21 }
  0x5f   : > { %v953_v34 = vadd.f32 %v952_v31, %v951_v32 }
  0x61   : > { %v954_v35 = vrot.slane %v953_v34, 4 }
  0x62   : > { %1161 = vmatpush.bf16.msrb.mxu0 %v4730_v22  ;;  %4802 = vmatpush.bf16.msra.mxu2 %v4730_v22 }
  0x63   : > { %v955_v37 = vadd.f32 %v954_v35, %v953_v34  ;;  %v4882_v35 = vld [vmem:[%s6741_s9] ss:$0 sm:$0xff] }
  0x65   : > { %v956_v38 = vrot.slane %v955_v37, 2 }
  0x67   : > { %v957_v40 = vadd.f32 %v956_v38, %v955_v37  ;;  %v4883_v38 = vld [vmem:[%s5231_s13] ss:$0 sm:$0xff] }
  0x69   : > { %v958_v41 = vrot.slane %v957_v40, 1 }
  0x6b   : > { %v959_v43 = vadd.f32 %v958_v41, %v957_v40 }
  0x6d   : > { %v967_v44 = vmul.f32 %v5450_v42, %v959_v43 }
  0x6f   : > { %4280 = vmatmul.msk.f32.vlgmr.msra.gmra.mxu0 %vm938_vm0, %v967_v44 }
  0xec   : > { %v996_v45 = vpop.f32.mrf.mxu0 }
  0xed   : > { %v999_v46 = vperm.slane %v996_v45, 0 }
  0xef   : > { %v5454_v47 = vsub.f32 %v930_v5, %v999_v46  ;;  %v5456_v48 = vsub.f32 %v931_v6, %v999_v46  ;;  %v5458_v49 = vsub.f32 %v932_v7, %v999_v46  ;;  %v5460_v50 = vsub.f32 %v933_v9, %v999_v46 }
  0xf0   : > { %v5462_v51 = vsub.f32 %v934_v14, %v999_v46  ;;  %v1005_v55 = vsub.f32 %v935_v17, %v999_v46  ;;  %v5474_v60 = vsub.f32 %v936_v23, %v999_v46  ;;  %v5479_v0 = vsub.f32 %v937_v26, %v999_v46  ;;  %v4729_v23 = vld [vmem:[%s5241_s21 + $0x8] sm:$0xff] }
  0xf1   : > { %v1008_v52 = vmul.f32 %v5454_v47, %v5454_v47  ;;  %v1009_v53 = vmul.f32 %v5456_v48, %v5456_v48  ;;  %v1010_v54 = vmul.f32 %v5458_v49, %v5458_v49  ;;  %v1011_v56 = vmul.f32 %v5460_v50, %v5460_v50  ;;  %1162 = vmatpush.bf16.msrb.mxu0 %v4729_v23 }
  0xf2   : > { %v1012_v61 = vmul.f32 %v5462_v51, %v5462_v51  ;;  %v1013_v1 = vmul.f32 %v1005_v55, %v1005_v55  ;;  %v1014_v4 = vmul.f32 %v5474_v60, %v5474_v60  ;;  %v1015_v7 = vmul.f32 %v5479_v0, %v5479_v0  ;;  %4803 = vmatpush.bf16.msra.mxu2 %v4729_v23 }
  0xf3   : > { %v1016_v57 = vsel %vm938_vm0, %v1008_v52, 0.0  ;;  %v1017_v58 = vsel %vm938_vm0, %v1009_v53, 0.0  ;;  %v1019_v62 = vsel %vm938_vm0, %v1010_v54, 0.0  ;;  %v1021_v2 = vsel %vm938_vm0, %v1011_v56, 0.0 }
  0xf4   : > { %v1018_v59 = vadd.f32 %v1017_v58, %v1016_v57  ;;  %v1023_v5 = vsel %vm938_vm0, %v1012_v61, 0.0  ;;  %v1025_v8 = vsel %vm938_vm0, %v1013_v1, 0.0  ;;  %v1027_v10 = vsel %vm938_vm0, %v1014_v4, 0.0 }
  0xf5   : > { %v1029_v12 = vsel %vm938_vm0, %v1015_v7, 0.0  ;;  %1163 = vmatpush.bf16.msrb.mxu0 %v4728_v24 }
  0xf6   : > { %v1020_v63 = vadd.f32 %v1019_v62, %v1018_v59  ;;  %4804 = vmatpush.bf16.msra.mxu2 %v4728_v24 }
  0xf8   : > { %v1022_v3 = vadd.f32 %v1021_v2, %v1020_v63 }
  0xfa   : > { %v1024_v6 = vadd.f32 %v1023_v5, %v1022_v3 }
  0xfc   : > { %v1026_v9 = vadd.f32 %v1025_v8, %v1024_v6 }
  0xfe   : > { %v1028_v11 = vadd.f32 %v1027_v10, %v1026_v9 }
 0x100   : > { %v1030_v13 = vadd.f32 %v1029_v12, %v1028_v11 }
 0x102   : > { %v1031_v14 = vrot.slane %v1030_v13, 4 }
 0x104   : > { %v1032_v15 = vadd.f32 %v1031_v14, %v1030_v13 }
 0x106   : > { %v1033_v16 = vrot.slane %v1032_v15, 2 }
 0x108   : > { %v1034_v17 = vadd.f32 %v1033_v16, %v1032_v15 }
 0x10a   : > { %v1035_v18 = vrot.slane %v1034_v17, 1 }
 0x10c   : > { %v1036_v19 = vadd.f32 %v1035_v18, %v1034_v17 }
 0x10e   : > { %v1037_v20 = vmul.f32 %v1036_v19, %v5450_v42 }
 0x110   : > { %4281 = vmatmul.msk.f32.vlgmr.msra.gmra.mxu1 %vm938_vm0, %v1037_v20 }
 0x18d   : > { %v1058_v25 = vpop.f32.mrf.mxu1 }
 0x18e   : > { %v1059_v26 = vadd.f32 1e-06, %v1058_v25 }
 0x190   : > { %4897 = vrsqrt.f32 %v1059_v26  ;;  %vm1067_vm3 = vweird.f32 %v1059_v26 }
 0x196   : > { %v4898_v27 = vpop.eup %4897 }
 0x197   : > { %v1062_v28 = vmul.f32 %v4898_v27, %v1059_v26  ;;  %vm1068_vm2 = vweird.f32 %v4898_v27 }
 0x198   : > { %vm1069_vm4 = vmor %vm1067_vm3, %vm1068_vm2 }
 0x199   : > { %v1063_v29 = vmul.f32 %v4898_v27, %v1062_v28 }
 0x19b   : > { %v1064_v30 = vmul.f32 0.5, %v1063_v29 }
 0x19d   : > { %v1065_v31 = vsub.f32 1.5, %v1064_v30 }
 0x19f   : > { %v1066_v32 = vmul.f32 %v4898_v27, %v1065_v31 }
 0x1a1   : > { %v1070_v33 = vsel %vm1069_vm4, %v4898_v27, %v1066_v32 }
 0x1a2   : > { %v1071_v34 = vperm.slane %v1070_v33, 0 }
 0x1a4   : > { %v1072_v36 = vmul.f32 %v1071_v34, %v5454_v47  ;;  %v1073_v37 = vmul.f32 %v1071_v34, %v5456_v48  ;;  %v1076_v39 = vmul.f32 %v1071_v34, %v5462_v51  ;;  %v1077_v40 = vmul.f32 %v1071_v34, %v1005_v55 }
 0x1a5   : > { %v1074_v47 = vmul.f32 %v1071_v34, %v5458_v49  ;;  %v1075_v48 = vmul.f32 %v1071_v34, %v5460_v50  ;;  %v1078_v51 = vmul.f32 %v1071_v34, %v5474_v60  ;;  %v1079_v55 = vmul.f32 %v1071_v34, %v5479_v0  ;;  %v4884_v49 = vld [vmem:[%s5246_s25] ss:$0 sm:$0xff] }
 0x1a6   : > { %v1084_v41 = vmul.f32 %v4882_v35, %v1072_v36  ;;  %v1085_v43 = vmul.f32 %v4882_v35, %v1073_v37  ;;  %v1088_v44 = vmul.f32 %v4882_v35, %v1076_v39  ;;  %v1089_v45 = vmul.f32 %v4882_v35, %v1077_v40 }
 0x1a7   : > { %v1086_v58 = vmul.f32 %v4882_v35, %v1074_v47  ;;  %v1087_v59 = vmul.f32 %v4882_v35, %v1075_v48  ;;  %v1090_v61 = vmul.f32 %v4882_v35, %v1078_v51  ;;  %v1091_v62 = vmul.f32 %v4882_v35, %v1079_v55 }
 0x1a8   : > { %v1096_v46 = vadd.f32 %v4883_v38, %v1084_v41  ;;  %v1097_v52 = vadd.f32 %v4883_v38, %v1085_v43  ;;  %v1100_v53 = vadd.f32 %v4883_v38, %v1088_v44  ;;  %v1101_v54 = vadd.f32 %v4883_v38, %v1089_v45 }
 0x1a9   : > { %v1098_v63 = vadd.f32 %v4883_v38, %v1086_v58  ;;  %v1099_v1 = vadd.f32 %v4883_v38, %v1087_v59  ;;  %v1102_v2 = vadd.f32 %v4883_v38, %v1090_v61  ;;  %v1103_v3 = vadd.f32 %v4883_v38, %v1091_v62 }
 0x1aa   : > { %v1104_v56 = vpack.c.bf16 %v1097_v52, %v1096_v46  ;;  %v1106_v57 = vpack.c.bf16 %v1101_v54, %v1100_v53 }
 0x1ab   : > { %v1105_v4 = vpack.c.bf16 %v1099_v1, %v1098_v63  ;;  %v1107_v5 = vpack.c.bf16 %v1103_v3, %v1102_v2  ;;  %v4735_v3 = vld [vmem:[%s6737_s8 + $0x18] sm:$0xff] }
 0x1ac   : > { %4298 = vmatmul.msk.bf16.vlgmr.msrb.gmra.mxu0 %vm938_vm0, %v1104_v56  ;;  %4300 = vmatmul.msk.bf16.vlgmr.msra.gmra.mxu2 %vm938_vm0, %v1106_v57 }
 0x1ad   : > { %1437 = vmatpush.bf16.msrb.mxu1 %v4735_v3  ;;  %4805 = vmatpush.bf16.msra.mxu3 %v4735_v3 }
 0x1bc   : > { %4299 = vmatmul.msk.bf16.gmra.mxu0 %vm938_vm0, %v1105_v4  ;;  %4301 = vmatmul.msk.bf16.gmra.mxu2 %vm938_vm0, %v1107_v5  ;;  %v4739_v4 = vld [vmem:[%s5266_s14 + $0x18] sm:$0xff]  ;;  %v4734_v5 = vld [vmem:[%s6737_s8 + $0x10] sm:$0xff] }
 0x1bd   : > { %1498 = vmatpush.bf16.msra.mxu0 %v4739_v4  ;;  %1438 = vmatpush.bf16.msrb.mxu1 %v4734_v5  ;;  %v5621_v4 = vld [vmem:[%s5251_s29] ss:$0 sm:$0xff] }
 0x1be   : > { %4806 = vmatpush.bf16.msra.mxu3 %v4734_v5 }
 0x229   : > { %v1165_v50 = vpop.f32.mrf.mxu0 }
 0x22a   : > { %v5510_v6 = vadd.f32 %v4884_v49, %v1165_v50 }
 0x22c   : > { %v1185_v60 = vsel %vm938_vm0, %v5510_v6, 0.0 }
 0x22d   : > { %1186 = vadd.xlane.f32.xlu0 %v1185_v60  ;;  %v4733_v60 = vld [vmem:[%s6737_s8 + $0x8] sm:$0xff] }
 0x22e   : > { %1439 = vmatpush.bf16.msrb.mxu1 %v4733_v60  ;;  %4807 = vmatpush.bf16.msra.mxu3 %v4733_v60 }
 0x22f   : > { %v1175_v0 = vpop.f32.mrf.mxu2 }
 0x230   : > { %v5514_v7 = vadd.f32 %v4884_v49, %v1175_v0  ;;  %v4737_v0 = vld [vmem:[%s5266_s14 + $0x8] sm:$0xff] }
 0x231   : > { %v1167_v8 = vpop.f32.mrf.mxu0 }
 0x232   : > { %v5516_v9 = vadd.f32 %v4884_v49, %v1167_v8  ;;  %v1197_v10 = vsel %vm938_vm0, %v5514_v7, 0.0 }
 0x233   : > { %1198 = vadd.xlane.f32.xlu2 %v1197_v10 }
 0x234   : > { %v1188_v11 = vsel %vm938_vm0, %v5516_v9, 0.0 }
 0x235   : > { %1189 = vadd.xlane.f32.xlu0 %v1188_v11  ;;  %v4732_v11 = vld [vmem:[%s6737_s8] sm:$0xff]  ;;  %s6759_s8 = sand.u32 1, %s5169_s16  }
 0x236   : > { %1440 = vmatpush.bf16.msrb.mxu1 %v4732_v11  ;;  %4808 = vmatpush.bf16.msra.mxu3 %v4732_v11 }
 0x237   : > { %v1177_v12 = vpop.f32.mrf.mxu2 }
 0x238   : > { %v5522_v13 = vadd.f32 %v4884_v49, %v1177_v12  ;;  %v4736_v12 = vld [vmem:[%s5266_s14] sm:$0xff] }
 0x239   : > { %v1170_v14 = vpop.f32.mrf.mxu0 }
 0x23a   : > { %v5524_v15 = vadd.f32 %v4884_v49, %v1170_v14  ;;  %v1200_v16 = vsel %vm938_vm0, %v5522_v13, 0.0 }
 0x23b   : > { %1201 = vadd.xlane.f32.xlu2 %v1200_v16 }
 0x23c   : > { %v1191_v17 = vsel %vm938_vm0, %v5524_v15, 0.0 }
 0x23d   : > { %1192 = vadd.xlane.f32.xlu1 %v1191_v17  ;;  %v4743_v17 = vld [vmem:[%s5271_s19 + $0x18] sm:$0xff] }
 0x23e   : > { %1559 = vmatpush.bf16.msra.mxu1 %v4743_v17 }
 0x23f   : > { %v1180_v18 = vpop.f32.mrf.mxu2 }
 0x240   : > { %v5530_v19 = vadd.f32 %v4884_v49, %v1180_v18 }
 0x241   : > { %v1172_v20 = vpop.f32.mrf.mxu0 }
 0x242   : > { %v5532_v21 = vadd.f32 %v4884_v49, %v1172_v20  ;;  %v1203_v22 = vsel %vm938_vm0, %v5530_v19, 0.0 }
 0x243   : > { %1204 = vadd.xlane.f32.xlu2 %v1203_v22 }
 0x244   : > { %v1194_v23 = vsel %vm938_vm0, %v5532_v21, 0.0 }
 0x245   : > { %1195 = vadd.xlane.f32.xlu1 %v1194_v23 }
 0x247   : > { %v1182_v30 = vpop.f32.mrf.mxu2 }
 0x248   : > { %v5546_v33 = vadd.f32 %v4884_v49, %v1182_v30  ;;  %v4738_v49 = vld [vmem:[%s5266_s14 + $0x10] sm:$0xff] }
 0x249   : > { %1499 = vmatpush.bf16.msra.mxu0 %v4738_v49 }
 0x24a   : > { %v1206_v39 = vsel %vm938_vm0, %v5546_v33, 0.0 }
 0x24d   : > { %1500 = vmatpush.bf16.msra.mxu0 %v4737_v0 }
 0x251   : > { %1501 = vmatpush.bf16.msra.mxu0 %v4736_v12 }
 0x2a0   : > { %v1187_v24 = vpop.xlane.xlu0 %1186 }
 0x2a1   : > { %v1209_v25 = vmul.f32 %v1187_v24, %v5450_v42 }
 0x2a3   : > { %v5540_v26 = vsub.f32 %v5510_v6, %v1209_v25 }
 0x2a5   : > { %v1225_v27 = vmul.f32 %v5540_v26, %v5540_v26 }
 0x2a6   : > { %v1199_v28 = vpop.xlane.xlu2 %1198 }
 0x2a7   : > { %v1233_v29 = vsel %vm938_vm0, %v1225_v27, 0.0  ;;  %v1213_v34 = vmul.f32 %v1199_v28, %v5450_v42  ;;  %v4742_v27 = vld [vmem:[%s5271_s19 + $0x10] sm:$0xff] }
 0x2a8   : > { %1234 = vadd.xlane.f32.xlu0 %v1233_v29  ;;  %v1190_v31 = vpop.xlane.xlu0 %1189  ;;  %1560 = vmatpush.bf16.msra.mxu1 %v4742_v27 }
 0x2a9   : > { %v1210_v32 = vmul.f32 %v1190_v31, %v5450_v42  ;;  %v5555_v38 = vsub.f32 %v5514_v7, %v1213_v34 }
 0x2ab   : > { %v5550_v35 = vsub.f32 %v5516_v9, %v1210_v32  ;;  %v1229_v46 = vmul.f32 %v5555_v38, %v5555_v38 }
 0x2ad   : > { %v1226_v36 = vmul.f32 %v5550_v35, %v5550_v35  ;;  %v1245_v54 = vsel %vm938_vm0, %v1229_v46, 0.0 }
 0x2ae   : > { %v1202_v37 = vpop.xlane.xlu2 %1201 }
 0x2af   : > { %v1236_v40 = vsel %vm938_vm0, %v1226_v36, 0.0  ;;  %v1214_v44 = vmul.f32 %v1202_v37, %v5450_v42  ;;  %v4741_v36 = vld [vmem:[%s5271_s19 + $0x8] sm:$0xff] }
 0x2b0   : > { %v1193_v41 = vpop.xlane.xlu1 %1192  ;;  %1207 = vadd.xlane.f32.xlu0 %v1206_v39  ;;  %1237 = vadd.xlane.f32.xlu1 %v1236_v40 }
 0x2b1   : > { %v1211_v43 = vmul.f32 %v1193_v41, %v5450_v42  ;;  %v5570_v53 = vsub.f32 %v5522_v13, %v1214_v44  ;;  %1561 = vmatpush.bf16.msra.mxu1 %v4741_v36 }
 0x2b3   : > { %v5563_v45 = vsub.f32 %v5524_v15, %v1211_v43  ;;  %v1230_v58 = vmul.f32 %v5570_v53, %v5570_v53 }
 0x2b5   : > { %v1227_v52 = vmul.f32 %v5563_v45, %v5563_v45  ;;  %v1248_v63 = vsel %vm938_vm0, %v1230_v58, 0.0 }
 0x2b6   : > { %v1205_v57 = vpop.xlane.xlu2 %1204 }
 0x2b7   : > { %v1239_v56 = vsel %vm938_vm0, %v1227_v52, 0.0  ;;  %v1215_v51 = vmul.f32 %v1205_v57, %v5450_v42  ;;  %v4740_v52 = vld [vmem:[%s5271_s19] sm:$0xff] }
 0x2b8   : > { %v1196_v47 = vpop.xlane.xlu1 %1195  ;;  %1246 = vadd.xlane.f32.xlu0 %v1245_v54  ;;  %1240 = vadd.xlane.f32.xlu1 %v1239_v56 }
 0x2b9   : > { %v1212_v48 = vmul.f32 %v1196_v47, %v5450_v42  ;;  %v5584_v61 = vsub.f32 %v5530_v19, %v1215_v51  ;;  %1562 = vmatpush.bf16.msra.mxu1 %v4740_v52 }
 0x2bb   : > { %v5577_v55 = vsub.f32 %v5532_v21, %v1212_v48  ;;  %v1231_v1 = vmul.f32 %v5584_v61, %v5584_v61 }
 0x2bd   : > { %v1228_v59 = vmul.f32 %v5577_v55, %v5577_v55  ;;  %v1251_v2 = vsel %vm938_vm0, %v1231_v1, 0.0 }
 0x2bf   : > { %v1242_v62 = vsel %vm938_vm0, %v1228_v59, 0.0 }
 0x2c0   : > { %1243 = vadd.xlane.f32.xlu2 %v1242_v62  ;;  %1249 = vadd.xlane.f32.xlu1 %v1248_v63 }
 0x2c8   : > { %1252 = vadd.xlane.f32.xlu2 %v1251_v2 }
 0x31b   : > { %v1235_v50 = vpop.xlane.xlu0 %1234 }
 0x31c   : > { %v1257_v8 = vmul.f32 %v1235_v50, %v5450_v42 }
 0x31e   : > { %v1265_v10 = vadd.f32 1e-05, %v1257_v8 }
 0x320   : > { %4899 = vrsqrt.f32 %v1265_v10  ;;  %vm1279_vm6 = vweird.f32 %v1265_v10 }
 0x323   : > { %v1238_v14 = vpop.xlane.xlu1 %1237  ;;  %v1208_v16 = vpop.xlane.xlu0 %1207 }
 0x324   : > { %v1258_v18 = vmul.f32 %v1238_v14, %v5450_v42  ;;  %v1216_v20 = vmul.f32 %v1208_v16, %v5450_v42 }
 0x326   : > { %v4900_v22 = vpop.eup %4899  ;;  %v1266_v23 = vadd.f32 1e-05, %v1258_v18  ;;  %v5604_v24 = vsub.f32 %v5546_v33, %v1216_v20 }
 0x327   : > { %v1274_v25 = vmul.f32 %v4900_v22, %v1265_v10  ;;  %vm1280_vm5 = vweird.f32 %v4900_v22  ;;  %v5626_v10 = vld [vmem:[%s6742_s3] ss:$0 sm:$0xff]  ;;  %s6746_s3 = sld [smem:[#allocation10_spill]] }
 0x328   : > { %4901 = vrsqrt.f32 %v1266_v23  ;;  %v1232_v28 = vmul.f32 %v5604_v24, %v5604_v24  ;;  %vm1281_vm7 = vmor %vm1279_vm6, %vm1280_vm5  ;;  %vm1289_vm9 = vweird.f32 %v1266_v23 }
 0x329   : > { %v1275_v29 = vmul.f32 %v4900_v22, %v1274_v25 }
 0x32a   : > { %v1254_v30 = vsel %vm938_vm0, %v1232_v28, 0.0 }
 0x32b   : > { %v1276_v31 = vmul.f32 0.5, %v1275_v29  ;;  %v1241_v32 = vpop.xlane.xlu1 %1240  ;;  %1255 = vadd.xlane.f32.xlu0 %v1254_v30  ;;  %v1247_v34 = vpop.xlane.xlu0 %1246 }
 0x32c   : > { %v1259_v37 = vmul.f32 %v1241_v32, %v5450_v42  ;;  %v1261_v43 = vmul.f32 %v1247_v34, %v5450_v42 }
 0x32d   : > { %v1277_v39 = vsub.f32 1.5, %v1276_v31 }
 0x32e   : > { %v4902_v40 = vpop.eup %4901  ;;  %v1267_v41 = vadd.f32 1e-05, %v1259_v37  ;;  %v5614_v56 = vadd.f32 1e-05, %v1261_v43 }
 0x32f   : > { %v1278_v44 = vmul.f32 %v4900_v22, %v1277_v39  ;;  %v1284_v46 = vmul.f32 %v4902_v40, %v1266_v23  ;;  %vm1290_vm8 = vweird.f32 %v4902_v40 }
 0x330   : > { %4903 = vrsqrt.f32 %v1267_v41  ;;  %vm1291_vm10 = vmor %vm1289_vm9, %vm1290_vm8  ;;  %vm1299_vm12 = vweird.f32 %v1267_v41  ;;  %vm1319_vm6 = vweird.f32 %v5614_v56 }
 0x331   : > { %v1285_v54 = vmul.f32 %v4902_v40, %v1284_v46  ;;  %v1282_v57 = vsel %vm1281_vm7, %v4900_v22, %v1278_v44  ;;  %4905 = vrsqrt.f32 %v5614_v56 }
 0x332   : > { %v1353_v1 = vmul.f32 %v1282_v57, %v5540_v26 }
 0x333   : > { %v1286_v47 = vmul.f32 0.5, %v1285_v54  ;;  %v1244_v48 = vpop.xlane.xlu2 %1243  ;;  %v1250_v51 = vpop.xlane.xlu1 %1249 }
 0x334   : > { %v1260_v58 = vmul.f32 %v1244_v48, %v5450_v42  ;;  %v1262_v59 = vmul.f32 %v1250_v51, %v5450_v42  ;;  %v1365_v8 = vmul.f32 %v5621_v4, %v1353_v1 }
 0x335   : > { %v1287_v62 = vsub.f32 1.5, %v1286_v47 }
 0x336   : > { %v4904_v63 = vpop.eup %4903  ;;  %v1268_v2 = vadd.f32 1e-05, %v1260_v58  ;;  %v1270_v3 = vadd.f32 1e-05, %v1262_v59  ;;  %v1377_v17 = vadd.f32 %v5626_v10, %v1365_v8 }
 0x337   : > { %v1288_v5 = vmul.f32 %v4902_v40, %v1287_v62  ;;  %v1294_v49 = vmul.f32 %v4904_v63, %v1267_v41  ;;  %v4906_v11 = vpop.eup %4905  ;;  %vm1300_vm11 = vweird.f32 %v4904_v63 }
 0x338   : > { %4907 = vrsqrt.f32 %v1268_v2  ;;  %v1314_v23 = vmul.f32 %v4906_v11, %v5614_v56  ;;  %vm1301_vm13 = vmor %vm1299_vm12, %vm1300_vm11  ;;  %vm1309_vm15 = vweird.f32 %v1268_v2  ;;  %vm1320_vm3 = vweird.f32 %v4906_v11 }
 0x339   : > { %v1292_v50 = vsel %vm1291_vm10, %v4902_v40, %v1288_v5  ;;  %v1295_v60 = vmul.f32 %v4904_v63, %v1294_v49  ;;  %4909 = vrsqrt.f32 %v1270_v3  ;;  %vm1329_vm4 = vweird.f32 %v1270_v3  ;;  %vm1321_vm7 = vmor %vm1319_vm6, %vm1320_vm3 }
 0x33a   : > { %v1354_v0 = vmul.f32 %v1292_v50, %v5550_v35  ;;  %v1315_v31 = vmul.f32 %v4906_v11, %v1314_v23 }
 0x33b   : > { %v1296_v26 = vmul.f32 0.5, %v1295_v60 }
 0x33c   : > { %v1366_v12 = vmul.f32 %v5621_v4, %v1354_v0  ;;  %v1316_v39 = vmul.f32 0.5, %v1315_v31 }
 0x33d   : > { %v1297_v14 = vsub.f32 1.5, %v1296_v26 }
 0x33e   : > { %v4908_v16 = vpop.eup %4907  ;;  %v1378_v18 = vadd.f32 %v5626_v10, %v1366_v12  ;;  %v1317_v52 = vsub.f32 1.5, %v1316_v39 }
 0x33f   : > { %v4910_v20 = vpop.eup %4909  ;;  %v1298_v22 = vmul.f32 %v4904_v63, %v1297_v14  ;;  %v1304_v35 = vmul.f32 %v4908_v16, %v1268_v2  ;;  %vm1310_vm14 = vweird.f32 %v4908_v16 }
 0x340   : > { %v1324_v25 = vmul.f32 %v4910_v20, %v1270_v3  ;;  %v1385_v28 = vpack.c.bf16 %v1378_v18, %v1377_v17  ;;  %vm1311_vm1 = vmor %vm1309_vm15, %vm1310_vm14  ;;  %vm1330_vm2 = vweird.f32 %v4910_v20  ;;  %vm1584_vm14 = vcmask 261120  }
 0x341   : > { %v1305_v27 = vmul.f32 %v4908_v16, %v1304_v35  ;;  %v1302_v30 = vsel %vm1301_vm13, %v4904_v63, %v1298_v22  ;;  %vm1331_vm5 = vmor %vm1329_vm4, %vm1330_vm2 }
 0x342   : > { %v1325_v29 = vmul.f32 %v4910_v20, %v1324_v25  ;;  %4318 = vmatmul.msk.bf16.vlgmr.msrb.gmra.mxu1 %vm938_vm0, %v1385_v28  ;;  %4338 = vmatmul.msk.bf16.vlgmr.msra.gmra.mxu0 %vm938_vm0, %v1385_v28  ;;  %v1355_v37 = vmul.f32 %v1302_v30, %v5563_v45  ;;  %v1318_v45 = vmul.f32 %v4906_v11, %v1317_v52 }
 0x343   : > { %v1306_v32 = vmul.f32 0.5, %v1305_v27 }
 0x344   : > { %v1326_v36 = vmul.f32 0.5, %v1325_v29  ;;  %v1367_v46 = vmul.f32 %v5621_v4, %v1355_v37 }
 0x345   : > { %v1307_v34 = vsub.f32 1.5, %v1306_v32 }
 0x346   : > { %v1327_v43 = vsub.f32 1.5, %v1326_v36  ;;  %v1379_v47 = vadd.f32 %v5626_v10, %v1367_v46 }
 0x347   : > { %v1308_v40 = vmul.f32 %v4908_v16, %v1307_v34 }
 0x348   : > { %v1328_v57 = vmul.f32 %v4910_v20, %v1327_v43 }
 0x349   : > { %v1312_v41 = vsel %vm1311_vm1, %v4908_v16, %v1308_v40 }
 0x34a   : > { %v1356_v44 = vmul.f32 %v1312_v41, %v5577_v55  ;;  %v1332_v58 = vsel %vm1331_vm5, %v4910_v20, %v1328_v57  ;;  %v1322_v55 = vsel %vm1321_vm7, %v4906_v11, %v1318_v45 }
 0x34b   : > { %v1358_v59 = vmul.f32 %v1332_v58, %v5570_v53  ;;  %v1357_v62 = vmul.f32 %v1322_v55, %v5555_v38  ;;  %v1253_v53 = vpop.xlane.xlu2 %1252 }
 0x34c   : > { %v1368_v54 = vmul.f32 %v5621_v4, %v1356_v44  ;;  %v1263_v38 = vmul.f32 %v1253_v53, %v5450_v42 }
 0x34d   : > { %v1370_v63 = vmul.f32 %v5621_v4, %v1358_v59  ;;  %v1369_v1 = vmul.f32 %v5621_v4, %v1357_v62 }
 0x34e   : > { %v1380_v48 = vadd.f32 %v5626_v10, %v1368_v54  ;;  %v1271_v5 = vadd.f32 1e-05, %v1263_v38 }
 0x34f   : > { %v1382_v2 = vadd.f32 %v5626_v10, %v1370_v63  ;;  %v1381_v56 = vadd.f32 %v5626_v10, %v1369_v1 }
 0x350   : > { %v1386_v51 = vpack.c.bf16 %v1380_v48, %v1379_v47  ;;  %4911 = vrsqrt.f32 %v1271_v5  ;;  %vm1339_vm9 = vweird.f32 %v1271_v5 }
 0x351   : > { %v1387_v3 = vpack.c.bf16 %v1382_v2, %v1381_v56 }
 0x352   : > { %4319 = vmatmul.msk.bf16.vlgmr.msra.gmra.mxu3 %vm938_vm0, %v1386_v51  ;;  %4339 = vmatmul.msk.bf16.gmra.mxu0 %vm938_vm0, %v1386_v51 }
 0x353   : > { %4358 = vmatmul.msk.bf16.vlgmr.msra.gmra.mxu1 %vm938_vm0, %v1385_v28 }
 0x356   : > { %v4912_v49 = vpop.eup %4911 }
 0x357   : > { %v1334_v50 = vmul.f32 %v4912_v49, %v1271_v5  ;;  %vm1340_vm8 = vweird.f32 %v4912_v49 }
 0x358   : > { %vm1341_vm10 = vmor %vm1339_vm9, %vm1340_vm8 }
 0x359   : > { %v1335_v60 = vmul.f32 %v4912_v49, %v1334_v50 }
 0x35b   : > { %v1336_v11 = vmul.f32 0.5, %v1335_v60 }
 0x35d   : > { %v1337_v12 = vsub.f32 1.5, %v1336_v11 }
 0x35f   : > { %v1338_v16 = vmul.f32 %v4912_v49, %v1337_v12 }
 0x361   : > { %v1342_v20 = vsel %vm1341_vm10, %v4912_v49, %v1338_v16 }
 0x362   : > { %4320 = vmatmul.msk.bf16.gmra.mxu3 %vm938_vm0, %v1387_v3  ;;  %4340 = vmatmul.msk.bf16.gmra.mxu0 %vm938_vm0, %v1387_v3  ;;  %v1359_v35 = vmul.f32 %v1342_v20, %v5584_v61 }
 0x363   : > { %4359 = vmatmul.msk.bf16.gmra.mxu1 %vm938_vm0, %v1386_v51 }
 0x364   : > { %v1371_v29 = vmul.f32 %v5621_v4, %v1359_v35 }
 0x366   : > { %v1383_v31 = vadd.f32 %v5626_v10, %v1371_v29 }
 0x373   : > { %4360 = vmatmul.msk.bf16.gmra.mxu1 %vm938_vm0, %v1387_v3 }
 0x39e   : > { %v1256_v0 = vpop.xlane.xlu0 %1255 }
 0x39f   : > { %v1264_v8 = vmul.f32 %v1256_v0, %v5450_v42 }
 0x3a1   : > { %v1272_v26 = vadd.f32 1e-05, %v1264_v8 }
 0x3a3   : > { %4913 = vrsqrt.f32 %v1272_v26  ;;  %vm1349_vm12 = vweird.f32 %v1272_v26 }
 0x3a9   : > { %v4914_v14 = vpop.eup %4913 }
 0x3aa   : > { %v1344_v17 = vmul.f32 %v4914_v14, %v1272_v26  ;;  %vm1350_vm11 = vweird.f32 %v4914_v14 }
 0x3ab   : > { %vm1351_vm13 = vmor %vm1349_vm12, %vm1350_vm11 }
 0x3ac   : > { %v1345_v18 = vmul.f32 %v4914_v14, %v1344_v17 }
 0x3ae   : > { %v1346_v22 = vmul.f32 0.5, %v1345_v18 }
 0x3b0   : > { %v1347_v23 = vsub.f32 1.5, %v1346_v22 }
 0x3b2   : > { %v1348_v25 = vmul.f32 %v4914_v14, %v1347_v23 }
 0x3b4   : > { %v1352_v27 = vsel %vm1351_vm13, %v4914_v14, %v1348_v25 }
 0x3b5   : > { %v1360_v28 = vmul.f32 %v1352_v27, %v5604_v24 }
 0x3b7   : > { %v1372_v30 = vmul.f32 %v5621_v4, %v1360_v28 }
 0x3b9   : > { %v1384_v32 = vadd.f32 %v5626_v10, %v1372_v30 }
 0x3bb   : > { %v1388_v34 = vpack.c.bf16 %v1384_v32, %v1383_v31 }
 0x3bd   : > { %4321 = vmatmul.msk.bf16.gmra.mxu3 %vm938_vm0, %v1388_v34  ;;  %4341 = vmatmul.msk.bf16.gmra.mxu0 %vm938_vm0, %v1388_v34 }
 0x3be   : > { %4361 = vmatmul.msk.bf16.gmra.mxu1 %vm938_vm0, %v1388_v34 }
 0x3bf   : > { %v1503_v61 = vpop.f32.mrf.mxu0  ;;  %v1442_v4 = vpop.f32.mrf.mxu1 }
 0x3c7   : > { %v1505_v36 = vpop.f32.mrf.mxu0  ;;  %v1444_v41 = vpop.f32.mrf.mxu1 }
 0x3cf   : > { %v1508_v37 = vpop.f32.mrf.mxu0 }
 0x3d0   : > { %v1564_v44 = vpop.f32.mrf.mxu1 }
 0x3d5   : > { %v1447_v10 = vpop.f32.mrf.mxu3 }
 0x3d7   : > { %v1510_v39 = vpop.f32.mrf.mxu0 }
 0x3d8   : > { %v1566_v46 = vpop.f32.mrf.mxu1 }
 0x3d9   : > { %v5685_v56 = vpack.c.bf16 %v1566_v46, %v1564_v44 }
 0x3dd   : > { %v1449_v43 = vpop.f32.mrf.mxu3 }
 0x3df   : > { %v1513_v24 = vpop.f32.mrf.mxu0 }
 0x3e0   : > { %v1569_v52 = vpop.f32.mrf.mxu1 }
 0x3e5   : > { %v1452_v47 = vpop.f32.mrf.mxu3 }
 0x3e7   : > { %v1515_v40 = vpop.f32.mrf.mxu0 }
 0x3e8   : > { %1853 = vrot.lane.b32.xlu0 %v1515_v40, %s6709_s1  ;;  %v1571_v54 = vpop.f32.mrf.mxu1 }
 0x3e9   : > { %v5681_v2 = vpack.c.bf16 %v1571_v54, %v1569_v52 }
 0x3ed   : > { %v1454_v45 = vpop.f32.mrf.mxu3 }
 0x3f0   : > { %1847 = vrot.lane.b32.xlu0 %v1508_v37, %s6709_s1  ;;  %v1574_v57 = vpop.f32.mrf.mxu1 }
 0x3f8   : > { %1827 = vrot.lane.b32.xlu0 %v1442_v4, %s6709_s1  ;;  %v1576_v48 = vpop.f32.mrf.mxu1 }
 0x3f9   : > { %v5675_v1 = vpack.c.bf16 %v1576_v48, %v1574_v57 }
 0x400   : > { %1833 = vrot.lane.b32.xlu0 %v1449_v43, %s6709_s1 }
 0x43a   : > { %v1518_v51 = vpop.f32.mrf.mxu0 }
 0x43b   : > { %v1579_v58 = vpop.f32.mrf.mxu1  ;;  %1855 = vrot.lane.b32.xlu2 %v1518_v51, %s6709_s1 }
 0x440   : > { %v1457_v55 = vpop.f32.mrf.mxu3 }
 0x441   : > { %1839 = vrot.lane.b32.xlu0 %v1457_v55, %s6709_s1 }
 0x442   : > { %v1520_v59 = vpop.f32.mrf.mxu0 }
 0x443   : > { %v1581_v62 = vpop.f32.mrf.mxu1  ;;  %1851 = vrot.lane.b32.xlu2 %v1513_v24, %s6709_s1  ;;  %1857 = vrot.lane.b32.xlu1 %v1520_v59, %s6709_s1 }
 0x444   : > { %4362 = vmatpush.xpose.msk.msrb.mxu2 %vm1584_vm14, %v1520_v59  ;;  %v1777_v63 = vpack.c.bf16 %v1581_v62, %v1579_v58 }
 0x446   : > { %1794 = vmatpush.bf16.msrb.mxu3 %v1777_v63 }
 0x448   : > { %4363 = vmatpush.xpose.msk.msrb.mxu2 %vm1584_vm14, %v1518_v51  ;;  %v1459_v3 = vpop.f32.mrf.mxu3 }
 0x44a   : > { %1795 = vmatpush.bf16.msrb.mxu3 %v5675_v1 }
 0x44b   : > { %1845 = vrot.lane.b32.xlu2 %v1505_v36, %s6709_s1  ;;  %1849 = vrot.lane.b32.xlu1 %v1510_v39, %s6709_s1 }
 0x44c   : > { %4364 = vmatpush.xpose.msk.msrb.mxu2 %vm1584_vm14, %v1515_v40 }
 0x44e   : > { %1796 = vmatpush.bf16.msrb.mxu3 %v5681_v2 }
 0x450   : > { %4365 = vmatpush.xpose.msk.msrb.mxu2 %vm1584_vm14, %v1513_v24 }
 0x452   : > { %1797 = vmatpush.bf16.msrb.mxu3 %v5685_v56 }
 0x453   : > { %1829 = vrot.lane.b32.xlu2 %v1444_v41, %s6709_s1  ;;  %1843 = vrot.lane.b32.xlu1 %v1503_v61, %s6709_s1 }
 0x454   : > { %4366 = vmatpush.xpose.msk.msrb.mxu2 %vm1584_vm14, %v1510_v39 }
 0x458   : > { %4367 = vmatpush.xpose.msk.msrb.mxu2 %vm1584_vm14, %v1508_v37 }
 0x45a   : > { %v1854_v5 = vpop.permute.xlu0 %1853 }
 0x45b   : > { %1835 = vrot.lane.b32.xlu2 %v1452_v47, %s6709_s1  ;;  %1831 = vrot.lane.b32.xlu1 %v1447_v10, %s6709_s1 }
 0x45c   : > { %4368 = vmatpush.xpose.msk.msrb.mxu2 %vm1584_vm14, %v1505_v36 }
 0x460   : > { %4369 = vmatpush.xpose.msk.msrb.mxu2 %vm1584_vm14, %v1503_v61 }
 0x462   : > { %v1848_v0 = vpop.permute.xlu0 %1847 }
 0x463   : > { %4370 = vmatmul.msk.f32.vlgmr.msrb.gmra.mxu2 %vm1584_vm14, %v1442_v4  ;;  %1837 = vrot.lane.b32.xlu1 %v1454_v45, %s6709_s1 }
 0x464   : > { %1841 = vrot.lane.b32.xlu2 %v1459_v3, %s6709_s1 }
 0x46a   : > { %v1828_v11 = vpop.permute.xlu0 %1827 }
 0x46b   : > { %4371 = vmatmul.msk.f32.gmra.mxu2 %vm1584_vm14, %v1444_v41  ;;  %2042 = vrot.lane.b32.xlu1 %v1777_v63, %s6709_s1 }
 0x472   : > { %v1834_v22 = vpop.permute.xlu0 %1833 }
 0x473   : > { %4372 = vmatmul.msk.f32.gmra.mxu2 %vm1584_vm14, %v1447_v10 }
 0x47b   : > { %4373 = vmatmul.msk.f32.gmra.mxu2 %vm1584_vm14, %v1449_v43 }
 0x483   : > { %4374 = vmatmul.msk.f32.gmra.mxu2 %vm1584_vm14, %v1452_v47 }
 0x48b   : > { %4375 = vmatmul.msk.f32.gmra.mxu2 %vm1584_vm14, %v1454_v45 }
 0x493   : > { %4376 = vmatmul.msk.f32.gmra.mxu2 %vm1584_vm14, %v1457_v55 }
 0x495   : > { %v1856_v38 = vpop.permute.xlu2 %1855 }
 0x49b   : > { %4377 = vmatmul.msk.f32.gmra.mxu2 %vm1584_vm14, %v1459_v3 }
 0x49d   : > { %v1852_v50 = vpop.permute.xlu2 %1851 }
 0x4a5   : > { %v1846_v8 = vpop.permute.xlu2 %1845 }
 0x4ad   : > { %v1830_v14 = vpop.permute.xlu2 %1829 }
 0x4b3   : > { %v1840_v61 = vpop.permute.xlu0 %1839 }
 0x4b5   : > { %v1858_v53 = vpop.permute.xlu1 %1857  ;;  %v1836_v27 = vpop.permute.xlu2 %1835 }
 0x4b6   : > { %4382 = vmatpush.xpose.msk.msrb.mxu0 %vm1584_vm14, %v1858_v53 }
 0x4ba   : > { %4383 = vmatpush.xpose.msk.msrb.mxu0 %vm1584_vm14, %v1856_v38 }
 0x4bd   : > { %v1850_v49 = vpop.permute.xlu1 %1849 }
 0x4be   : > { %4384 = vmatpush.xpose.msk.msrb.mxu0 %vm1584_vm14, %v1854_v5  ;;  %v1842_v24 = vpop.permute.xlu2 %1841 }
 0x4c2   : > { %4385 = vmatpush.xpose.msk.msrb.mxu0 %vm1584_vm14, %v1852_v50 }
 0x4c5   : > { %v1844_v60 = vpop.permute.xlu1 %1843 }
 0x4c6   : > { %4386 = vmatpush.xpose.msk.msrb.mxu0 %vm1584_vm14, %v1850_v49 }
 0x4ca   : > { %4387 = vmatpush.xpose.msk.msrb.mxu0 %vm1584_vm14, %v1848_v0 }
 0x4cd   : > { %v1832_v26 = vpop.permute.xlu1 %1831 }
 0x4ce   : > { %4388 = vmatpush.xpose.msk.msrb.mxu0 %vm1584_vm14, %v1846_v8 }
 0x4d2   : > { %4389 = vmatpush.xpose.msk.msrb.mxu0 %vm1584_vm14, %v1844_v60 }
 0x4d5   : > { %v1838_v12 = vpop.permute.xlu1 %1837  ;;  %4390 = vmatmul.msk.f32.vlgmr.msrb.gmra.mxu0 %vm1584_vm14, %v1828_v11 }
 0x4dd   : > { %v2043_v16 = vpop.permute.xlu1 %2042  ;;  %4391 = vmatmul.msk.f32.gmra.mxu0 %vm1584_vm14, %v1830_v14 }
 0x4de   : > { %2064 = vmatpush.bf16.msrb.mxu1 %v2043_v16 }
 0x4e5   : > { %4392 = vmatmul.msk.f32.gmra.mxu0 %vm1584_vm14, %v1832_v26 }
 0x4e6   : > { %v1650_v17 = vpop.f32.mrf.mxu2 }
 0x4e7   : > { %v1674_v18 = vmul.f32 0.17677669, %v1650_v17 }
 0x4e9   : > { %v1682_v20 = vsel %vm938_vm0, %v1674_v18, -inf }
 0x4ea   : > { %1683 = vmax.xlane.f32.xlu1 %v1682_v20 }
 0x4ed   : > { %4393 = vmatmul.msk.f32.gmra.mxu0 %vm1584_vm14, %v1834_v22 }
 0x4ee   : > { %v1653_v23 = vpop.f32.mrf.mxu2 }
 0x4ef   : > { %v1675_v35 = vmul.f32 0.17677669, %v1653_v23 }
 0x4f1   : > { %v1685_v25 = vsel %vm938_vm0, %v1675_v35, -inf }
 0x4f2   : > { %1686 = vmax.xlane.f32.xlu0 %v1685_v25 }
 0x4f5   : > { %4394 = vmatmul.msk.f32.gmra.mxu0 %vm1584_vm14, %v1836_v27 }
 0x4f6   : > { %v1656_v28 = vpop.f32.mrf.mxu2 }
 0x4f7   : > { %v5722_v29 = vmul.f32 0.17677669, %v1656_v28 }
 0x4f9   : > { %v1688_v30 = vsel %vm938_vm0, %v5722_v29, -inf }
 0x4fa   : > { %1689 = vmax.xlane.f32.xlu0 %v1688_v30 }
 0x4fd   : > { %4395 = vmatmul.msk.f32.gmra.mxu0 %vm1584_vm14, %v1838_v12 }
 0x4fe   : > { %v1659_v31 = vpop.f32.mrf.mxu2 }
 0x4ff   : > { %v5727_v32 = vmul.f32 0.17677669, %v1659_v31 }
 0x501   : > { %v1691_v34 = vsel %vm938_vm0, %v5727_v32, -inf }
 0x502   : > { %1692 = vmax.xlane.f32.xlu2 %v1691_v34 }
 0x505   : > { %4396 = vmatmul.msk.f32.gmra.mxu0 %vm1584_vm14, %v1840_v61 }
 0x506   : > { %v1662_v36 = vpop.f32.mrf.mxu2 }
 0x507   : > { %v5732_v37 = vmul.f32 0.17677669, %v1662_v36 }
 0x509   : > { %v1694_v39 = vsel %vm938_vm0, %v5732_v37, -inf }
 0x50a   : > { %1695 = vmax.xlane.f32.xlu2 %v1694_v39 }
 0x50d   : > { %4397 = vmatmul.msk.f32.gmra.mxu0 %vm1584_vm14, %v1842_v24 }
 0x50e   : > { %v1665_v40 = vpop.f32.mrf.mxu2 }
 0x50f   : > { %v5737_v4 = vmul.f32 0.17677669, %v1665_v40 }
 0x511   : > { %v1697_v10 = vsel %vm938_vm0, %v5737_v4, -inf }
 0x512   : > { %1698 = vmax.xlane.f32.xlu1 %v1697_v10 }
 0x516   : > { %v1668_v41 = vpop.f32.mrf.mxu2 }
 0x517   : > { %v5741_v43 = vmul.f32 0.17677669, %v1668_v41 }
 0x519   : > { %v1700_v44 = vsel %vm938_vm0, %v5741_v43, -inf }
 0x51a   : > { %1701 = vmax.xlane.f32.xlu1 %v1700_v44 }
 0x51e   : > { %v1671_v46 = vpop.f32.mrf.mxu2 }
 0x51f   : > { %v5745_v52 = vmul.f32 0.17677669, %v1671_v46 }
 0x521   : > { %v1703_v54 = vsel %vm938_vm0, %v5745_v52, -inf }
 0x522   : > { %1704 = vmax.xlane.f32.xlu0 %v1703_v54 }
 0x552   : > { %v1908_v57 = vpop.f32.mrf.mxu0 }
 0x553   : > { %v5749_v47 = vmul.f32 0.17677669, %v1908_v57 }
 0x555   : > { %v1940_v48 = vsel %vm938_vm0, %v5749_v47, -inf }
 0x556   : > { %1941 = vmax.xlane.f32.xlu2 %v1940_v48 }
 0x55a   : > { %v1911_v45 = vpop.f32.mrf.mxu0 }
 0x55b   : > { %v5753_v51 = vmul.f32 0.17677669, %v1911_v45 }
 0x55d   : > { %v1684_v58 = vpop.xlane.xlu1 %1683  ;;  %v1943_v55 = vsel %vm938_vm0, %v5753_v51, -inf }
 0x55e   : > { %v1706_v59 = vsub.f32 %v1674_v18, %v1684_v58  ;;  %1944 = vmax.xlane.f32.xlu1 %v1943_v55 }
 0x560   : > { %v1714_v62 = vmul.f32 1.442695, %v1706_v59 }
 0x562   : > { %4915 = vpow2.f32 %v1714_v62  ;;  %v1914_v63 = vpop.f32.mrf.mxu0 }
 0x563   : > { %v5757_v3 = vmul.f32 0.17677669, %v1914_v63 }
 0x565   : > { %v1687_v53 = vpop.xlane.xlu0 %1686  ;;  %v1946_v38 = vsel %vm938_vm0, %v5757_v3, -inf }
 0x566   : > { %v1707_v5 = vsub.f32 %v1675_v35, %v1687_v53  ;;  %1947 = vmax.xlane.f32.xlu1 %v1946_v38 }
 0x568   : > { %v5761_v49 = vpop.eup %4915  ;;  %v1716_v50 = vmul.f32 1.442695, %v1707_v5 }
 0x569   : > { %v1730_v60 = vsel %vm938_vm0, %v5761_v49, 0.0 }
 0x56a   : > { %4917 = vpow2.f32 %v1716_v50  ;;  %1731 = vadd.xlane.f32.xlu2 %v1730_v60  ;;  %v1917_v0 = vpop.f32.mrf.mxu0 }
 0x56b   : > { %v5765_v8 = vmul.f32 0.17677669, %v1917_v0 }
 0x56d   : > { %v1949_v26 = vsel %vm938_vm0, %v5765_v8, -inf  ;;  %v1690_v10 = vpop.xlane.xlu0 %1689 }
 0x56e   : > { %1950 = vmax.xlane.f32.xlu0 %v1949_v26  ;;  %v1708_v54 = vsub.f32 %v5722_v29, %v1690_v10 }
 0x570   : > { %v5769_v11 = vpop.eup %4917  ;;  %v1718_v48 = vmul.f32 1.442695, %v1708_v54 }
 0x571   : > { %v1733_v12 = vsel %vm938_vm0, %v5769_v11, 0.0 }
 0x572   : > { %1734 = vadd.xlane.f32.xlu1 %v1733_v12  ;;  %v1920_v14 = vpop.f32.mrf.mxu0 }
 0x573   : > { %v5773_v16 = vmul.f32 0.17677669, %v1920_v14 }
 0x575   : > { %v1952_v17 = vsel %vm938_vm0, %v5773_v16, -inf  ;;  %v1693_v28 = vpop.xlane.xlu2 %1692 }
 0x576   : > { %1953 = vmax.xlane.f32.xlu0 %v1952_v17  ;;  %v1709_v30 = vsub.f32 %v5727_v32, %v1693_v28 }
 0x578   : > { %v1720_v31 = vmul.f32 1.442695, %v1709_v30 }
 0x57a   : > { %v1923_v18 = vpop.f32.mrf.mxu0  ;;  %4919 = vpow2.f32 %v1720_v31 }
 0x57b   : > { %v5777_v20 = vmul.f32 0.17677669, %v1923_v18 }
 0x57d   : > { %v1955_v22 = vsel %vm938_vm0, %v5777_v20, -inf  ;;  %v1696_v34 = vpop.xlane.xlu2 %1695 }
 0x57e   : > { %1956 = vmax.xlane.f32.xlu2 %v1955_v22  ;;  %v1710_v61 = vsub.f32 %v5732_v37, %v1696_v34 }
 0x580   : > { %v1722_v36 = vmul.f32 1.442695, %v1710_v61  ;;  %v5793_v39 = vpop.eup %4919 }
 0x581   : > { %v1739_v24 = vsel %vm938_vm0, %v5793_v39, 0.0 }
 0x582   : > { %v1926_v23 = vpop.f32.mrf.mxu0  ;;  %4921 = vpow2.f32 %v1722_v36 }
 0x585   : > { %v5803_v37 = vpop.xlane.xlu1 %1698 }
 0x588   : > { %v5799_v32 = vpop.eup %4921 }
 0x589   : > { %v1742_v40 = vsel %vm938_vm0, %v5799_v32, 0.0 }
 0x58a   : > { %2040 = vrot.lane.b32.xlu0 %v5675_v1, %s6709_s1  ;;  %v1929_v35 = vpop.f32.mrf.mxu0  ;;  %v5791_v1 = vmul.f32 0.17677669, %v1926_v23 }
 0x58b   : > { %v5783_v25 = vmul.f32 0.17677669, %v1929_v35  ;;  %2036 = vrot.lane.b32.xlu1 %v5685_v56, %s6709_s1 }
 0x58c   : > { %v1958_v56 = vsel %vm938_vm0, %v5791_v1, -inf }
 0x58d   : > { %v1961_v27 = vsel %vm938_vm0, %v5783_v25, -inf  ;;  %v5805_v41 = vpop.xlane.xlu1 %1701 }
 0x58e   : > { %1962 = vmax.xlane.f32.xlu2 %v1961_v27  ;;  %v1712_v54 = vsub.f32 %v5741_v43, %v5805_v41 }
 0x595   : > { %v1705_v63 = vpop.xlane.xlu0 %1704 }
 0x596   : > { %v1713_v22 = vsub.f32 %v5745_v52, %v1705_v63 }
 0x598   : > { %v1728_v30 = vmul.f32 1.442695, %v1713_v22 }
 0x5b4   : > { %1959 = vmax.xlane.f32.xlu0 %v1958_v56 }
 0x5b5   : > { %1740 = vadd.xlane.f32.xlu1 %v1739_v24 }
 0x5bd   : > { %1743 = vadd.xlane.f32.xlu1 %v1742_v40 }
 0x5c9   : > { %v1942_v44 = vpop.xlane.xlu2 %1941 }
 0x5ca   : > { %v1964_v46 = vsub.f32 %v5749_v47, %v1942_v44 }
 0x5cc   : > { %v1972_v57 = vmul.f32 1.442695, %v1964_v46 }
 0x5ce   : > { %4923 = vpow2.f32 %v1972_v57 }
 0x5cf   : > { %4925 = vpow2.f32 %v1718_v48  ;;  %v1726_v48 = vmul.f32 1.442695, %v1712_v54 }
 0x5d1   : > { %v1945_v45 = vpop.xlane.xlu1 %1944 }
 0x5d2   : > { %v1965_v58 = vsub.f32 %v5753_v51, %v1945_v45 }
 0x5d4   : > { %v5810_v55 = vpop.eup %4923  ;;  %v1974_v59 = vmul.f32 1.442695, %v1965_v58 }
 0x5d5   : > { %v1988_v62 = vsel %vm938_vm0, %v5810_v55, 0.0  ;;  %v5814_v53 = vpop.eup %4925 }
 0x5d6   : > { %4927 = vpow2.f32 %v1974_v59  ;;  %1989 = vadd.xlane.f32.xlu0 %v1988_v62  ;;  %v1736_v51 = vsel %vm938_vm0, %v5814_v53, 0.0 }
 0x5d9   : > { %v1948_v29 = vpop.xlane.xlu1 %1947 }
 0x5da   : > { %v1966_v40 = vsub.f32 %v5757_v3, %v1948_v29 }
 0x5dc   : > { %v5816_v47 = vpop.eup %4927  ;;  %v1976_v10 = vmul.f32 1.442695, %v1966_v40 }
 0x5dd   : > { %v1991_v38 = vsel %vm938_vm0, %v5816_v47, 0.0  ;;  %v1732_v50 = vpop.xlane.xlu2 %1731 }
 0x5de   : > { %1992 = vadd.xlane.f32.xlu2 %v1991_v38  ;;  %1737 = vadd.xlane.f32.xlu0 %v1736_v51  ;;  %4929 = vrcp.f32 %v1732_v50 }
 0x5e1   : > { %v1951_v5 = vpop.xlane.xlu0 %1950 }
 0x5e2   : > { %v1967_v60 = vsub.f32 %v5765_v8, %v1951_v5 }
 0x5e4   : > { %v1978_v0 = vmul.f32 1.442695, %v1967_v60  ;;  %v4930_v17 = vpop.eup %4929 }
 0x5e5   : > { %v1735_v26 = vpop.xlane.xlu1 %1734  ;;  %v1762_v8 = vmul.f32 %v4930_v17, %v5761_v49 }
 0x5e6   : > { %4931 = vpow2.f32 %v1978_v0 }
 0x5e7   : > { %4933 = vrcp.f32 %v1735_v26 }
 0x5e9   : > { %v1954_v12 = vpop.xlane.xlu0 %1953 }
 0x5ea   : > { %v1968_v14 = vsub.f32 %v5773_v16, %v1954_v12 }
 0x5ec   : > { %v5824_v18 = vpop.eup %4931  ;;  %v1980_v23 = vmul.f32 1.442695, %v1968_v14 }
 0x5ed   : > { %v4934_v35 = vpop.eup %4933  ;;  %v1997_v27 = vsel %vm938_vm0, %v5824_v18, 0.0 }
 0x5ee   : > { %v1763_v28 = vmul.f32 %v4934_v35, %v5769_v11  ;;  %4935 = vpow2.f32 %v1980_v23  ;;  %1998 = vadd.xlane.f32.xlu0 %v1997_v27 }
 0x5ef   : > { %4937 = vpow2.f32 %v1728_v30 }
 0x5f0   : > { %v1770_v31 = vpack.c.bf16 %v1763_v28, %v1762_v8 }
 0x5f1   : > { %v1957_v34 = vpop.xlane.xlu2 %1956 }
 0x5f2   : > { %4378 = vmatmul.msk.bf16.vlgmr.msrb.gmra.mxu3 %vm938_vm0, %v1770_v31  ;;  %v1969_v16 = vsub.f32 %v5777_v20, %v1957_v34 }
 0x5f4   : > { %v5833_v61 = vpop.eup %4935  ;;  %v1982_v52 = vmul.f32 1.442695, %v1969_v16 }
 0x5f5   : > { %v2000_v36 = vsel %vm938_vm0, %v5833_v61, 0.0  ;;  %v5839_v49 = vpop.eup %4937 }
 0x5f6   : > { %4939 = vpow2.f32 %v1982_v52  ;;  %2038 = vrot.lane.b32.xlu2 %v5681_v2, %s6709_s1  ;;  %2001 = vadd.xlane.f32.xlu0 %v2000_v36  ;;  %v1751_v24 = vsel %vm938_vm0, %v5839_v49, 0.0  ;;  %v1711_v2 = vsub.f32 %v5737_v4, %v5803_v37  ;;  %s6745_s1 = sld [smem:[#allocation9_spill]] }
 0x5f7   : > { %4941 = vpow2.f32 %v1976_v10  ;;  %v4744_v10 = vld [vmem:[%s5276_s24] sm:$0xff] }
 0x5f8   : > { %v1724_v44 = vmul.f32 1.442695, %v1711_v2 }
 0x5fa   : > { %4943 = vpow2.f32 %v1724_v44 }
 0x5fb   : > { %4945 = vpow2.f32 %v1726_v48 }
 0x5fc   : > { %v5841_v11 = vpop.eup %4939  ;;  %v2041_v56 = vpop.permute.xlu0 %2040 }
 0x5fd   : > { %2065 = vmatpush.bf16.msrb.mxu1 %v2041_v56  ;;  %v2003_v20 = vsel %vm938_vm0, %v5841_v11, 0.0  ;;  %v4942_v46 = vpop.eup %4941  ;;  %v2037_v51 = vpop.permute.xlu1 %2036 }
 0x5fe   : > { %2004 = vadd.xlane.f32.xlu1 %v2003_v20  ;;  %1752 = vadd.xlane.f32.xlu0 %v1751_v24  ;;  %v1994_v57 = vsel %vm938_vm0, %v4942_v46, 0.0  ;;  %v4745_v24 = vld [vmem:[%s5276_s24 + $0x8] sm:$0xff] }
 0x5ff   : > { %2181 = vmatpush.bf16.msra.mxu3 %v4745_v24 }
 0x600   : > { %v5853_v58 = vpop.eup %4943 }
 0x601   : > { %v1963_v45 = vpop.xlane.xlu2 %1962  ;;  %v1745_v4 = vsel %vm938_vm0, %v5853_v58, 0.0  ;;  %v5859_v43 = vpop.eup %4945 }
 0x602   : > { %v1971_v3 = vsub.f32 %v5783_v25, %v1963_v45  ;;  %v1748_v41 = vsel %vm938_vm0, %v5859_v43, 0.0  ;;  %v4747_v45 = vld [vmem:[%s5276_s24 + $0x18] sm:$0xff] }
 0x603   : > { %2182 = vmatpush.bf16.msra.mxu3 %v4744_v10  ;;  %2128 = vmatpush.bf16.msra.mxu2 %v4747_v45 }
 0x604   : > { %v1986_v62 = vmul.f32 1.442695, %v1971_v3 }
 0x61f   : > { %1995 = vadd.xlane.f32.xlu2 %v1994_v57 }
 0x627   : > { %1746 = vadd.xlane.f32.xlu2 %v1745_v4  ;;  %v1960_v37 = vpop.xlane.xlu0 %1959 }
 0x628   : > { %v1970_v59 = vsub.f32 %v5791_v1, %v1960_v37  ;;  %v1741_v50 = vpop.xlane.xlu1 %1740 }
 0x62a   : > { %v1984_v63 = vmul.f32 1.442695, %v1970_v59 }
 0x62c   : > { %4947 = vpow2.f32 %v1984_v63 }
 0x62d   : > { %4949 = vpow2.f32 %v1986_v62 }
 0x62e   : > { %4951 = vrcp.f32 %v1741_v50 }
 0x62f   : > { %1749 = vadd.xlane.f32.xlu2 %v1748_v41 }
 0x630   : > { %v1744_v16 = vpop.xlane.xlu1 %1743 }
 0x632   : > { %v5863_v29 = vpop.eup %4947 }
 0x633   : > { %v5865_v25 = vpop.eup %4949  ;;  %v2006_v38 = vsel %vm938_vm0, %v5863_v29, 0.0 }
 0x634   : > { %2007 = vadd.xlane.f32.xlu1 %v2006_v38  ;;  %v2009_v1 = vsel %vm938_vm0, %v5865_v25, 0.0  ;;  %v4952_v26 = vpop.eup %4951 }
 0x635   : > { %v1765_v35 = vmul.f32 %v4952_v26, %v5793_v39 }
 0x637   : > { %2010 = vadd.xlane.f32.xlu2 %v2009_v1 }
 0x649   : > { %v1990_v5 = vpop.xlane.xlu0 %1989 }
 0x651   : > { %v1993_v60 = vpop.xlane.xlu2 %1992  ;;  %v1738_v0 = vpop.xlane.xlu0 %1737 }
 0x652   : > { %4953 = vrcp.f32 %v1993_v60 }
 0x653   : > { %4955 = vrcp.f32 %v1738_v0 }
 0x654   : > { %4957 = vrcp.f32 %v1990_v5 }
 0x658   : > { %v4954_v12 = vpop.eup %4953 }
 0x659   : > { %v4956_v14 = vpop.eup %4955  ;;  %v2039_v17 = vpop.permute.xlu2 %2038  ;;  %v2021_v27 = vmul.f32 %v4954_v12, %v5816_v47 }
 0x65a   : > { %v4958_v22 = vpop.eup %4957  ;;  %2066 = vmatpush.bf16.msrb.mxu1 %v2039_v17  ;;  %v1764_v23 = vmul.f32 %v4956_v14, %v5814_v53 }
 0x65b   : > { %v2020_v28 = vmul.f32 %v4958_v22, %v5810_v55 }
 0x65c   : > { %v1771_v8 = vpack.c.bf16 %v1765_v35, %v1764_v23 }
 0x65d   : > { %v2028_v30 = vpack.c.bf16 %v2021_v27, %v2020_v28 }
 0x65e   : > { %4379 = vmatmul.msk.bf16.gmra.mxu3 %vm938_vm0, %v1771_v8  ;;  %2067 = vmatpush.bf16.msrb.mxu1 %v2037_v51 }
 0x661   : > { %4398 = vmatmul.msk.bf16.vlgmr.msrb.gmra.mxu1 %vm938_vm0, %v2028_v30  ;;  %v1999_v31 = vpop.xlane.xlu0 %1998 }
 0x662   : > { %4959 = vrcp.f32 %v1999_v31 }
 0x668   : > { %v4960_v53 = vpop.eup %4959 }
 0x669   : > { %v2023_v55 = vmul.f32 %v4960_v53, %v5824_v18  ;;  %v2002_v36 = vpop.xlane.xlu0 %2001 }
 0x671   : > { %v2005_v56 = vpop.xlane.xlu1 %2004  ;;  %v1753_v48 = vpop.xlane.xlu0 %1752 }
 0x692   : > { %v1996_v34 = vpop.xlane.xlu2 %1995 }
 0x693   : > { %4961 = vrcp.f32 %v1996_v34 }
 0x694   : > { %4963 = vrcp.f32 %v1744_v16 }
 0x699   : > { %v4962_v39 = vpop.eup %4961 }
 0x69a   : > { %v1747_v47 = vpop.xlane.xlu2 %1746  ;;  %v2022_v52 = vmul.f32 %v4962_v39, %v4942_v46  ;;  %v4964_v40 = vpop.eup %4963 }
 0x69b   : > { %4965 = vrcp.f32 %v1747_v47  ;;  %v1766_v54 = vmul.f32 %v4964_v40, %v5799_v32 }
 0x69c   : > { %v2029_v20 = vpack.c.bf16 %v2023_v55, %v2022_v52  ;;  %4967 = vrcp.f32 %v2005_v56  ;;  %v4887_v56 = vld [vmem:[%s5281_s30] ss:$0 sm:$0xff] }
 0x69d   : > { %4969 = vrcp.f32 %v2002_v36 }
 0x69e   : > { %4399 = vmatmul.msk.bf16.gmra.mxu1 %vm938_vm0, %v2029_v20 }
 0x6a1   : > { %v4966_v2 = vpop.eup %4965 }
 0x6a2   : > { %v1750_v44 = vpop.xlane.xlu2 %1749  ;;  %v1767_v46 = vmul.f32 %v4966_v2, %v5853_v58  ;;  %v4968_v57 = vpop.eup %4967 }
 0x6a3   : > { %v4970_v3 = vpop.eup %4969  ;;  %4971 = vrcp.f32 %v1750_v44  ;;  %v2025_v4 = vmul.f32 %v4968_v57, %v5841_v11 }
 0x6a4   : > { %v1772_v18 = vpack.c.bf16 %v1767_v46, %v1766_v54  ;;  %4973 = vrcp.f32 %v1753_v48  ;;  %v2024_v37 = vmul.f32 %v4970_v3, %v5833_v61  ;;  %v1799_v61 = vpop.f32.mrf.mxu3 }
 0x6a6   : > { %4380 = vmatmul.msk.bf16.gmra.mxu3 %vm938_vm0, %v1772_v18  ;;  %v2030_v62 = vpack.c.bf16 %v2025_v4, %v2024_v37 }
 0x6a7   : > { %v2008_v63 = vpop.xlane.xlu1 %2007 }
 0x6a9   : > { %v4972_v32 = vpop.eup %4971 }
 0x6aa   : > { %v2011_v59 = vpop.xlane.xlu2 %2010  ;;  %v4974_v58 = vpop.eup %4973  ;;  %v1768_v41 = vmul.f32 %v4972_v32, %v5859_v43  ;;  %v4746_v43 = vld [vmem:[%s5276_s24 + $0x10] sm:$0xff] }
 0x6ab   : > { %4975 = vrcp.f32 %v2011_v59  ;;  %v1769_v38 = vmul.f32 %v4974_v58, %v5839_v49  ;;  %2129 = vmatpush.bf16.msra.mxu2 %v4746_v43 }
 0x6ac   : > { %4977 = vrcp.f32 %v2008_v63  ;;  %v1801_v0 = vpop.f32.mrf.mxu3 }
 0x6ad   : > { %v1773_v1 = vpack.c.bf16 %v1769_v38, %v1768_v41  ;;  %v1819_v26 = vpack.c.bf16 %v1801_v0, %v1799_v61 }
 0x6ae   : > { %4400 = vmatmul.msk.bf16.gmra.mxu1 %vm938_vm0, %v2030_v62 }
 0x6b1   : > { %v4976_v11 = vpop.eup %4975 }
 0x6b2   : > { %v4978_v51 = vpop.eup %4977  ;;  %v2027_v5 = vmul.f32 %v4976_v11, %v5865_v25 }
 0x6b3   : > { %v2026_v50 = vmul.f32 %v4978_v51, %v5863_v29 }
 0x6b5   : > { %v2031_v60 = vpack.c.bf16 %v2027_v5, %v2026_v50 }
 0x6b6   : > { %4381 = vmatmul.msk.bf16.gmra.mxu3 %vm938_vm0, %v1773_v1 }
 0x6be   : > { %4401 = vmatmul.msk.bf16.gmra.mxu1 %vm938_vm0, %v2031_v60 }
 0x6c6   : > { %4426 = vmatmul.msk.bf16.vlgmr.msra.gmra.mxu3 %vm1584_vm14, %v1819_v26 }
 0x6de   : > { %v2069_v49 = vpop.f32.mrf.mxu1 }
 0x6e1   : > { %v1804_v12 = vpop.f32.mrf.mxu3 }
 0x6e6   : > { %v2071_v14 = vpop.f32.mrf.mxu1 }
 0x6e7   : > { %v2089_v17 = vpack.c.bf16 %v2071_v14, %v2069_v49 }
 0x6e9   : > { %v1806_v22 = vpop.f32.mrf.mxu3  ;;  %4414 = vmatmul.msk.bf16.vlgmr.msra.gmra.mxu2 %vm1584_vm14, %v2089_v17 }
 0x6ea   : > { %v1820_v23 = vpack.c.bf16 %v1806_v22, %v1804_v12 }
 0x6ec   : > { %4427 = vmatmul.msk.bf16.gmra.mxu3 %vm1584_vm14, %v1820_v23 }
 0x71b   : > { %v2074_v29 = vpop.f32.mrf.mxu1 }
 0x723   : > { %v2076_v25 = vpop.f32.mrf.mxu1 }
 0x724   : > { %v2090_v35 = vpack.c.bf16 %v2076_v25, %v2074_v29 }
 0x726   : > { %4415 = vmatmul.msk.bf16.gmra.mxu2 %vm1584_vm14, %v2090_v35 }
 0x729   : > { %v1809_v27 = vpop.f32.mrf.mxu3 }
 0x72b   : > { %v2079_v8 = vpop.f32.mrf.mxu1 }
 0x731   : > { %v1811_v28 = vpop.f32.mrf.mxu3 }
 0x732   : > { %v1821_v30 = vpack.c.bf16 %v1811_v28, %v1809_v27 }
 0x733   : > { %v2081_v31 = vpop.f32.mrf.mxu1 }
 0x734   : > { %v2091_v34 = vpack.c.bf16 %v2081_v31, %v2079_v8  ;;  %4428 = vmatmul.msk.bf16.gmra.mxu3 %vm1584_vm14, %v1821_v30 }
 0x736   : > { %4416 = vmatmul.msk.bf16.gmra.mxu2 %vm1584_vm14, %v2091_v34 }
 0x739   : > { %v1814_v16 = vpop.f32.mrf.mxu3 }
 0x73b   : > { %v2084_v53 = vpop.f32.mrf.mxu1 }
 0x741   : > { %v1816_v39 = vpop.f32.mrf.mxu3 }
 0x742   : > { %v1822_v47 = vpack.c.bf16 %v1816_v39, %v1814_v16 }
 0x743   : > { %v2086_v52 = vpop.f32.mrf.mxu1 }
 0x744   : > { %v2092_v55 = vpack.c.bf16 %v2086_v52, %v2084_v53  ;;  %4429 = vmatmul.msk.bf16.gmra.mxu3 %vm1584_vm14, %v1822_v47 }
 0x746   : > { %4417 = vmatmul.msk.bf16.gmra.mxu2 %vm1584_vm14, %v2092_v55 }
 0x749   : > { %v2184_v36 = vpop.f32.mrf.mxu3 }
 0x751   : > { %v2186_v44 = vpop.f32.mrf.mxu3 }
 0x76c   : > { %v2131_v20 = vpop.f32.mrf.mxu2 }
 0x76d   : > { %v2185_v24 = vadd.f32 %v2184_v36, %v2131_v20 }
 0x76f   : > { %v2208_v40 = vadd.f32 %v4887_v56, %v2185_v24  ;;  %v2189_v45 = vpop.f32.mrf.mxu3 }
 0x771   : > { %v5905_v10 = vadd.f32 %v2208_v40, %v5510_v6 }
 0x773   : > { %v2224_v2 = vsel %vm938_vm0, %v5905_v10, 0.0 }
 0x774   : > { %v2133_v54 = vpop.f32.mrf.mxu2  ;;  %2225 = vadd.xlane.f32.xlu0 %v2224_v2 }
 0x775   : > { %v2187_v46 = vadd.f32 %v2186_v44, %v2133_v54 }
 0x777   : > { %v2209_v18 = vadd.f32 %v4887_v56, %v2187_v46  ;;  %v2191_v59 = vpop.f32.mrf.mxu3 }
 0x779   : > { %v5910_v57 = vadd.f32 %v2209_v18, %v5516_v9 }
 0x77b   : > { %v2227_v48 = vsel %vm938_vm0, %v5910_v57, 0.0 }
 0x77c   : > { %2228 = vadd.xlane.f32.xlu1 %v2227_v48 }
 0x7a9   : > { %v2136_v3 = vpop.f32.mrf.mxu2 }
 0x7aa   : > { %v2190_v4 = vadd.f32 %v2189_v45, %v2136_v3 }
 0x7ac   : > { %v2210_v6 = vadd.f32 %v4887_v56, %v2190_v4 }
 0x7ae   : > { %v5915_v37 = vadd.f32 %v2210_v6, %v5524_v15 }
 0x7b0   : > { %v2230_v62 = vsel %vm938_vm0, %v5915_v37, 0.0 }
 0x7b1   : > { %v2138_v32 = vpop.f32.mrf.mxu2  ;;  %2231 = vadd.xlane.f32.xlu2 %v2230_v62 }
 0x7b2   : > { %v2192_v63 = vadd.f32 %v2191_v59, %v2138_v32 }
 0x7b4   : > { %v2211_v9 = vadd.f32 %v4887_v56, %v2192_v63 }
 0x7b6   : > { %v5920_v58 = vadd.f32 %v2211_v9, %v5532_v21 }
 0x7b7   : > { %v2194_v41 = vpop.f32.mrf.mxu3 }
 0x7b8   : > { %v2233_v38 = vsel %vm938_vm0, %v5920_v58, 0.0 }
 0x7b9   : > { %v2141_v1 = vpop.f32.mrf.mxu2  ;;  %2234 = vadd.xlane.f32.xlu0 %v2233_v38  ;;  %v4751_v38 = vld [vmem:[%s5296_s20 + $0x18] sm:$0xff] }
 0x7ba   : > { %v2195_v11 = vadd.f32 %v2194_v41, %v2141_v1  ;;  %v4755_v1 = vld [vmem:[%s6743_s11 + $0x18] sm:$0xff]  ;;  %2476 = vmatpush.bf16.msra.mxu0 %v4751_v38 }
 0x7bb   : > { %2537 = vmatpush.bf16.msra.mxu1 %v4755_v1 }
 0x7bc   : > { %v2212_v15 = vadd.f32 %v4887_v56, %v2195_v11  ;;  %v4759_v11 = vld [vmem:[%s6744_s23 + $0x18] sm:$0xff] }
 0x7bd   : > { %2598 = vmatpush.bf16.msrb.mxu2 %v4759_v11 }
 0x7be   : > { %v5925_v51 = vadd.f32 %v2212_v15, %v5514_v7  ;;  %v4750_v15 = vld [vmem:[%s5296_s20 + $0x10] sm:$0xff] }
 0x7bf   : > { %v2196_v61 = vpop.f32.mrf.mxu3  ;;  %2477 = vmatpush.bf16.msra.mxu0 %v4750_v15 }
 0x7c0   : > { %v2236_v5 = vsel %vm938_vm0, %v5925_v51, 0.0 }
 0x7c1   : > { %v2143_v50 = vpop.f32.mrf.mxu2  ;;  %2237 = vadd.xlane.f32.xlu1 %v2236_v5  ;;  %v4758_v5 = vld [vmem:[%s6744_s23 + $0x10] sm:$0xff] }
 0x7c2   : > { %v2197_v60 = vadd.f32 %v2196_v61, %v2143_v50  ;;  %v4754_v61 = vld [vmem:[%s6743_s11 + $0x10] sm:$0xff]  ;;  %2599 = vmatpush.bf16.msrb.mxu2 %v4758_v5 }
 0x7c3   : > { %2538 = vmatpush.bf16.msra.mxu1 %v4754_v61 }
 0x7c4   : > { %v2213_v21 = vadd.f32 %v4887_v56, %v2197_v60  ;;  %v4749_v60 = vld [vmem:[%s5296_s20 + $0x8] sm:$0xff] }
 0x7c5   : > { %2478 = vmatpush.bf16.msra.mxu0 %v4749_v60 }
 0x7c6   : > { %v5930_v0 = vadd.f32 %v2213_v21, %v5522_v13  ;;  %v4753_v21 = vld [vmem:[%s6743_s11 + $0x8] sm:$0xff] }
 0x7c7   : > { %v2199_v43 = vpop.f32.mrf.mxu3  ;;  %2539 = vmatpush.bf16.msra.mxu1 %v4753_v21 }
 0x7c8   : > { %v2239_v26 = vsel %vm938_vm0, %v5930_v0, 0.0 }
 0x7c9   : > { %v2146_v49 = vpop.f32.mrf.mxu2  ;;  %2240 = vadd.xlane.f32.xlu2 %v2239_v26  ;;  %v4757_v26 = vld [vmem:[%s6744_s23 + $0x8] sm:$0xff] }
 0x7ca   : > { %v2200_v12 = vadd.f32 %v2199_v43, %v2146_v49  ;;  %2600 = vmatpush.bf16.msrb.mxu2 %v4757_v26 }
 0x7cc   : > { %v2214_v7 = vadd.f32 %v4887_v56, %v2200_v12  ;;  %v4748_v12 = vld [vmem:[%s5296_s20] sm:$0xff] }
 0x7cd   : > { %2479 = vmatpush.bf16.msra.mxu0 %v4748_v12 }
 0x7ce   : > { %v5935_v14 = vadd.f32 %v2214_v7, %v5530_v19  ;;  %v4752_v7 = vld [vmem:[%s6743_s11] sm:$0xff]  ;;  %s5135_s11 = scalar_lea.hbm %s5371_s12, 128 }
 0x7cf   : > { %v2201_v29 = vpop.f32.mrf.mxu3  ;;  %2540 = vmatpush.bf16.msra.mxu1 %v4752_v7 }
 0x7d0   : > { %v2242_v17 = vsel %vm938_vm0, %v5935_v14, 0.0 }
 0x7d1   : > { %2243 = vadd.xlane.f32.xlu2 %v2242_v17  ;;  %v2148_v22 = vpop.f32.mrf.mxu2  ;;  %v4756_v17 = vld [vmem:[%s6744_s23] sm:$0xff] }
 0x7d2   : > { %v2202_v25 = vadd.f32 %v2201_v29, %v2148_v22  ;;  %2601 = vmatpush.bf16.msrb.mxu2 %v4756_v17 }
 0x7d4   : > { %v2215_v8 = vadd.f32 %v4887_v56, %v2202_v25 }
 0x7d6   : > { %v5951_v34 = vadd.f32 %v2215_v8, %v5546_v33 }
 0x7d8   : > { %v2245_v39 = vsel %vm938_vm0, %v5951_v34, 0.0 }
 0x7e7   : > { %v2226_v23 = vpop.xlane.xlu0 %2225 }
 0x7e8   : > { %v2248_v13 = vmul.f32 %v2226_v23, %v5450_v42 }
 0x7ea   : > { %v5941_v35 = vsub.f32 %v5905_v10, %v2248_v13 }
 0x7ec   : > { %v2264_v27 = vmul.f32 %v5941_v35, %v5941_v35 }
 0x7ee   : > { %v2272_v19 = vsel %vm938_vm0, %v2264_v27, 0.0 }
 0x7ef   : > { %v2229_v28 = vpop.xlane.xlu1 %2228  ;;  %2273 = vadd.xlane.f32.xlu0 %v2272_v19 }
 0x7f0   : > { %v2249_v30 = vmul.f32 %v2229_v28, %v5450_v42 }
 0x7f2   : > { %v5948_v31 = vsub.f32 %v5910_v57, %v2249_v30 }
 0x7f4   : > { %v2265_v16 = vmul.f32 %v5948_v31, %v5948_v31 }
 0x7f6   : > { %v2275_v53 = vsel %vm938_vm0, %v2265_v16, 0.0 }
 0x7f7   : > { %2276 = vadd.xlane.f32.xlu1 %v2275_v53  ;;  %2246 = vadd.xlane.f32.xlu0 %v2245_v39 }
 0x824   : > { %v2232_v47 = vpop.xlane.xlu2 %2231 }
 0x825   : > { %v2250_v52 = vmul.f32 %v2232_v47, %v5450_v42 }
 0x827   : > { %v5960_v55 = vsub.f32 %v5915_v37, %v2250_v52 }
 0x829   : > { %v2266_v33 = vmul.f32 %v5960_v55, %v5960_v55 }
 0x82b   : > { %v2278_v36 = vsel %vm938_vm0, %v2266_v33, 0.0 }
 0x82c   : > { %2279 = vadd.xlane.f32.xlu1 %v2278_v36  ;;  %v2235_v56 = vpop.xlane.xlu0 %2234 }
 0x82d   : > { %v2251_v20 = vmul.f32 %v2235_v56, %v5450_v42 }
 0x82f   : > { %v5967_v24 = vsub.f32 %v5920_v58, %v2251_v20 }
 0x831   : > { %v2267_v40 = vmul.f32 %v5967_v24, %v5967_v24 }
 0x833   : > { %v2281_v2 = vsel %vm938_vm0, %v2267_v40, 0.0 }
 0x834   : > { %v2238_v44 = vpop.xlane.xlu1 %2237  ;;  %2282 = vadd.xlane.f32.xlu2 %v2281_v2  ;;  %v6015_v2 = vld [vmem:[%s6745_s1] ss:$0 sm:$0xff]  ;;  %s6748_s1 = sld [smem:[#allocation13_spill]] }
 0x835   : > { %v2252_v54 = vmul.f32 %v2238_v44, %v5450_v42 }
 0x837   : > { %v5974_v46 = vsub.f32 %v5925_v51, %v2252_v54 }
 0x839   : > { %v2268_v18 = vmul.f32 %v5974_v46, %v5974_v46 }
 0x83b   : > { %v2284_v48 = vsel %vm938_vm0, %v2268_v18, 0.0 }
 0x83c   : > { %v2241_v45 = vpop.xlane.xlu2 %2240  ;;  %2285 = vadd.xlane.f32.xlu0 %v2284_v48  ;;  %v6019_v48 = vld [vmem:[%s6746_s3] ss:$0 sm:$0xff]  ;;  %s6747_s3 = smov 96  }
 0x83d   : > { %v2253_v3 = vmul.f32 %v2241_v45, %v5450_v42 }
 0x83f   : > { %v5981_v4 = vsub.f32 %v5930_v0, %v2253_v3 }
 0x841   : > { %v2269_v6 = vmul.f32 %v5981_v4, %v5981_v4 }
 0x843   : > { %v2287_v59 = vsel %vm938_vm0, %v2269_v6, 0.0 }
 0x844   : > { %2288 = vadd.xlane.f32.xlu1 %v2287_v59  ;;  %v2244_v62 = vpop.xlane.xlu2 %2243 }
 0x845   : > { %v2254_v32 = vmul.f32 %v2244_v62, %v5450_v42 }
 0x847   : > { %v5988_v63 = vsub.f32 %v5935_v14, %v2254_v32 }
 0x849   : > { %v2270_v9 = vmul.f32 %v5988_v63, %v5988_v63 }
 0x84b   : > { %v2290_v41 = vsel %vm938_vm0, %v2270_v9, 0.0 }
 0x84c   : > { %2291 = vadd.xlane.f32.xlu2 %v2290_v41 }
 0x862   : > { %v2274_v50 = vpop.xlane.xlu0 %2273 }
 0x863   : > { %v2296_v43 = vmul.f32 %v2274_v50, %v5450_v42 }
 0x865   : > { %v2304_v49 = vadd.f32 1e-05, %v2296_v43 }
 0x867   : > { %4979 = vrsqrt.f32 %v2304_v49  ;;  %vm2318_vm1 = vweird.f32 %v2304_v49 }
 0x86a   : > { %v2277_v22 = vpop.xlane.xlu1 %2276  ;;  %v2247_v23 = vpop.xlane.xlu0 %2246 }
 0x86b   : > { %v2297_v13 = vmul.f32 %v2277_v22, %v5450_v42  ;;  %v2255_v29 = vmul.f32 %v2247_v23, %v5450_v42 }
 0x86d   : > { %v4980_v25 = vpop.eup %4979  ;;  %v2305_v27 = vadd.f32 1e-05, %v2297_v13  ;;  %v6009_v8 = vsub.f32 %v5951_v34, %v2255_v29 }
 0x86e   : > { %v2313_v19 = vmul.f32 %v4980_v25, %v2304_v49  ;;  %vm2319_vm15 = vweird.f32 %v4980_v25 }
 0x86f   : > { %4981 = vrsqrt.f32 %v2305_v27  ;;  %v2271_v28 = vmul.f32 %v6009_v8, %v6009_v8  ;;  %vm2320_vm2 = vmor %vm2318_vm1, %vm2319_vm15  ;;  %vm2328_vm4 = vweird.f32 %v2305_v27 }
 0x870   : > { %v2314_v30 = vmul.f32 %v4980_v25, %v2313_v19 }
 0x871   : > { %v2293_v16 = vsel %vm938_vm0, %v2271_v28, 0.0 }
 0x872   : > { %v2315_v53 = vmul.f32 0.5, %v2314_v30  ;;  %2294 = vadd.xlane.f32.xlu0 %v2293_v16 }
 0x874   : > { %v2316_v39 = vsub.f32 1.5, %v2315_v53 }
 0x875   : > { %v4982_v47 = vpop.eup %4981 }
 0x876   : > { %v2317_v52 = vmul.f32 %v4980_v25, %v2316_v39  ;;  %v2323_v33 = vmul.f32 %v4982_v47, %v2305_v27  ;;  %vm2329_vm3 = vweird.f32 %v4982_v47 }
 0x877   : > { %vm2330_vm5 = vmor %vm2328_vm4, %vm2329_vm3 }
 0x878   : > { %v2324_v36 = vmul.f32 %v4982_v47, %v2323_v33  ;;  %v2321_v56 = vsel %vm2320_vm2, %v4980_v25, %v2317_v52 }
 0x879   : > { %v2392_v44 = vmul.f32 %v2321_v56, %v5941_v35 }
 0x87a   : > { %v2325_v20 = vmul.f32 0.5, %v2324_v36 }
 0x87b   : > { %v2404_v45 = vmul.f32 %v6015_v2, %v2392_v44 }
 0x87c   : > { %v2326_v40 = vsub.f32 1.5, %v2325_v20 }
 0x87d   : > { %v2416_v59 = vadd.f32 %v6019_v48, %v2404_v45 }
 0x87e   : > { %v2327_v54 = vmul.f32 %v4982_v47, %v2326_v40 }
 0x880   : > { %v2331_v18 = vsel %vm2330_vm5, %v4982_v47, %v2327_v54 }
 0x881   : > { %v2393_v3 = vmul.f32 %v2331_v18, %v5948_v31 }
 0x883   : > { %v2405_v6 = vmul.f32 %v6015_v2, %v2393_v3 }
 0x885   : > { %v2417_v62 = vadd.f32 %v6019_v48, %v2405_v6 }
 0x887   : > { %v2424_v32 = vpack.c.bf16 %v2417_v62, %v2416_v59 }
 0x889   : > { %4446 = vmatmul.msk.bf16.vlgmr.msra.gmra.mxu0 %vm938_vm0, %v2424_v32  ;;  %4466 = vmatmul.msk.bf16.vlgmr.msra.gmra.mxu1 %vm938_vm0, %v2424_v32 }
 0x88a   : > { %4486 = vmatmul.msk.bf16.vlgmr.msrb.gmra.mxu2 %vm938_vm0, %v2424_v32 }
 0x89f   : > { %v2280_v35 = vpop.xlane.xlu1 %2279 }
 0x8a0   : > { %v2298_v9 = vmul.f32 %v2280_v35, %v5450_v42 }
 0x8a2   : > { %v2306_v41 = vadd.f32 1e-05, %v2298_v9 }
 0x8a4   : > { %4983 = vrsqrt.f32 %v2306_v41  ;;  %vm2338_vm7 = vweird.f32 %v2306_v41 }
 0x8a7   : > { %v2283_v38 = vpop.xlane.xlu2 %2282 }
 0x8a8   : > { %v2299_v31 = vmul.f32 %v2283_v38, %v5450_v42 }
 0x8aa   : > { %v4984_v1 = vpop.eup %4983  ;;  %v2307_v11 = vadd.f32 1e-05, %v2299_v31 }
 0x8ab   : > { %v2333_v15 = vmul.f32 %v4984_v1, %v2306_v41  ;;  %vm2339_vm6 = vweird.f32 %v4984_v1 }
 0x8ac   : > { %4985 = vrsqrt.f32 %v2307_v11  ;;  %vm2340_vm8 = vmor %vm2338_vm7, %vm2339_vm6  ;;  %vm2348_vm10 = vweird.f32 %v2307_v11 }
 0x8ad   : > { %v2334_v61 = vmul.f32 %v4984_v1, %v2333_v15 }
 0x8af   : > { %v2335_v5 = vmul.f32 0.5, %v2334_v61  ;;  %v2286_v50 = vpop.xlane.xlu0 %2285 }
 0x8b0   : > { %v2300_v60 = vmul.f32 %v2286_v50, %v5450_v42 }
 0x8b1   : > { %v2336_v21 = vsub.f32 1.5, %v2335_v5 }
 0x8b2   : > { %v4986_v26 = vpop.eup %4985  ;;  %v2308_v43 = vadd.f32 1e-05, %v2300_v60 }
 0x8b3   : > { %v2337_v49 = vmul.f32 %v4984_v1, %v2336_v21  ;;  %v2343_v12 = vmul.f32 %v4986_v26, %v2307_v11  ;;  %vm2349_vm9 = vweird.f32 %v4986_v26 }
 0x8b4   : > { %4987 = vrsqrt.f32 %v2308_v43  ;;  %vm2350_vm11 = vmor %vm2348_vm10, %vm2349_vm9  ;;  %vm2358_vm13 = vweird.f32 %v2308_v43 }
 0x8b5   : > { %v2344_v7 = vmul.f32 %v4986_v26, %v2343_v12  ;;  %v2341_v17 = vsel %vm2340_vm8, %v4984_v1, %v2337_v49 }
 0x8b6   : > { %v2394_v27 = vmul.f32 %v2341_v17, %v5960_v55 }
 0x8b7   : > { %v2345_v22 = vmul.f32 0.5, %v2344_v7  ;;  %v2289_v23 = vpop.xlane.xlu1 %2288 }
 0x8b8   : > { %v2301_v13 = vmul.f32 %v2289_v23, %v5450_v42  ;;  %v2406_v47 = vmul.f32 %v6015_v2, %v2394_v27 }
 0x8b9   : > { %v2346_v29 = vsub.f32 1.5, %v2345_v22 }
 0x8ba   : > { %v4988_v25 = vpop.eup %4987  ;;  %v2309_v19 = vadd.f32 1e-05, %v2301_v13  ;;  %v2418_v20 = vadd.f32 %v6019_v48, %v2406_v47 }
 0x8bb   : > { %v2347_v28 = vmul.f32 %v4986_v26, %v2346_v29  ;;  %v2353_v30 = vmul.f32 %v4988_v25, %v2308_v43  ;;  %vm2359_vm12 = vweird.f32 %v4988_v25 }
 0x8bc   : > { %4989 = vrsqrt.f32 %v2309_v19  ;;  %vm2360_vm15 = vmor %vm2358_vm13, %vm2359_vm12  ;;  %vm2368_vm2 = vweird.f32 %v2309_v19 }
 0x8bd   : > { %v2351_v16 = vsel %vm2350_vm11, %v4986_v26, %v2347_v28  ;;  %v2354_v53 = vmul.f32 %v4988_v25, %v2353_v30 }
 0x8be   : > { %v2395_v39 = vmul.f32 %v2351_v16, %v5967_v24 }
 0x8bf   : > { %v2355_v52 = vmul.f32 0.5, %v2354_v53  ;;  %v2292_v32 = vpop.xlane.xlu2 %2291 }
 0x8c0   : > { %v2407_v33 = vmul.f32 %v6015_v2, %v2395_v39  ;;  %v2302_v41 = vmul.f32 %v2292_v32, %v5450_v42 }
 0x8c1   : > { %v2356_v36 = vsub.f32 1.5, %v2355_v52 }
 0x8c2   : > { %v4990_v56 = vpop.eup %4989  ;;  %v2419_v55 = vadd.f32 %v6019_v48, %v2407_v33  ;;  %v2310_v11 = vadd.f32 1e-05, %v2302_v41 }
 0x8c3   : > { %v2357_v40 = vmul.f32 %v4988_v25, %v2356_v36  ;;  %v2363_v44 = vmul.f32 %v4990_v56, %v2309_v19  ;;  %vm2369_vm1 = vweird.f32 %v4990_v56 }
 0x8c4   : > { %v2425_v54 = vpack.c.bf16 %v2419_v55, %v2418_v20  ;;  %vm2370_vm3 = vmor %vm2368_vm2, %vm2369_vm1  ;;  %4991 = vrsqrt.f32 %v2310_v11  ;;  %vm2378_vm5 = vweird.f32 %v2310_v11 }
 0x8c5   : > { %v2364_v18 = vmul.f32 %v4990_v56, %v2363_v44  ;;  %v2361_v24 = vsel %vm2360_vm15, %v4988_v25, %v2357_v40 }
 0x8c6   : > { %4447 = vmatmul.msk.bf16.gmra.mxu0 %vm938_vm0, %v2425_v54  ;;  %4467 = vmatmul.msk.bf16.gmra.mxu1 %vm938_vm0, %v2425_v54  ;;  %v2396_v6 = vmul.f32 %v2361_v24, %v5974_v46 }
 0x8c7   : > { %v2365_v45 = vmul.f32 0.5, %v2364_v18  ;;  %4487 = vmatmul.msk.bf16.gmra.mxu2 %vm938_vm0, %v2425_v54 }
 0x8c8   : > { %v2408_v9 = vmul.f32 %v6015_v2, %v2396_v6 }
 0x8c9   : > { %v2366_v3 = vsub.f32 1.5, %v2365_v45 }
 0x8ca   : > { %v2420_v31 = vadd.f32 %v6019_v48, %v2408_v9  ;;  %v4992_v46 = vpop.eup %4991 }
 0x8cb   : > { %v2367_v59 = vmul.f32 %v4990_v56, %v2366_v3  ;;  %vm2379_vm4 = vweird.f32 %v4992_v46 }
 0x8cc   : > { %vm2380_vm6 = vmor %vm2378_vm5, %vm2379_vm4 }
 0x8cd   : > { %v2371_v62 = vsel %vm2370_vm3, %v4990_v56, %v2367_v59 }
 0x8ce   : > { %v2397_v35 = vmul.f32 %v2371_v62, %v5981_v4  ;;  %v2373_v4 = vmul.f32 %v4992_v46, %v2310_v11 }
 0x8d0   : > { %v2409_v38 = vmul.f32 %v6015_v2, %v2397_v35  ;;  %v2374_v61 = vmul.f32 %v4992_v46, %v2373_v4 }
 0x8d2   : > { %v2421_v1 = vadd.f32 %v6019_v48, %v2409_v38  ;;  %v2375_v21 = vmul.f32 0.5, %v2374_v61 }
 0x8d4   : > { %v2426_v15 = vpack.c.bf16 %v2421_v1, %v2420_v31  ;;  %v2376_v26 = vsub.f32 1.5, %v2375_v21 }
 0x8d6   : > { %4448 = vmatmul.msk.bf16.gmra.mxu0 %vm938_vm0, %v2426_v15  ;;  %4468 = vmatmul.msk.bf16.gmra.mxu1 %vm938_vm0, %v2426_v15  ;;  %v2377_v49 = vmul.f32 %v4992_v46, %v2376_v26 }
 0x8d7   : > { %4488 = vmatmul.msk.bf16.gmra.mxu2 %vm938_vm0, %v2426_v15 }
 0x8d8   : > { %v2381_v17 = vsel %vm2380_vm6, %v4992_v46, %v2377_v49 }
 0x8d9   : > { %v2398_v13 = vmul.f32 %v2381_v17, %v5988_v63 }
 0x8db   : > { %v2410_v19 = vmul.f32 %v6015_v2, %v2398_v13 }
 0x8dd   : > { %v2422_v30 = vadd.f32 %v6019_v48, %v2410_v19 }
 0x8e5   : > { %v2295_v5 = vpop.xlane.xlu0 %2294 }
 0x8e6   : > { %v2303_v50 = vmul.f32 %v2295_v5, %v5450_v42 }
 0x8e8   : > { %v2311_v60 = vadd.f32 1e-05, %v2303_v50 }
 0x8ea   : > { %4993 = vrsqrt.f32 %v2311_v60  ;;  %vm2388_vm8 = vweird.f32 %v2311_v60 }
 0x8f0   : > { %v4994_v43 = vpop.eup %4993 }
 0x8f1   : > { %v2383_v12 = vmul.f32 %v4994_v43, %v2311_v60  ;;  %vm2389_vm7 = vweird.f32 %v4994_v43 }
 0x8f2   : > { %vm2390_vm9 = vmor %vm2388_vm8, %vm2389_vm7 }
 0x8f3   : > { %v2384_v7 = vmul.f32 %v4994_v43, %v2383_v12 }
 0x8f5   : > { %v2385_v22 = vmul.f32 0.5, %v2384_v7 }
 0x8f7   : > { %v2386_v23 = vsub.f32 1.5, %v2385_v22 }
 0x8f9   : > { %v2387_v29 = vmul.f32 %v4994_v43, %v2386_v23 }
 0x8fb   : > { %v2391_v25 = vsel %vm2390_vm9, %v4994_v43, %v2387_v29 }
 0x8fc   : > { %v2399_v27 = vmul.f32 %v2391_v25, %v6009_v8 }
 0x8fe   : > { %v2411_v28 = vmul.f32 %v6015_v2, %v2399_v27 }
 0x900   : > { %v2423_v16 = vadd.f32 %v6019_v48, %v2411_v28 }
 0x902   : > { %v2427_v53 = vpack.c.bf16 %v2423_v16, %v2422_v30 }
 0x904   : > { %4449 = vmatmul.msk.bf16.gmra.mxu0 %vm938_vm0, %v2427_v53  ;;  %4469 = vmatmul.msk.bf16.gmra.mxu1 %vm938_vm0, %v2427_v53 }
 0x905   : > { %4489 = vmatmul.msk.bf16.gmra.mxu2 %vm938_vm0, %v2427_v53 }
 0x906   : > { %v2542_v63 = vpop.f32.mrf.mxu1  ;;  %v2481_v52 = vpop.f32.mrf.mxu0 }
 0x90d   : > { %v2603_v33 = vpop.f32.mrf.mxu2 }
 0x90e   : > { %v2544_v39 = vpop.f32.mrf.mxu1  ;;  %v2483_v56 = vpop.f32.mrf.mxu0 }
 0x915   : > { %v2605_v2 = vpop.f32.mrf.mxu2 }
 0x916   : > { %v6088_v41 = vpack.c.bf16 %v2605_v2, %v2603_v33 }
 0x943   : > { %v2547_v47 = vpop.f32.mrf.mxu1  ;;  %v2486_v48 = vpop.f32.mrf.mxu0 }
 0x94a   : > { %v2608_v55 = vpop.f32.mrf.mxu2 }
 0x94b   : > { %v2549_v8 = vpop.f32.mrf.mxu1  ;;  %v2488_v40 = vpop.f32.mrf.mxu0 }
 0x952   : > { %v2610_v44 = vpop.f32.mrf.mxu2 }
 0x953   : > { %v2552_v36 = vpop.f32.mrf.mxu1  ;;  %v2491_v54 = vpop.f32.mrf.mxu0  ;;  %v6082_v9 = vpack.c.bf16 %v2610_v44, %v2608_v55 }
 0x95a   : > { %v2613_v18 = vpop.f32.mrf.mxu2 }
 0x95b   : > { %v2554_v20 = vpop.f32.mrf.mxu1  ;;  %v2493_v24 = vpop.f32.mrf.mxu0 }
 0x95c   : > { %2891 = vrot.lane.b32.xlu0 %v2554_v20, %s6747_s3 }
 0x962   : > { %v2615_v45 = vpop.f32.mrf.mxu2 }
 0x963   : > { %v6078_v35 = vpack.c.bf16 %v2615_v45, %v2613_v18 }
 0x964   : > { %2887 = vrot.lane.b32.xlu0 %v2549_v8, %s6747_s3 }
 0x96c   : > { %2881 = vrot.lane.b32.xlu0 %v2542_v63, %s6747_s3 }
 0x974   : > { %2869 = vrot.lane.b32.xlu0 %v2486_v48, %s6747_s3 }
 0x97c   : > { %2875 = vrot.lane.b32.xlu0 %v2493_v24, %s6747_s3 }
 0x981   : > { %v2557_v3 = vpop.f32.mrf.mxu1  ;;  %v2496_v38 = vpop.f32.mrf.mxu0 }
 0x982   : > { %2893 = vrot.lane.b32.xlu2 %v2557_v3, %s6747_s3 }
 0x988   : > { %v2618_v6 = vpop.f32.mrf.mxu2 }
 0x989   : > { %v2559_v59 = vpop.f32.mrf.mxu1  ;;  %v2498_v31 = vpop.f32.mrf.mxu0 }
 0x98a   : > { %2885 = vrot.lane.b32.xlu2 %v2547_v47, %s6747_s3  ;;  %2895 = vrot.lane.b32.xlu1 %v2559_v59, %s6747_s3 }
 0x98b   : > { %4490 = vmatpush.xpose.msk.msrb.mxu3 %vm1584_vm14, %v2559_v59 }
 0x98f   : > { %4491 = vmatpush.xpose.msk.msrb.mxu3 %vm1584_vm14, %v2557_v3 }
 0x990   : > { %v2620_v62 = vpop.f32.mrf.mxu2 }
 0x991   : > { %v6072_v32 = vpack.c.bf16 %v2620_v62, %v2618_v6 }
 0x992   : > { %2865 = vrot.lane.b32.xlu2 %v2481_v52, %s6747_s3  ;;  %2889 = vrot.lane.b32.xlu1 %v2552_v36, %s6747_s3 }
 0x993   : > { %2832 = vmatpush.bf16.msrb.mxu0 %v6072_v32  ;;  %4492 = vmatpush.xpose.msk.msrb.mxu3 %vm1584_vm14, %v2554_v20 }
 0x997   : > { %4493 = vmatpush.xpose.msk.msrb.mxu3 %vm1584_vm14, %v2552_v36  ;;  %2833 = vmatpush.bf16.msrb.mxu0 %v6078_v35 }
 0x99a   : > { %2871 = vrot.lane.b32.xlu2 %v2488_v40, %s6747_s3  ;;  %2883 = vrot.lane.b32.xlu1 %v2544_v39, %s6747_s3 }
 0x99b   : > { %2834 = vmatpush.bf16.msrb.mxu0 %v6082_v9  ;;  %4494 = vmatpush.xpose.msk.msrb.mxu3 %vm1584_vm14, %v2549_v8 }
 0x99f   : > { %4495 = vmatpush.xpose.msk.msrb.mxu3 %vm1584_vm14, %v2547_v47  ;;  %2835 = vmatpush.bf16.msrb.mxu0 %v6088_v41 }
 0x9a2   : > { %2867 = vrot.lane.b32.xlu1 %v2483_v56, %s6747_s3  ;;  %2877 = vrot.lane.b32.xlu2 %v2496_v38, %s6747_s3 }
 0x9a3   : > { %4496 = vmatpush.xpose.msk.msrb.mxu3 %vm1584_vm14, %v2544_v39 }
 0x9a7   : > { %4497 = vmatpush.xpose.msk.msrb.mxu3 %vm1584_vm14, %v2542_v63 }
 0x9aa   : > { %4498 = vmatmul.msk.f32.vlgmr.msrb.gmra.mxu3 %vm1584_vm14, %v2481_v52  ;;  %2873 = vrot.lane.b32.xlu1 %v2491_v54, %s6747_s3 }
 0x9b2   : > { %4499 = vmatmul.msk.f32.gmra.mxu3 %vm1584_vm14, %v2483_v56  ;;  %2879 = vrot.lane.b32.xlu1 %v2498_v31, %s6747_s3 }
 0x9ba   : > { %4500 = vmatmul.msk.f32.gmra.mxu3 %vm1584_vm14, %v2486_v48 }
 0x9c2   : > { %4501 = vmatmul.msk.f32.gmra.mxu3 %vm1584_vm14, %v2488_v40 }
 0x9ca   : > { %4502 = vmatmul.msk.f32.gmra.mxu3 %vm1584_vm14, %v2491_v54 }
 0x9ce   : > { %v2892_v15 = vpop.permute.xlu0 %2891 }
 0x9d2   : > { %4503 = vmatmul.msk.f32.gmra.mxu3 %vm1584_vm14, %v2493_v24 }
 0x9d6   : > { %v2888_v4 = vpop.permute.xlu0 %2887 }
 0x9da   : > { %4504 = vmatmul.msk.f32.gmra.mxu3 %vm1584_vm14, %v2496_v38 }
 0x9dc   : > { %v2894_v11 = vpop.permute.xlu2 %2893 }
 0x9de   : > { %v2882_v50 = vpop.permute.xlu0 %2881 }
 0x9e2   : > { %4505 = vmatmul.msk.f32.gmra.mxu3 %vm1584_vm14, %v2498_v31 }
 0x9e4   : > { %v2886_v61 = vpop.permute.xlu2 %2885 }
 0x9e6   : > { %v2870_v26 = vpop.permute.xlu0 %2869 }
 0x9ec   : > { %v2866_v60 = vpop.permute.xlu2 %2865 }
 0x9ee   : > { %v2876_v19 = vpop.permute.xlu0 %2875 }
 0x9f4   : > { %v2872_v7 = vpop.permute.xlu2 %2871 }
 0x9fc   : > { %v2896_v1 = vpop.permute.xlu1 %2895  ;;  %v2878_v53 = vpop.permute.xlu2 %2877 }
 0x9fd   : > { %4510 = vmatpush.xpose.msk.msrb.mxu1 %vm1584_vm14, %v2896_v1 }
 0xa01   : > { %4511 = vmatpush.xpose.msk.msrb.mxu1 %vm1584_vm14, %v2894_v11 }
 0xa04   : > { %v2890_v46 = vpop.permute.xlu1 %2889 }
 0xa05   : > { %4512 = vmatpush.xpose.msk.msrb.mxu1 %vm1584_vm14, %v2892_v15 }
 0xa09   : > { %4513 = vmatpush.xpose.msk.msrb.mxu1 %vm1584_vm14, %v2890_v46 }
 0xa0c   : > { %v2884_v5 = vpop.permute.xlu1 %2883 }
 0xa0d   : > { %4514 = vmatpush.xpose.msk.msrb.mxu1 %vm1584_vm14, %v2888_v4 }
 0xa11   : > { %4515 = vmatpush.xpose.msk.msrb.mxu1 %vm1584_vm14, %v2886_v61 }
 0xa14   : > { %v2868_v21 = vpop.permute.xlu1 %2867 }
 0xa15   : > { %4516 = vmatpush.xpose.msk.msrb.mxu1 %vm1584_vm14, %v2884_v5 }
 0xa19   : > { %4517 = vmatpush.xpose.msk.msrb.mxu1 %vm1584_vm14, %v2882_v50 }
 0xa1c   : > { %4518 = vmatmul.msk.f32.vlgmr.msrb.gmra.mxu1 %vm1584_vm14, %v2866_v60  ;;  %v2874_v13 = vpop.permute.xlu1 %2873 }
 0xa24   : > { %4519 = vmatmul.msk.f32.gmra.mxu1 %vm1584_vm14, %v2868_v21  ;;  %v2880_v52 = vpop.permute.xlu1 %2879 }
 0xa2c   : > { %4520 = vmatmul.msk.f32.gmra.mxu1 %vm1584_vm14, %v2870_v26 }
 0xa2d   : > { %v2688_v43 = vpop.f32.mrf.mxu3 }
 0xa2e   : > { %v6117_v49 = vmul.f32 0.17677669, %v2688_v43 }
 0xa30   : > { %v2720_v12 = vsel %vm938_vm0, %v6117_v49, -inf }
 0xa31   : > { %2721 = vmax.xlane.f32.xlu1 %v2720_v12 }
 0xa34   : > { %4521 = vmatmul.msk.f32.gmra.mxu1 %vm1584_vm14, %v2872_v7 }
 0xa35   : > { %v2691_v17 = vpop.f32.mrf.mxu3 }
 0xa36   : > { %v2713_v22 = vmul.f32 0.17677669, %v2691_v17 }
 0xa38   : > { %v2723_v23 = vsel %vm938_vm0, %v2713_v22, -inf }
 0xa39   : > { %2724 = vmax.xlane.f32.xlu0 %v2723_v23 }
 0xa3c   : > { %4522 = vmatmul.msk.f32.gmra.mxu1 %vm1584_vm14, %v2874_v13 }
 0xa3d   : > { %v2694_v29 = vpop.f32.mrf.mxu3 }
 0xa3e   : > { %v6124_v25 = vmul.f32 0.17677669, %v2694_v29 }
 0xa40   : > { %v2726_v27 = vsel %vm938_vm0, %v6124_v25, -inf }
 0xa41   : > { %2727 = vmax.xlane.f32.xlu0 %v2726_v27 }
 0xa44   : > { %4523 = vmatmul.msk.f32.gmra.mxu1 %vm1584_vm14, %v2876_v19 }
 0xa45   : > { %v2697_v28 = vpop.f32.mrf.mxu3 }
 0xa46   : > { %v6129_v30 = vmul.f32 0.17677669, %v2697_v28 }
 0xa48   : > { %v2729_v16 = vsel %vm938_vm0, %v6129_v30, -inf }
 0xa49   : > { %2730 = vmax.xlane.f32.xlu2 %v2729_v16 }
 0xa4c   : > { %4524 = vmatmul.msk.f32.gmra.mxu1 %vm1584_vm14, %v2878_v53 }
 0xa4d   : > { %v2700_v63 = vpop.f32.mrf.mxu3 }
 0xa4e   : > { %v6134_v39 = vmul.f32 0.17677669, %v2700_v63 }
 0xa50   : > { %v2732_v47 = vsel %vm938_vm0, %v6134_v39, -inf }
 0xa51   : > { %2733 = vmax.xlane.f32.xlu2 %v2732_v47 }
 0xa54   : > { %4525 = vmatmul.msk.f32.gmra.mxu1 %vm1584_vm14, %v2880_v52 }
 0xa55   : > { %v2703_v8 = vpop.f32.mrf.mxu3 }
 0xa56   : > { %v6139_v33 = vmul.f32 0.17677669, %v2703_v8 }
 0xa58   : > { %v2735_v36 = vsel %vm938_vm0, %v6139_v33, -inf }
 0xa59   : > { %2736 = vmax.xlane.f32.xlu1 %v2735_v36 }
 0xa5d   : > { %v2706_v50 = vpop.f32.mrf.mxu3 }
 0xa5e   : > { %v6168_v21 = vmul.f32 0.17677669, %v2706_v50 }
 0xa65   : > { %v2709_v63 = vpop.f32.mrf.mxu3 }
 0xa66   : > { %v6186_v47 = vmul.f32 0.17677669, %v2709_v63 }
 0xa99   : > { %v2946_v56 = vpop.f32.mrf.mxu1 }
 0xa9a   : > { %v2970_v2 = vmul.f32 0.17677669, %v2946_v56 }
 0xa9c   : > { %v2978_v20 = vsel %vm938_vm0, %v2970_v2, -inf }
 0xa9d   : > { %2979 = vmax.xlane.f32.xlu0 %v2978_v20 }
 0xaa1   : > { %v2949_v48 = vpop.f32.mrf.mxu1 }
 0xaa2   : > { %v2971_v55 = vmul.f32 0.17677669, %v2949_v48 }
 0xaa4   : > { %v2981_v40 = vsel %vm938_vm0, %v2971_v55, -inf  ;;  %v6180_v29 = vpop.xlane.xlu1 %2721 }
 0xaa5   : > { %2982 = vmax.xlane.f32.xlu2 %v2981_v40 }
 0xaa9   : > { %v2952_v44 = vpop.f32.mrf.mxu1 }
 0xaaa   : > { %v2972_v54 = vmul.f32 0.17677669, %v2952_v44 }
 0xaac   : > { %v2984_v18 = vsel %vm938_vm0, %v2972_v54, -inf  ;;  %v2725_v61 = vpop.xlane.xlu0 %2724 }
 0xaad   : > { %2985 = vmax.xlane.f32.xlu2 %v2984_v18  ;;  %v2745_v5 = vsub.f32 %v2713_v22, %v2725_v61 }
 0xaaf   : > { %v2754_v60 = vmul.f32 1.442695, %v2745_v5 }
 0xab1   : > { %v2955_v24 = vpop.f32.mrf.mxu1  ;;  %4995 = vpow2.f32 %v2754_v60 }
 0xab2   : > { %v6146_v45 = vmul.f32 0.17677669, %v2955_v24 }
 0xab4   : > { %v2987_v3 = vsel %vm938_vm0, %v6146_v45, -inf  ;;  %v2728_v7 = vpop.xlane.xlu0 %2727 }
 0xab5   : > { %2988 = vmax.xlane.f32.xlu1 %v2987_v3 }
 0xab7   : > { %v6176_v26 = vpop.eup %4995 }
 0xab8   : > { %v2771_v12 = vsel %vm938_vm0, %v6176_v26, 0.0 }
 0xab9   : > { %v2958_v6 = vpop.f32.mrf.mxu1 }
 0xaba   : > { %v6150_v59 = vmul.f32 0.17677669, %v2958_v6 }
 0xabc   : > { %v2990_v62 = vsel %vm938_vm0, %v6150_v59, -inf  ;;  %v2731_v43 = vpop.xlane.xlu2 %2730 }
 0xabd   : > { %2991 = vmax.xlane.f32.xlu1 %v2990_v62 }
 0xac1   : > { %v2961_v38 = vpop.f32.mrf.mxu1 }
 0xac2   : > { %v6154_v31 = vmul.f32 0.17677669, %v2961_v38 }
 0xac4   : > { %v2993_v1 = vsel %vm938_vm0, %v6154_v31, -inf  ;;  %v2734_v17 = vpop.xlane.xlu2 %2733 }
 0xac5   : > { %2994 = vmax.xlane.f32.xlu0 %v2993_v1  ;;  %3076 = vrot.lane.b32.xlu2 %v6082_v9, %s6747_s3  ;;  %v2748_v1 = vsub.f32 %v6134_v39, %v2734_v17 }
 0xac9   : > { %v2964_v11 = vpop.f32.mrf.mxu1 }
 0xaca   : > { %v6170_v9 = vmul.f32 0.17677669, %v2964_v11  ;;  %v2760_v11 = vmul.f32 1.442695, %v2748_v1 }
 0xacc   : > { %v6188_v52 = vpop.xlane.xlu1 %2736 }
 0xad1   : > { %v2967_v15 = vpop.f32.mrf.mxu1 }
 0xad2   : > { %v6164_v46 = vmul.f32 0.17677669, %v2967_v15 }
 0xad4   : > { %v2999_v4 = vsel %vm938_vm0, %v6164_v46, -inf }
 0xad6   : > { %3080 = vrot.lane.b32.xlu1 %v6072_v32, %s6747_s3  ;;  %v2738_v32 = vsel %vm938_vm0, %v6168_v21, -inf }
 0xad9   : > { %3078 = vrot.lane.b32.xlu0 %v6078_v35, %s6747_s3  ;;  %v2996_v35 = vsel %vm938_vm0, %v6170_v9, -inf }
 0xaee   : > { %3000 = vmax.xlane.f32.xlu2 %v2999_v4 }
 0xb00   : > { %2739 = vmax.xlane.f32.xlu1 %v2738_v32 }
 0xb03   : > { %2997 = vmax.xlane.f32.xlu0 %v2996_v35 }
 0xb08   : > { %2772 = vadd.xlane.f32.xlu1 %v2771_v12 }
 0xb10   : > { %v2980_v22 = vpop.xlane.xlu0 %2979 }
 0xb11   : > { %v3002_v23 = vsub.f32 %v2970_v2, %v2980_v22  ;;  %v2746_v2 = vsub.f32 %v6124_v25, %v2728_v7 }
 0xb13   : > { %v3010_v13 = vmul.f32 1.442695, %v3002_v23  ;;  %v2756_v40 = vmul.f32 1.442695, %v2746_v2 }
 0xb15   : > { %4997 = vpow2.f32 %v3010_v13 }
 0xb18   : > { %v2983_v27 = vpop.xlane.xlu2 %2982 }
 0xb19   : > { %v3003_v19 = vsub.f32 %v2971_v55, %v2983_v27  ;;  %v2741_v55 = vsel %vm938_vm0, %v6186_v47, -inf }
 0xb1b   : > { %v6182_v28 = vpop.eup %4997  ;;  %v3012_v16 = vmul.f32 1.442695, %v3003_v19 }
 0xb1c   : > { %v3026_v53 = vsel %vm938_vm0, %v6182_v28, 0.0 }
 0xb1d   : > { %4999 = vpow2.f32 %v3012_v16  ;;  %3027 = vadd.xlane.f32.xlu0 %v3026_v53  ;;  %v2749_v16 = vsub.f32 %v6139_v33, %v6188_v52 }
 0xb20   : > { %v2986_v8 = vpop.xlane.xlu2 %2985 }
 0xb21   : > { %v3004_v36 = vsub.f32 %v2972_v54, %v2986_v8  ;;  %v2747_v54 = vsub.f32 %v6129_v30, %v2731_v43 }
 0xb23   : > { %v6190_v56 = vpop.eup %4999  ;;  %v3014_v20 = vmul.f32 1.442695, %v3004_v36  ;;  %v2758_v6 = vmul.f32 1.442695, %v2747_v54 }
 0xb24   : > { %v3029_v48 = vsel %vm938_vm0, %v6190_v56, 0.0 }
 0xb25   : > { %5001 = vpow2.f32 %v3014_v20  ;;  %3030 = vadd.xlane.f32.xlu2 %v3029_v48  ;;  %2742 = vmax.xlane.f32.xlu0 %v2741_v55 }
 0xb26   : > { %5003 = vpow2.f32 %v2756_v40 }
 0xb28   : > { %v2989_v44 = vpop.xlane.xlu1 %2988  ;;  %v3077_v7 = vpop.permute.xlu2 %3076 }
 0xb29   : > { %v3005_v18 = vsub.f32 %v6146_v45, %v2989_v44 }
 0xb2b   : > { %v6198_v24 = vpop.eup %5001  ;;  %v3016_v25 = vmul.f32 1.442695, %v3005_v18 }
 0xb2c   : > { %v3032_v3 = vsel %vm938_vm0, %v6198_v24, 0.0  ;;  %v6203_v62 = vpop.eup %5003 }
 0xb2d   : > { %5005 = vpow2.f32 %v3016_v25  ;;  %3033 = vadd.xlane.f32.xlu0 %v3032_v3  ;;  %v2774_v30 = vsel %vm938_vm0, %v6203_v62, 0.0 }
 0xb2e   : > { %5007 = vpow2.f32 %v2758_v6 }
 0xb2f   : > { %5009 = vpow2.f32 %v2760_v11 }
 0xb30   : > { %v2992_v39 = vpop.xlane.xlu1 %2991 }
 0xb31   : > { %v3006_v22 = vsub.f32 %v6150_v59, %v2992_v39 }
 0xb33   : > { %v6205_v38 = vpop.eup %5005  ;;  %v3018_v23 = vmul.f32 1.442695, %v3006_v22 }
 0xb34   : > { %v3035_v45 = vsel %vm938_vm0, %v6205_v38, 0.0  ;;  %v6212_v4 = vpop.eup %5007 }
 0xb35   : > { %3036 = vadd.xlane.f32.xlu1 %v3035_v45  ;;  %2775 = vadd.xlane.f32.xlu0 %v2774_v30  ;;  %v2777_v50 = vsel %vm938_vm0, %v6212_v4, 0.0  ;;  %v6219_v60 = vpop.eup %5009 }
 0xb36   : > { %v2780_v35 = vsel %vm938_vm0, %v6219_v60, 0.0 }
 0xb38   : > { %v2995_v15 = vpop.xlane.xlu0 %2994 }
 0xb39   : > { %v3007_v61 = vsub.f32 %v6154_v31, %v2995_v15 }
 0xb3b   : > { %v3020_v5 = vmul.f32 1.442695, %v3007_v61 }
 0xb3d   : > { %5011 = vpow2.f32 %v3020_v5  ;;  %3074 = vrot.lane.b32.xlu2 %v6088_v41, %s6747_s3  ;;  %2778 = vadd.xlane.f32.xlu1 %v2777_v50  ;;  %v2744_v41 = vsub.f32 %v6117_v49, %v6180_v29  ;;  %v2762_v49 = vmul.f32 1.442695, %v2749_v16  ;;  %s6749_s3 = sld [smem:[#allocation14_spill]] }
 0xb3f   : > { %v2752_v17 = vmul.f32 1.442695, %v2744_v41 }
 0xb41   : > { %5013 = vpow2.f32 %v2752_v17 }
 0xb42   : > { %5015 = vpow2.f32 %v3018_v23 }
 0xb43   : > { %v6221_v32 = vpop.eup %5011 }
 0xb44   : > { %v3041_v31 = vsel %vm938_vm0, %v6221_v32, 0.0 }
 0xb45   : > { %2781 = vadd.xlane.f32.xlu1 %v2780_v35  ;;  %3042 = vadd.xlane.f32.xlu0 %v3041_v31 }
 0xb47   : > { %v6230_v27 = vpop.eup %5013 }
 0xb48   : > { %v3081_v43 = vpop.permute.xlu1 %3080  ;;  %v2768_v63 = vsel %vm938_vm0, %v6230_v27, 0.0  ;;  %v6237_v29 = vpop.eup %5015 }
 0xb49   : > { %3102 = vmatpush.bf16.msra.mxu2 %v3081_v43 }
 0xb4b   : > { %v3079_v12 = vpop.permute.xlu0 %3078 }
 0xb4d   : > { %3103 = vmatpush.bf16.msra.mxu2 %v3079_v12 }
 0xb51   : > { %3104 = vmatpush.bf16.msra.mxu2 %v3077_v7 }
 0xb61   : > { %v3001_v13 = vpop.xlane.xlu2 %3000 }
 0xb62   : > { %v3009_v19 = vsub.f32 %v6164_v46, %v3001_v13  ;;  %v3038_v46 = vsel %vm938_vm0, %v6237_v29, 0.0 }
 0xb64   : > { %v3024_v53 = vmul.f32 1.442695, %v3009_v19 }
 0xb66   : > { %5017 = vpow2.f32 %v3024_v53  ;;  %2769 = vadd.xlane.f32.xlu2 %v2768_v63 }
 0xb67   : > { %5019 = vpow2.f32 %v2762_v49 }
 0xb6c   : > { %v6239_v59 = vpop.eup %5017 }
 0xb6d   : > { %v3047_v8 = vsel %vm938_vm0, %v6239_v59, 0.0  ;;  %v6245_v33 = vpop.eup %5019 }
 0xb6e   : > { %3048 = vadd.xlane.f32.xlu1 %v3047_v8  ;;  %3039 = vadd.xlane.f32.xlu2 %v3038_v46  ;;  %v2783_v2 = vsel %vm938_vm0, %v6245_v33, 0.0 }
 0xb73   : > { %v2740_v52 = vpop.xlane.xlu1 %2739 }
 0xb74   : > { %v2750_v36 = vsub.f32 %v6168_v21, %v2740_v52 }
 0xb76   : > { %v2764_v20 = vmul.f32 1.442695, %v2750_v36  ;;  %v2998_v48 = vpop.xlane.xlu0 %2997  ;;  %2784 = vadd.xlane.f32.xlu2 %v2783_v2 }
 0xb77   : > { %v3008_v55 = vsub.f32 %v6170_v9, %v2998_v48 }
 0xb78   : > { %5021 = vpow2.f32 %v2764_v20 }
 0xb79   : > { %v3022_v40 = vmul.f32 1.442695, %v3008_v55 }
 0xb7b   : > { %5023 = vpow2.f32 %v3022_v40  ;;  %v2773_v11 = vpop.xlane.xlu1 %2772 }
 0xb7e   : > { %v6251_v44 = vpop.eup %5021 }
 0xb7f   : > { %v2786_v18 = vsel %vm938_vm0, %v6251_v44, 0.0 }
 0xb80   : > { %2787 = vadd.xlane.f32.xlu2 %v2786_v18 }
 0xb81   : > { %v6255_v54 = vpop.eup %5023 }
 0xb82   : > { %v3044_v21 = vsel %vm938_vm0, %v6255_v54, 0.0 }
 0xb83   : > { %3045 = vadd.xlane.f32.xlu0 %v3044_v21 }
 0xb90   : > { %v3028_v25 = vpop.xlane.xlu0 %3027 }
 0xb91   : > { %5025 = vrcp.f32 %v3028_v25 }
 0xb97   : > { %v5026_v45 = vpop.eup %5025 }
 0xb98   : > { %v3031_v3 = vpop.xlane.xlu2 %3030  ;;  %v2743_v6 = vpop.xlane.xlu0 %2742  ;;  %v3058_v15 = vmul.f32 %v5026_v45, %v6182_v28  ;;  %v4763_v45 = vld [vmem:[%s6748_s1 + $0x18] sm:$0xff] }
 0xb99   : > { %5027 = vrcp.f32 %v3031_v3  ;;  %v2751_v9 = vsub.f32 %v6186_v47, %v2743_v6  ;;  %3166 = vmatpush.bf16.msra.mxu3 %v4763_v45 }
 0xb9b   : > { %v2766_v1 = vmul.f32 1.442695, %v2751_v9 }
 0xb9d   : > { %5029 = vpow2.f32 %v2766_v1 }
 0xb9f   : > { %v5028_v30 = vpop.eup %5027 }
 0xba0   : > { %v3059_v61 = vmul.f32 %v5028_v30, %v6190_v56  ;;  %v3075_v5 = vpop.permute.xlu2 %3074  ;;  %v3034_v35 = vpop.xlane.xlu0 %3033  ;;  %v4762_v30 = vld [vmem:[%s6748_s1 + $0x10] sm:$0xff] }
 0xba1   : > { %3105 = vmatpush.bf16.msra.mxu2 %v3075_v5  ;;  %5031 = vrcp.f32 %v3034_v35  ;;  %3167 = vmatpush.bf16.msra.mxu3 %v4762_v30  ;;  %v4761_v5 = vld [vmem:[%s6748_s1 + $0x8] sm:$0xff] }
 0xba2   : > { %v3066_v50 = vpack.c.bf16 %v3059_v61, %v3058_v15  ;;  %3219 = vmatpush.bf16.msra.mxu0 %v4761_v5 }
 0xba3   : > { %v6262_v39 = vpop.eup %5029 }
 0xba4   : > { %4526 = vmatmul.msk.bf16.vlgmr.msra.gmra.mxu2 %vm938_vm0, %v3066_v50  ;;  %v2789_v47 = vsel %vm938_vm0, %v6262_v39, 0.0 }
 0xba5   : > { %2790 = vadd.xlane.f32.xlu0 %v2789_v47 }
 0xba7   : > { %v5032_v43 = vpop.eup %5031 }
 0xba8   : > { %v3037_v31 = vpop.xlane.xlu1 %3036  ;;  %v3060_v28 = vmul.f32 %v5032_v43, %v6198_v24  ;;  %v2776_v41 = vpop.xlane.xlu0 %2775 }
 0xba9   : > { %5033 = vrcp.f32 %v3037_v31 }
 0xbaa   : > { %5035 = vrcp.f32 %v2773_v11 }
 0xbaf   : > { %v5034_v12 = vpop.eup %5033 }
 0xbb0   : > { %v3061_v56 = vmul.f32 %v5034_v12, %v6205_v38  ;;  %v5036_v23 = vpop.eup %5035  ;;  %v2779_v19 = vpop.xlane.xlu1 %2778 }
 0xbb1   : > { %v2801_v16 = vmul.f32 %v5036_v23, %v6176_v26 }
 0xbb2   : > { %v3067_v7 = vpack.c.bf16 %v3061_v56, %v3060_v28  ;;  %v4760_v28 = vld [vmem:[%s6748_s1] sm:$0xff]  ;;  %s6751_s1 = sld [smem:[#allocation19_spill]] }
 0xbb3   : > { %3220 = vmatpush.bf16.msra.mxu0 %v4760_v28 }
 0xbb4   : > { %4527 = vmatmul.msk.bf16.gmra.mxu2 %vm938_vm0, %v3067_v7 }
 0xbb8   : > { %v3043_v22 = vpop.xlane.xlu0 %3042  ;;  %v2782_v52 = vpop.xlane.xlu1 %2781 }
 0xbd9   : > { %v2770_v17 = vpop.xlane.xlu2 %2769 }
 0xbda   : > { %5037 = vrcp.f32 %v2770_v17 }
 0xbdb   : > { %5039 = vrcp.f32 %v3043_v22 }
 0xbe0   : > { %v5038_v13 = vpop.eup %5037 }
 0xbe1   : > { %v2800_v53 = vmul.f32 %v5038_v13, %v6230_v27  ;;  %v3040_v63 = vpop.xlane.xlu2 %3039  ;;  %v5040_v38 = vpop.eup %5039 }
 0xbe2   : > { %5041 = vrcp.f32 %v3040_v63  ;;  %v3063_v8 = vmul.f32 %v5040_v38, %v6221_v32  ;;  %v3049_v48 = vpop.xlane.xlu1 %3048 }
 0xbe3   : > { %v2808_v24 = vpack.c.bf16 %v2801_v16, %v2800_v53  ;;  %5043 = vrcp.f32 %v2779_v19 }
 0xbe4   : > { %5045 = vrcp.f32 %v2776_v41 }
 0xbe5   : > { %4506 = vmatmul.msk.bf16.vlgmr.msrb.gmra.mxu0 %vm938_vm0, %v2808_v24  ;;  %5047 = vrcp.f32 %v3049_v48 }
 0xbe8   : > { %v5042_v49 = vpop.eup %5041 }
 0xbe9   : > { %v3062_v46 = vmul.f32 %v5042_v49, %v6237_v29  ;;  %v5044_v2 = vpop.eup %5043  ;;  %v2785_v55 = vpop.xlane.xlu2 %2784 }
 0xbea   : > { %v5046_v26 = vpop.eup %5045  ;;  %v2803_v27 = vmul.f32 %v5044_v2, %v6212_v4  ;;  %5049 = vrcp.f32 %v2785_v55 }
 0xbeb   : > { %v3068_v36 = vpack.c.bf16 %v3063_v8, %v3062_v46  ;;  %v2802_v20 = vmul.f32 %v5046_v26, %v6203_v62  ;;  %v5048_v29 = vpop.eup %5047 }
 0xbec   : > { %v3065_v4 = vmul.f32 %v5048_v29, %v6239_v59 }
 0xbed   : > { %4528 = vmatmul.msk.bf16.gmra.mxu2 %vm938_vm0, %v3068_v36  ;;  %v2809_v40 = vpack.c.bf16 %v2803_v27, %v2802_v20  ;;  %v4890_v36 = vld [vmem:[%s6749_s3] ss:$0 sm:$0xff]  ;;  %s6750_s3 = sld [smem:[#allocation17_spill]] }
 0xbf0   : > { %v5050_v18 = vpop.eup %5049 }
 0xbf1   : > { %v2805_v3 = vmul.f32 %v5050_v18, %v6245_v33 }
 0xbf3   : > { %v2788_v11 = vpop.xlane.xlu2 %2787 }
 0xbf5   : > { %4507 = vmatmul.msk.bf16.gmra.mxu0 %vm938_vm0, %v2809_v40 }
 0xbf6   : > { %v3046_v32 = vpop.xlane.xlu0 %3045 }
 0xbf7   : > { %5051 = vrcp.f32 %v3046_v32 }
 0xbf8   : > { %5053 = vrcp.f32 %v2782_v52 }
 0xbf9   : > { %5055 = vrcp.f32 %v2788_v11 }
 0xbfd   : > { %v5052_v21 = vpop.eup %5051 }
 0xbfe   : > { %v5054_v25 = vpop.eup %5053  ;;  %v3064_v62 = vmul.f32 %v5052_v21, %v6255_v54 }
 0xbff   : > { %v2804_v9 = vmul.f32 %v5054_v25, %v6219_v60  ;;  %v5056_v54 = vpop.eup %5055 }
 0xc00   : > { %v3069_v6 = vpack.c.bf16 %v3065_v4, %v3064_v62  ;;  %v2806_v15 = vmul.f32 %v5056_v54, %v6251_v44 }
 0xc01   : > { %v2810_v1 = vpack.c.bf16 %v2805_v3, %v2804_v9 }
 0xc02   : > { %4529 = vmatmul.msk.bf16.gmra.mxu2 %vm938_vm0, %v3069_v6 }
 0xc05   : > { %4508 = vmatmul.msk.bf16.gmra.mxu0 %vm938_vm0, %v2810_v1 }
 0xc18   : > { %v2791_v59 = vpop.xlane.xlu0 %2790 }
 0xc19   : > { %5057 = vrcp.f32 %v2791_v59 }
 0xc1f   : > { %v5058_v33 = vpop.eup %5057 }
 0xc20   : > { %v2807_v60 = vmul.f32 %v5058_v33, %v6262_v39 }
 0xc22   : > { %v2811_v61 = vpack.c.bf16 %v2807_v60, %v2806_v15 }
 0xc24   : > { %4509 = vmatmul.msk.bf16.gmra.mxu0 %vm938_vm0, %v2811_v61 }
 0xc27   : > { %v3107_v50 = vpop.f32.mrf.mxu2 }
 0xc2f   : > { %v3109_v35 = vpop.f32.mrf.mxu2 }
 0xc30   : > { %v3127_v47 = vpack.c.bf16 %v3109_v35, %v3107_v50 }
 0xc32   : > { %4542 = vmatmul.msk.bf16.vlgmr.msra.gmra.mxu3 %vm1584_vm14, %v3127_v47 }
 0xc37   : > { %v3112_v31 = vpop.f32.mrf.mxu2 }
 0xc3f   : > { %v3114_v43 = vpop.f32.mrf.mxu2 }
 0xc40   : > { %v3128_v12 = vpack.c.bf16 %v3114_v43, %v3112_v31 }
 0xc42   : > { %4543 = vmatmul.msk.bf16.gmra.mxu3 %vm1584_vm14, %v3128_v12 }
 0xc62   : > { %v2837_v44 = vpop.f32.mrf.mxu0 }
 0xc6a   : > { %v2839_v56 = vpop.f32.mrf.mxu0 }
 0xc6b   : > { %v2857_v39 = vpack.c.bf16 %v2839_v56, %v2837_v44 }
 0xc6d   : > { %4554 = vmatmul.msk.bf16.vlgmr.msra.gmra.mxu0 %vm1584_vm14, %v2857_v39 }
 0xc70   : > { %v3117_v7 = vpop.f32.mrf.mxu2 }
 0xc72   : > { %v2842_v41 = vpop.f32.mrf.mxu0 }
 0xc78   : > { %v3119_v17 = vpop.f32.mrf.mxu2 }
 0xc79   : > { %v3129_v22 = vpack.c.bf16 %v3119_v17, %v3117_v7 }
 0xc7a   : > { %v2844_v23 = vpop.f32.mrf.mxu0 }
 0xc7b   : > { %v2858_v13 = vpack.c.bf16 %v2844_v23, %v2842_v41  ;;  %4544 = vmatmul.msk.bf16.gmra.mxu3 %vm1584_vm14, %v3129_v22 }
 0xc7d   : > { %4555 = vmatmul.msk.bf16.gmra.mxu0 %vm1584_vm14, %v2858_v13 }
 0xc82   : > { %v2847_v19 = vpop.f32.mrf.mxu0 }
 0xc85   : > { %v3122_v16 = vpop.f32.mrf.mxu2 }
 0xc8a   : > { %v2849_v53 = vpop.f32.mrf.mxu0 }
 0xc8b   : > { %v2859_v63 = vpack.c.bf16 %v2849_v53, %v2847_v19 }
 0xc8d   : > { %v3124_v24 = vpop.f32.mrf.mxu2  ;;  %4556 = vmatmul.msk.bf16.gmra.mxu0 %vm1584_vm14, %v2859_v63 }
 0xc8e   : > { %v3130_v38 = vpack.c.bf16 %v3124_v24, %v3122_v16 }
 0xc90   : > { %4545 = vmatmul.msk.bf16.gmra.mxu3 %vm1584_vm14, %v3130_v38 }
 0xca1   : > { %v2852_v49 = vpop.f32.mrf.mxu0 }
 0xca9   : > { %v2854_v8 = vpop.f32.mrf.mxu0 }
 0xcaa   : > { %v2860_v46 = vpack.c.bf16 %v2854_v8, %v2852_v49 }
 0xcac   : > { %4557 = vmatmul.msk.bf16.gmra.mxu0 %vm1584_vm14, %v2860_v46 }
 0xcb5   : > { %v3169_v52 = vpop.f32.mrf.mxu3 }
 0xcbd   : > { %v3171_v27 = vpop.f32.mrf.mxu3 }
 0xcc5   : > { %v3174_v18 = vpop.f32.mrf.mxu3 }
 0xccd   : > { %v3176_v6 = vpop.f32.mrf.mxu3 }
 0xcea   : > { %v3222_v2 = vpop.f32.mrf.mxu0 }
 0xceb   : > { %v3223_v26 = vadd.f32 %v3222_v2, %v3169_v52 }
 0xced   : > { %v3246_v20 = vadd.f32 %v4890_v36, %v3223_v26 }
 0xcef   : > { %v6302_v48 = vadd.f32 %v3246_v20, %v5905_v10 }
 0xcf1   : > { %v3262_v55 = vsel %vm938_vm0, %v6302_v48, 0.0 }
 0xcf2   : > { %v3224_v40 = vpop.f32.mrf.mxu0  ;;  %3263 = vadd.xlane.f32.xlu1 %v3262_v55 }
 0xcf3   : > { %v3225_v32 = vadd.f32 %v3224_v40, %v3171_v27 }
 0xcf5   : > { %v3247_v29 = vadd.f32 %v4890_v36, %v3225_v32 }
 0xcf7   : > { %v6307_v21 = vadd.f32 %v3247_v29, %v5910_v57 }
 0xcf9   : > { %v3265_v25 = vsel %vm938_vm0, %v6307_v21, 0.0 }
 0xcfa   : > { %v3227_v4 = vpop.f32.mrf.mxu0  ;;  %3266 = vadd.xlane.f32.xlu2 %v3265_v25 }
 0xcfb   : > { %v3228_v62 = vadd.f32 %v3227_v4, %v3174_v18 }
 0xcfd   : > { %v3248_v3 = vadd.f32 %v4890_v36, %v3228_v62 }
 0xcfe   : > { %v3179_v11 = vpop.f32.mrf.mxu3 }
 0xcff   : > { %v6312_v10 = vadd.f32 %v3248_v3, %v5915_v37 }
 0xd01   : > { %v3268_v9 = vsel %vm938_vm0, %v6312_v10, 0.0 }
 0xd02   : > { %v3229_v1 = vpop.f32.mrf.mxu0  ;;  %3269 = vadd.xlane.f32.xlu0 %v3268_v9 }
 0xd03   : > { %v3230_v45 = vadd.f32 %v3229_v1, %v3176_v6 }
 0xd05   : > { %v3249_v30 = vadd.f32 %v4890_v36, %v3230_v45 }
 0xd06   : > { %v3181_v61 = vpop.f32.mrf.mxu3 }
 0xd07   : > { %v6317_v57 = vadd.f32 %v3249_v30, %v5920_v58 }
 0xd09   : > { %v3271_v59 = vsel %vm938_vm0, %v6317_v57, 0.0 }
 0xd0a   : > { %v3232_v54 = vpop.f32.mrf.mxu0  ;;  %3272 = vadd.xlane.f32.xlu1 %v3271_v59  ;;  %v4584_v59 = vld [vmem:[%s6750_s3 + $0x30] sm:$0xf] }
 0xd0b   : > { %v3233_v33 = vadd.f32 %v3232_v54, %v3179_v11  ;;  %v4771_v54 = vld [vmem:[%s6750_s3 + $0x34] sm:$0xf0] }
 0xd0d   : > { %v3250_v37 = vadd.f32 %v4890_v36, %v3233_v33  ;;  %v4770_v33 = vld [vmem:[%s6750_s3 + $0x34] sm:$0xf] }
 0xd0f   : > { %v6322_v15 = vadd.f32 %v3250_v37, %v5925_v51  ;;  %v4585_v37 = vor.u32 %v4771_v54, %v4584_v59  ;;  %v4602_v59 = vld [vmem:[%s6751_s1 + $0x8] sm:$0xf0] }
 0xd11   : > { %v3274_v60 = vsel %vm938_vm0, %v6322_v15, 0.0  ;;  %3536 = vmatpush.bf16.msra.mxu1 %v4585_v37 }
 0xd12   : > { %v3234_v5 = vpop.f32.mrf.mxu0  ;;  %3275 = vadd.xlane.f32.xlu2 %v3274_v60  ;;  %v4586_v60 = vld [vmem:[%s6750_s3 + $0x38] sm:$0xf0] }
 0xd13   : > { %v3235_v50 = vadd.f32 %v3234_v5, %v3181_v61  ;;  %v3184_v31 = vpop.f32.mrf.mxu3  ;;  %v4624_v61 = vld [vmem:[%s6751_s1 + $0x30] sm:$0xf]  ;;  %v4779_v5 = vld [vmem:[%s6751_s1 + $0x34] sm:$0xf0] }
 0xd15   : > { %v3251_v58 = vadd.f32 %v4890_v36, %v3235_v50  ;;  %v4589_v50 = vor.u32 %v4770_v33, %v4586_v60 }
 0xd17   : > { %v6327_v35 = vadd.f32 %v3251_v58, %v5930_v0  ;;  %v4625_v58 = vor.u32 %v4779_v5, %v4624_v61  ;;  %3565 = vmatpush.bf16.msrb.mxu2 %v4589_v50 }
 0xd19   : > { %v3277_v47 = vsel %vm938_vm0, %v6327_v35, 0.0  ;;  %3648 = vmatpush.bf16.msrb.mxu3 %v4625_v58 }
 0xd1a   : > { %3278 = vadd.xlane.f32.xlu0 %v3277_v47  ;;  %v4778_v47 = vld [vmem:[%s6751_s1 + $0x34] sm:$0xf] }
 0xd1b   : > { %v3186_v7 = vpop.f32.mrf.mxu3 }
 0xd29   : > { %v3237_v43 = vpop.f32.mrf.mxu0 }
 0xd2a   : > { %v3238_v12 = vadd.f32 %v3237_v43, %v3184_v31  ;;  %v4626_v31 = vld [vmem:[%s6751_s1 + $0x38] sm:$0xf0] }
 0xd2b   : > { %v4629_v43 = vor.u32 %v4778_v47, %v4626_v31 }
 0xd2c   : > { %v3252_v51 = vadd.f32 %v4890_v36, %v3238_v12  ;;  %v4576_v12 = vld [vmem:[%s6750_s3 + $0x20] sm:$0xf] }
 0xd2d   : > { %3677 = vmatpush.bf16.msrb.mxu0 %v4629_v43 }
 0xd2e   : > { %v6332_v28 = vadd.f32 %v3252_v51, %v5935_v14  ;;  %v4769_v51 = vld [vmem:[%s6750_s3 + $0x24] sm:$0xf0] }
 0xd30   : > { %v3280_v44 = vsel %vm938_vm0, %v6332_v28, 0.0 }
 0xd31   : > { %3281 = vadd.xlane.f32.xlu0 %v3280_v44  ;;  %v3239_v56 = vpop.f32.mrf.mxu0  ;;  %v4768_v44 = vld [vmem:[%s6750_s3 + $0x24] sm:$0xf] }
 0xd32   : > { %v3240_v41 = vadd.f32 %v3239_v56, %v3186_v7  ;;  %v4577_v56 = vor.u32 %v4769_v51, %v4576_v12  ;;  %v4777_v7 = vld [vmem:[%s6751_s1 + $0x24] sm:$0xf0] }
 0xd34   : > { %v3253_v23 = vadd.f32 %v4890_v36, %v3240_v41  ;;  %3537 = vmatpush.bf16.msra.mxu1 %v4577_v56 }
 0xd36   : > { %v6345_v16 = vadd.f32 %v3253_v23, %v5951_v34  ;;  %v4776_v23 = vld [vmem:[%s6751_s1 + $0x24] sm:$0xf] }
 0xd38   : > { %v3283_v38 = vsel %vm938_vm0, %v6345_v16, 0.0 }
 0xd65   : > { %v3264_v39 = vpop.xlane.xlu1 %3263 }
 0xd66   : > { %v3286_v0 = vmul.f32 %v3264_v39, %v5450_v42  ;;  %v4578_v39 = vld [vmem:[%s6750_s3 + $0x28] sm:$0xf0] }
 0xd67   : > { %v4581_v41 = vor.u32 %v4768_v44, %v4578_v39 }
 0xd68   : > { %v6338_v17 = vsub.f32 %v6302_v48, %v3286_v0  ;;  %v4616_v0 = vld [vmem:[%s6751_s1 + $0x20] sm:$0xf] }
 0xd69   : > { %3566 = vmatpush.bf16.msrb.mxu2 %v4581_v41 }
 0xd6a   : > { %v3302_v22 = vmul.f32 %v6338_v17, %v6338_v17 }
 0xd6c   : > { %v3310_v14 = vsel %vm938_vm0, %v3302_v22, 0.0  ;;  %v4617_v22 = vor.u32 %v4777_v7, %v4616_v0 }
 0xd6d   : > { %v3267_v13 = vpop.xlane.xlu2 %3266  ;;  %3311 = vadd.xlane.f32.xlu1 %v3310_v14  ;;  %v4618_v14 = vld [vmem:[%s6751_s1 + $0x28] sm:$0xf0] }
 0xd6e   : > { %v3287_v19 = vmul.f32 %v3267_v13, %v5450_v42  ;;  %v4621_v13 = vor.u32 %v4776_v23, %v4618_v14  ;;  %3649 = vmatpush.bf16.msrb.mxu3 %v4617_v22 }
 0xd70   : > { %v6348_v53 = vsub.f32 %v6307_v21, %v3287_v19  ;;  %v4568_v19 = vld [vmem:[%s6750_s3 + $0x10] sm:$0xf]  ;;  %3678 = vmatpush.bf16.msrb.mxu0 %v4621_v13 }
 0xd72   : > { %v3303_v63 = vmul.f32 %v6348_v53, %v6348_v53 }
 0xd74   : > { %v3313_v24 = vsel %vm938_vm0, %v3303_v63, 0.0  ;;  %v4767_v63 = vld [vmem:[%s6750_s3 + $0x14] sm:$0xf0] }
 0xd75   : > { %v3270_v49 = vpop.xlane.xlu0 %3269  ;;  %3314 = vadd.xlane.f32.xlu2 %v3313_v24  ;;  %3284 = vadd.xlane.f32.xlu1 %v3283_v38  ;;  %v4766_v24 = vld [vmem:[%s6750_s3 + $0x14] sm:$0xf] }
 0xd76   : > { %v3288_v8 = vmul.f32 %v3270_v49, %v5450_v42  ;;  %v4569_v49 = vor.u32 %v4767_v63, %v4568_v19 }
 0xd78   : > { %v6357_v46 = vsub.f32 %v6312_v10, %v3288_v8  ;;  %v4570_v8 = vld [vmem:[%s6750_s3 + $0x18] sm:$0xf0]  ;;  %3538 = vmatpush.bf16.msra.mxu1 %v4569_v49 }
 0xd7a   : > { %v3304_v34 = vmul.f32 %v6357_v46, %v6357_v46 }
 0xd7c   : > { %v3316_v52 = vsel %vm938_vm0, %v3304_v34, 0.0  ;;  %v4608_v34 = vld [vmem:[%s6751_s1 + $0x10] sm:$0xf] }
 0xd7d   : > { %3317 = vadd.xlane.f32.xlu2 %v3316_v52  ;;  %v3273_v36 = vpop.xlane.xlu1 %3272  ;;  %v4775_v52 = vld [vmem:[%s6751_s1 + $0x14] sm:$0xf0] }
 0xd7e   : > { %v3289_v2 = vmul.f32 %v3273_v36, %v5450_v42 }
 0xd80   : > { %v6364_v26 = vsub.f32 %v6317_v57, %v3289_v2  ;;  %v4573_v2 = vor.u32 %v4766_v24, %v4570_v8 }
 0xd82   : > { %v3305_v27 = vmul.f32 %v6364_v26, %v6364_v26  ;;  %3567 = vmatpush.bf16.msrb.mxu2 %v4573_v2 }
 0xd84   : > { %v3319_v20 = vsel %vm938_vm0, %v3305_v27, 0.0  ;;  %v4609_v27 = vor.u32 %v4775_v52, %v4608_v34 }
 0xd85   : > { %v3276_v55 = vpop.xlane.xlu2 %3275  ;;  %3320 = vadd.xlane.f32.xlu0 %v3319_v20  ;;  %v4774_v20 = vld [vmem:[%s6751_s1 + $0x14] sm:$0xf] }
 0xd86   : > { %v3290_v40 = vmul.f32 %v3276_v55, %v5450_v42  ;;  %v4610_v55 = vld [vmem:[%s6751_s1 + $0x18] sm:$0xf0]  ;;  %3650 = vmatpush.bf16.msrb.mxu3 %v4609_v27 }
 0xd88   : > { %v6371_v32 = vsub.f32 %v6322_v15, %v3290_v40  ;;  %v4613_v40 = vor.u32 %v4774_v20, %v4610_v55 }
 0xd8a   : > { %v3306_v29 = vmul.f32 %v6371_v32, %v6371_v32  ;;  %3679 = vmatpush.bf16.msrb.mxu0 %v4613_v40 }
 0xd8c   : > { %v3322_v18 = vsel %vm938_vm0, %v3306_v29, 0.0 }
 0xd8d   : > { %v3279_v25 = vpop.xlane.xlu0 %3278  ;;  %3323 = vadd.xlane.f32.xlu1 %v3322_v18  ;;  %v4560_v18 = vld [vmem:[%s6750_s3] sm:$0xf] }
 0xd8e   : > { %v3291_v4 = vmul.f32 %v3279_v25, %v5450_v42  ;;  %v4765_v25 = vld [vmem:[%s6750_s3 + $0x4] sm:$0xf0] }
 0xd90   : > { %v6378_v62 = vsub.f32 %v6327_v35, %v3291_v4  ;;  %v4561_v4 = vor.u32 %v4765_v25, %v4560_v18 }
 0xd92   : > { %v3307_v3 = vmul.f32 %v6378_v62, %v6378_v62  ;;  %3539 = vmatpush.bf16.msra.mxu1 %v4561_v4 }
 0xd94   : > { %v3325_v6 = vsel %vm938_vm0, %v3307_v3, 0.0  ;;  %v4764_v3 = vld [vmem:[%s6750_s3 + $0x4] sm:$0xf] }
 0xd95   : > { %3326 = vadd.xlane.f32.xlu2 %v3325_v6  ;;  %v4562_v6 = vld [vmem:[%s6750_s3 + $0x8] sm:$0xf0]  ;;  %s6753_s3 = sld [smem:[#allocation16_spill]] }
 0xd9b   : > { %v6438_v55 = vld [vmem:[%s6753_s3] ss:$0 sm:$0xff]  ;;  %s6755_s3 = sld [smem:[#allocation20_spill]] }
 0xda4   : > { %v3282_v9 = vpop.xlane.xlu0 %3281 }
 0xda5   : > { %v3292_v1 = vmul.f32 %v3282_v9, %v5450_v42  ;;  %v4600_v9 = vld [vmem:[%s6751_s1] sm:$0xf] }
 0xda7   : > { %v6385_v45 = vsub.f32 %v6332_v28, %v3292_v1  ;;  %v4565_v1 = vor.u32 %v4764_v3, %v4562_v6 }
 0xda9   : > { %v3308_v30 = vmul.f32 %v6385_v45, %v6385_v45  ;;  %3568 = vmatpush.bf16.msrb.mxu2 %v4565_v1 }
 0xdab   : > { %v3328_v11 = vsel %vm938_vm0, %v3308_v30, 0.0  ;;  %v4773_v30 = vld [vmem:[%s6751_s1 + $0x4] sm:$0xf0] }
 0xdac   : > { %3329 = vadd.xlane.f32.xlu0 %v3328_v11  ;;  %v4772_v11 = vld [vmem:[%s6751_s1 + $0x4] sm:$0xf]  ;;  %v4601_v54 = vor.u32 %v4773_v30, %v4600_v9  ;;  %s6752_s1 = sld [smem:[#allocation15_spill]] }
 0xdad   : > { %v4605_v33 = vor.u32 %v4772_v11, %v4602_v59 }
 0xdae   : > { %3651 = vmatpush.bf16.msrb.mxu3 %v4601_v54 }
 0xdaf   : > { %3680 = vmatpush.bf16.msrb.mxu0 %v4605_v33 }
 0xdb2   : > { %v6434_v8 = vld [vmem:[%s6752_s1] ss:$0 sm:$0xff]  ;;  %s6754_s1 = sld [smem:[#allocation21_spill]] }
 0xde0   : > { %v3312_v38 = vpop.xlane.xlu1 %3311 }
 0xde1   : > { %v3334_v36 = vmul.f32 %v3312_v38, %v5450_v42 }
 0xde3   : > { %v3342_v29 = vadd.f32 1e-05, %v3334_v36 }
 0xde5   : > { %5059 = vrsqrt.f32 %v3342_v29  ;;  %vm3356_vm10 = vweird.f32 %v3342_v29 }
 0xde8   : > { %v3315_v37 = vpop.xlane.xlu2 %3314  ;;  %v3285_v60 = vpop.xlane.xlu1 %3284 }
 0xde9   : > { %v3335_v61 = vmul.f32 %v3315_v37, %v5450_v42  ;;  %v3293_v5 = vmul.f32 %v3285_v60, %v5450_v42 }
 0xdeb   : > { %v5060_v50 = vpop.eup %5059  ;;  %v3343_v58 = vadd.f32 1e-05, %v3335_v61  ;;  %v6426_v47 = vsub.f32 %v6345_v16, %v3293_v5 }
 0xdec   : > { %v3351_v31 = vmul.f32 %v5060_v50, %v3342_v29  ;;  %vm3357_vm14 = vweird.f32 %v5060_v50 }
 0xded   : > { %5061 = vrsqrt.f32 %v3343_v58  ;;  %v3309_v43 = vmul.f32 %v6426_v47, %v6426_v47  ;;  %vm3358_vm11 = vmor %vm3356_vm10, %vm3357_vm14  ;;  %vm3366_vm13 = vweird.f32 %v3343_v58 }
 0xdee   : > { %v3352_v12 = vmul.f32 %v5060_v50, %v3351_v31 }
 0xdef   : > { %v3331_v51 = vsel %vm938_vm0, %v3309_v43, 0.0 }
 0xdf0   : > { %v3353_v44 = vmul.f32 0.5, %v3352_v12  ;;  %v3318_v56 = vpop.xlane.xlu2 %3317  ;;  %3332 = vadd.xlane.f32.xlu1 %v3331_v51 }
 0xdf1   : > { %v3336_v39 = vmul.f32 %v3318_v56, %v5450_v42 }
 0xdf2   : > { %v3354_v0 = vsub.f32 1.5, %v3353_v44 }
 0xdf3   : > { %v5062_v7 = vpop.eup %5061  ;;  %v3344_v41 = vadd.f32 1e-05, %v3336_v39 }
 0xdf4   : > { %v3355_v22 = vmul.f32 %v5060_v50, %v3354_v0  ;;  %v3361_v23 = vmul.f32 %v5062_v7, %v3343_v58  ;;  %vm3367_vm12 = vweird.f32 %v5062_v7 }
 0xdf5   : > { %5063 = vrsqrt.f32 %v3344_v41  ;;  %vm3368_vm15 = vmor %vm3366_vm13, %vm3367_vm12  ;;  %vm3376_vm2 = vweird.f32 %v3344_v41 }
 0xdf6   : > { %v3362_v14 = vmul.f32 %v5062_v7, %v3361_v23  ;;  %v3359_v13 = vsel %vm3358_vm11, %v5060_v50, %v3355_v22 }
 0xdf7   : > { %v3430_v34 = vmul.f32 %v3359_v13, %v6338_v17 }
 0xdf8   : > { %v3363_v19 = vmul.f32 0.5, %v3362_v14  ;;  %v3321_v63 = vpop.xlane.xlu0 %3320 }
 0xdf9   : > { %v3337_v24 = vmul.f32 %v3321_v63, %v5450_v42  ;;  %v3442_v40 = vmul.f32 %v6434_v8, %v3430_v34 }
 0xdfa   : > { %v3364_v38 = vsub.f32 1.5, %v3363_v19 }
 0xdfb   : > { %v5064_v49 = vpop.eup %5063  ;;  %v3345_v52 = vadd.f32 1e-05, %v3337_v24  ;;  %v3454_v9 = vadd.f32 %v6438_v55, %v3442_v40 }
 0xdfc   : > { %v3365_v36 = vmul.f32 %v5062_v7, %v3364_v38  ;;  %v3371_v2 = vmul.f32 %v5064_v49, %v3344_v41  ;;  %vm3377_vm1 = vweird.f32 %v5064_v49 }
 0xdfd   : > { %5065 = vrsqrt.f32 %v3345_v52  ;;  %vm3378_vm3 = vmor %vm3376_vm2, %vm3377_vm1  ;;  %vm3386_vm5 = vweird.f32 %v3345_v52 }
 0xdfe   : > { %v3369_v27 = vsel %vm3368_vm15, %v5062_v7, %v3365_v36  ;;  %v3372_v20 = vmul.f32 %v5064_v49, %v3371_v2 }
 0xdff   : > { %v3431_v29 = vmul.f32 %v3369_v27, %v6348_v53 }
 0xe00   : > { %v3373_v18 = vmul.f32 0.5, %v3372_v20  ;;  %v3324_v25 = vpop.xlane.xlu1 %3323 }
 0xe01   : > { %v3443_v4 = vmul.f32 %v6434_v8, %v3431_v29  ;;  %v3338_v17 = vmul.f32 %v3324_v25, %v5450_v42 }
 0xe02   : > { %v3374_v3 = vsub.f32 1.5, %v3373_v18 }
 0xe03   : > { %v5066_v6 = vpop.eup %5065  ;;  %v3455_v1 = vadd.f32 %v6438_v55, %v3443_v4  ;;  %v3346_v30 = vadd.f32 1e-05, %v3338_v17 }
 0xe04   : > { %v3375_v11 = vmul.f32 %v5064_v49, %v3374_v3  ;;  %v3381_v59 = vmul.f32 %v5066_v6, %v3345_v52  ;;  %vm3387_vm4 = vweird.f32 %v5066_v6 }
 0xe05   : > { %v3462_v54 = vpack.c.bf16 %v3455_v1, %v3454_v9  ;;  %5067 = vrsqrt.f32 %v3346_v30  ;;  %vm3388_vm6 = vmor %vm3386_vm5, %vm3387_vm4  ;;  %vm3396_vm8 = vweird.f32 %v3346_v30 }
 0xe06   : > { %v3382_v53 = vmul.f32 %v5066_v6, %v3381_v59  ;;  %v3379_v33 = vsel %vm3378_vm3, %v5064_v49, %v3375_v11  ;;  %v4795_v11 = vld [vmem:[%s6754_s1 + $0x78] sm:$0xff] }
 0xe07   : > { %4590 = vmatmul.msk.bf16.vlgmr.msra.gmra.mxu1 %vm938_vm0, %v3462_v54  ;;  %4594 = vmatmul.msk.bf16.vlgmr.msrb.gmra.mxu2 %vm938_vm0, %v3462_v54  ;;  %v3432_v58 = vmul.f32 %v3379_v33, %v6357_v46  ;;  %v4794_v33 = vld [vmem:[%s6754_s1 + $0x70] sm:$0xff] }
 0xe08   : > { %v3383_v37 = vmul.f32 0.5, %v3382_v53  ;;  %4630 = vmatmul.msk.bf16.vlgmr.msrb.gmra.mxu3 %vm938_vm0, %v3462_v54  ;;  %4634 = vmatmul.msk.bf16.vlgmr.msrb.gmra.mxu0 %vm938_vm0, %v3462_v54  ;;  %v3327_v60 = vpop.xlane.xlu2 %3326 }
 0xe09   : > { %v3339_v61 = vmul.f32 %v3327_v60, %v5450_v42  ;;  %v3444_v39 = vmul.f32 %v6434_v8, %v3432_v58  ;;  %4031 = vmatpush.bf16.msra.mxu2 %v4795_v11  ;;  %v4787_v60 = vld [vmem:[%s6754_s1 + $0x38] sm:$0xff]  ;;  %v4786_v58 = vld [vmem:[%s6754_s1 + $0x30] sm:$0xff] }
 0xe0a   : > { %v3384_v5 = vsub.f32 1.5, %v3383_v37  ;;  %4002 = vmatpush.bf16.msrb.mxu1 %v4787_v60 }
 0xe0b   : > { %v5068_v50 = vpop.eup %5067  ;;  %v3347_v31 = vadd.f32 1e-05, %v3339_v61  ;;  %v3456_v23 = vadd.f32 %v6438_v55, %v3444_v39 }
 0xe0c   : > { %v3385_v43 = vmul.f32 %v5066_v6, %v3384_v5  ;;  %v3391_v12 = vmul.f32 %v5068_v50, %v3346_v30  ;;  %vm3397_vm7 = vweird.f32 %v5068_v50  ;;  %v4793_v5 = vld [vmem:[%s6754_s1 + $0x68] sm:$0xff] }
 0xe0d   : > { %5069 = vrsqrt.f32 %v3347_v31  ;;  %vm3398_vm9 = vmor %vm3396_vm8, %vm3397_vm7  ;;  %vm3406_vm10 = vweird.f32 %v3347_v31  ;;  %4032 = vmatpush.bf16.msra.mxu2 %v4794_v33 }
 0xe0e   : > { %v3389_v51 = vsel %vm3388_vm6, %v5066_v6, %v3385_v43  ;;  %v3392_v44 = vmul.f32 %v5068_v50, %v3391_v12  ;;  %4003 = vmatpush.bf16.msrb.mxu1 %v4786_v58  ;;  %v4792_v12 = vld [vmem:[%s6754_s1 + $0x60] sm:$0xff] }
 0xe0f   : > { %v3433_v56 = vmul.f32 %v3389_v51, %v6364_v26 }
 0xe10   : > { %v3393_v0 = vmul.f32 0.5, %v3392_v44  ;;  %v4785_v44 = vld [vmem:[%s6754_s1 + $0x28] sm:$0xff] }
 0xe11   : > { %v3445_v7 = vmul.f32 %v6434_v8, %v3433_v56  ;;  %4033 = vmatpush.bf16.msra.mxu2 %v4793_v5 }
 0xe12   : > { %v3394_v41 = vsub.f32 1.5, %v3393_v0  ;;  %4004 = vmatpush.bf16.msrb.mxu1 %v4785_v44  ;;  %v4791_v0 = vld [vmem:[%s6754_s1 + $0x58] sm:$0xff] }
 0xe13   : > { %v5070_v22 = vpop.eup %5069  ;;  %v3457_v46 = vadd.f32 %v6438_v55, %v3445_v7 }
 0xe14   : > { %v3395_v14 = vmul.f32 %v5068_v50, %v3394_v41  ;;  %v3401_v13 = vmul.f32 %v5070_v22, %v3347_v31  ;;  %vm3407_vm14 = vweird.f32 %v5070_v22 }
 0xe15   : > { %v3463_v19 = vpack.c.bf16 %v3457_v46, %v3456_v23  ;;  %vm3408_vm11 = vmor %vm3406_vm10, %vm3407_vm14  ;;  %4034 = vmatpush.bf16.msra.mxu2 %v4792_v12  ;;  %v3598_v23 = vld [vmem:[%s6755_s3] sm:$0x3]  ;;  %v4790_v46 = vld [vmem:[%s6754_s1 + $0x50] sm:$0xff]  ;;  %s6756_s3 = sld [smem:[#allocation18_spill]] }
 0xe16   : > { %v3402_v63 = vmul.f32 %v5070_v22, %v3401_v13  ;;  %v3399_v26 = vsel %vm3398_vm9, %v5068_v50, %v3395_v14 }
 0xe17   : > { %4591 = vmatmul.msk.bf16.gmra.mxu1 %vm938_vm0, %v3463_v19  ;;  %4595 = vmatmul.msk.bf16.gmra.mxu2 %vm938_vm0, %v3463_v19  ;;  %v3434_v49 = vmul.f32 %v3399_v26, %v6371_v32  ;;  %v4788_v26 = vld [vmem:[%s6754_s1 + $0x40] sm:$0xff] }
 0xe18   : > { %v3403_v24 = vmul.f32 0.5, %v3402_v63  ;;  %4631 = vmatmul.msk.bf16.gmra.mxu3 %vm938_vm0, %v3463_v19  ;;  %4635 = vmatmul.msk.bf16.gmra.mxu0 %vm938_vm0, %v3463_v19  ;;  %v4782_v19 = vld [vmem:[%s6754_s1 + $0x10] sm:$0xff] }
 0xe19   : > { %v3446_v2 = vmul.f32 %v6434_v8, %v3434_v49  ;;  %4035 = vmatpush.bf16.msra.mxu2 %v4791_v0  ;;  %v4781_v49 = vld [vmem:[%s6754_s1 + $0x8] sm:$0xff] }
 0xe1a   : > { %v3404_v38 = vsub.f32 1.5, %v3403_v24 }
 0xe1b   : > { %v3458_v20 = vadd.f32 %v6438_v55, %v3446_v2 }
 0xe1c   : > { %v3405_v34 = vmul.f32 %v5070_v22, %v3404_v38  ;;  %v6505_v38 = vperm.slane %v3598_v23, 0 }
 0xe1d   : > { %4036 = vmatpush.bf16.msra.mxu2 %v4790_v46 }
 0xe1e   : > { %v3409_v52 = vsel %vm3408_vm11, %v5070_v22, %v3405_v34 }
 0xe1f   : > { %v3435_v36 = vmul.f32 %v3409_v52, %v6378_v62  ;;  %v3330_v32 = vpop.xlane.xlu0 %3329 }
 0xe20   : > { %v3340_v62 = vmul.f32 %v3330_v32, %v5450_v42 }
 0xe21   : > { %v3447_v27 = vmul.f32 %v6434_v8, %v3435_v36 }
 0xe22   : > { %v3348_v18 = vadd.f32 1e-05, %v3340_v62 }
 0xe23   : > { %v3459_v40 = vadd.f32 %v6438_v55, %v3447_v27 }
 0xe24   : > { %5071 = vrsqrt.f32 %v3348_v18  ;;  %vm3416_vm13 = vweird.f32 %v3348_v18 }
 0xe25   : > { %v3464_v29 = vpack.c.bf16 %v3459_v40, %v3458_v20  ;;  %v4780_v20 = vld [vmem:[%s6754_s1] sm:$0xff] }
 0xe27   : > { %4592 = vmatmul.msk.bf16.gmra.mxu1 %vm938_vm0, %v3464_v29  ;;  %4596 = vmatmul.msk.bf16.gmra.mxu2 %vm938_vm0, %v3464_v29 }
 0xe28   : > { %4632 = vmatmul.msk.bf16.gmra.mxu3 %vm938_vm0, %v3464_v29  ;;  %4636 = vmatmul.msk.bf16.gmra.mxu0 %vm938_vm0, %v3464_v29 }
 0xe2a   : > { %v5072_v25 = vpop.eup %5071 }
 0xe2b   : > { %v3411_v4 = vmul.f32 %v5072_v25, %v3348_v18  ;;  %vm3417_vm12 = vweird.f32 %v5072_v25 }
 0xe2c   : > { %vm3418_vm15 = vmor %vm3416_vm13, %vm3417_vm12 }
 0xe2d   : > { %v3412_v17 = vmul.f32 %v5072_v25, %v3411_v4 }
 0xe2f   : > { %v3413_v1 = vmul.f32 0.5, %v3412_v17 }
 0xe31   : > { %v3414_v30 = vsub.f32 1.5, %v3413_v1 }
 0xe33   : > { %v3415_v54 = vmul.f32 %v5072_v25, %v3414_v30 }
 0xe63   : > { %v3333_v3 = vpop.xlane.xlu1 %3332 }
 0xe64   : > { %v3341_v6 = vmul.f32 %v3333_v3, %v5450_v42  ;;  %v3419_v42 = vsel %vm3418_vm15, %v5072_v25, %v3415_v54 }
 0xe65   : > { %v3436_v31 = vmul.f32 %v3419_v42, %v6385_v45  ;;  %v4784_v45 = vld [vmem:[%s6754_s1 + $0x20] sm:$0xff] }
 0xe66   : > { %v3349_v9 = vadd.f32 1e-05, %v3341_v6  ;;  %4005 = vmatpush.bf16.msrb.mxu1 %v4784_v45 }
 0xe67   : > { %v3448_v39 = vmul.f32 %v6434_v8, %v3436_v31 }
 0xe68   : > { %5073 = vrsqrt.f32 %v3349_v9  ;;  %vm3426_vm2 = vweird.f32 %v3349_v9 }
 0xe69   : > { %v3460_v41 = vadd.f32 %v6438_v55, %v3448_v39 }
 0xe6e   : > { %v5074_v59 = vpop.eup %5073 }
 0xe6f   : > { %v3421_v53 = vmul.f32 %v5074_v59, %v3349_v9  ;;  %vm3427_vm1 = vweird.f32 %v5074_v59 }
 0xe70   : > { %vm3428_vm3 = vmor %vm3426_vm2, %vm3427_vm1 }
 0xe71   : > { %v3422_v37 = vmul.f32 %v5074_v59, %v3421_v53 }
 0xe73   : > { %v3423_v61 = vmul.f32 0.5, %v3422_v37 }
 0xe75   : > { %v3424_v50 = vsub.f32 1.5, %v3423_v61 }
 0xe77   : > { %v3425_v43 = vmul.f32 %v5074_v59, %v3424_v50 }
 0xe79   : > { %v3429_v51 = vsel %vm3428_vm3, %v5074_v59, %v3425_v43 }
 0xe7a   : > { %v3437_v56 = vmul.f32 %v3429_v51, %v6426_v47  ;;  %v4783_v47 = vld [vmem:[%s6754_s1 + $0x18] sm:$0xff] }
 0xe7b   : > { %4006 = vmatpush.bf16.msrb.mxu1 %v4783_v47 }
 0xe7c   : > { %v3449_v7 = vmul.f32 %v6434_v8, %v3437_v56  ;;  %v6493_v8 = vperm.slane %v3598_v23, 1 }
 0xe7e   : > { %v3461_v22 = vadd.f32 %v6438_v55, %v3449_v7  ;;  %v4789_v55 = vld [vmem:[%s6754_s1 + $0x48] sm:$0xff] }
 0xe7f   : > { %4037 = vmatpush.bf16.msra.mxu2 %v4789_v55  ;;  %4007 = vmatpush.bf16.msrb.mxu1 %v4782_v19 }
 0xe80   : > { %v3465_v14 = vpack.c.bf16 %v3461_v22, %v3460_v41 }
 0xe82   : > { %4593 = vmatmul.msk.bf16.gmra.mxu1 %vm938_vm0, %v3465_v14  ;;  %4597 = vmatmul.msk.bf16.gmra.mxu2 %vm938_vm0, %v3465_v14 }
 0xe83   : > { %4633 = vmatmul.msk.bf16.gmra.mxu3 %vm938_vm0, %v3465_v14  ;;  %4637 = vmatmul.msk.bf16.gmra.mxu0 %vm938_vm0, %v3465_v14  ;;  %v3474_v14 = vld [vmem:[%s6756_s3] sm:$0x3]  ;;  %s6715_s3 = sand.u32 1, %s5169_s16  }
 0xe84   : > { %4038 = vmatpush.bf16.msra.mxu2 %v4788_v26  ;;  %4008 = vmatpush.bf16.msrb.mxu1 %v4781_v49  ;;  %v6527_v59 = vpop.f32.mrf.mxu1  ;;  %v6553_v26 = vperm.slane %v3474_v14, 1  ;;  %s4277_s1 = sshll.u32 %s6715_s3, 6 }
 0xe85   : > { %v3682_v13 = vpop.f32.mrf.mxu0  ;;  %s6649_s5 = scalar_lea.vmem [#allocation2], %s4277_s1  ;;  %s4800_s1 = sshll.u32 %s5394_s0, 6 }
 0xe86   : > { %v6500_v63 = vadd.f32 %v3682_v13, %v6493_v8  ;;  %s4177_s3 = scalar_lea.hbm %s5371_s12, %s4800_s1  ;;  %s4166_s0 = scalar_lea.sflag [#allocation3], %s6759_s8 }
 0xe88   : > { %v3703_v24 = vmul.f32 %v6500_v63, %v6500_v63  ;;  %4009 = vmatpush.bf16.msrb.mxu1 %v4780_v20 }
 0xe8a   : > { %v3719_v34 = vmul.f32 %v3703_v24, %v6500_v63  ;;  %v3570_v18 = vpop.f32.mrf.mxu2 }
 0xe8b   : > { %v3653_v52 = vpop.f32.mrf.mxu3 }
 0xe8c   : > { %v3735_v36 = vmul.f32 0.044715, %v3719_v34  ;;  %v6510_v2 = vadd.f32 %v3653_v52, %v6505_v38  ;;  %v3543_v47 = vpop.f32.mrf.mxu1 }
 0xe8d   : > { %v3684_v27 = vpop.f32.mrf.mxu0 }
 0xe8e   : > { %v3751_v40 = vadd.f32 %v3735_v36, %v6500_v63  ;;  %v3702_v29 = vmul.f32 %v6510_v2, %v6510_v2  ;;  %v6517_v32 = vadd.f32 %v3684_v27, %v6493_v8 }
 0xe90   : > { %v3767_v62 = vmul.f32 0.7978846, %v3751_v40  ;;  %v3718_v25 = vmul.f32 %v3702_v29, %v6510_v2  ;;  %v3705_v4 = vmul.f32 %v6517_v32, %v6517_v32 }
 0xe92   : > { %5075 = vtanh.f32 %v3767_v62  ;;  %v3734_v17 = vmul.f32 0.044715, %v3718_v25  ;;  %v3721_v3 = vmul.f32 %v3705_v4, %v6517_v32  ;;  %v3572_v50 = vpop.f32.mrf.mxu2  ;;  %v3571_v4 = vadd.f32 %v3570_v18, %v6553_v26 }
 0xe93   : > { %v3655_v6 = vpop.f32.mrf.mxu3 }
 0xe94   : > { %v3750_v9 = vadd.f32 %v3734_v17, %v6510_v2  ;;  %v3737_v1 = vmul.f32 0.044715, %v3721_v3  ;;  %v6525_v30 = vadd.f32 %v3655_v6, %v6505_v38  ;;  %v3573_v3 = vadd.f32 %v3572_v50, %v6553_v26 }
 0xe95   : > { %v3687_v11 = vpop.f32.mrf.mxu0 }
 0xe96   : > { %v3766_v54 = vmul.f32 0.7978846, %v3750_v9  ;;  %v3753_v53 = vadd.f32 %v3737_v1, %v6517_v32  ;;  %v3704_v33 = vmul.f32 %v6525_v30, %v6525_v30  ;;  %v6533_v37 = vadd.f32 %v3687_v11, %v6493_v8 }
 0xe98   : > { %v5076_v60 = vpop.eup %5075  ;;  %5077 = vtanh.f32 %v3766_v54  ;;  %v3769_v42 = vmul.f32 0.7978846, %v3753_v53  ;;  %v3720_v61 = vmul.f32 %v3704_v33, %v6525_v30  ;;  %v3707_v5 = vmul.f32 %v6533_v37, %v6533_v37 }
 0xe99   : > { %v3799_v43 = vadd.f32 1.0, %v5076_v60  ;;  %v6572_v33 = vperm.slane %v3474_v14, 0 }
 0xe9a   : > { %5079 = vtanh.f32 %v3769_v42  ;;  %v3736_v58 = vmul.f32 0.044715, %v3720_v61  ;;  %v3723_v31 = vmul.f32 %v3707_v5, %v6533_v37  ;;  %v6557_v40 = vpop.f32.mrf.mxu2 }
 0xe9b   : > { %v3658_v12 = vpop.f32.mrf.mxu3  ;;  %v3815_v23 = vmul.f32 0.5, %v3799_v43 }
 0xe9c   : > { %v3752_v51 = vadd.f32 %v3736_v58, %v6525_v30  ;;  %v3739_v44 = vmul.f32 0.044715, %v3723_v31  ;;  %v6541_v56 = vadd.f32 %v3658_v12, %v6505_v38  ;;  %v6578_v12 = vpop.f32.mrf.mxu1 }
 0xe9d   : > { %v3689_v39 = vpop.f32.mrf.mxu0  ;;  %v3831_v36 = vmul.f32 %v3815_v23, %v6500_v63 }
 0xe9e   : > { %v5078_v0 = vpop.eup %5077  ;;  %v3768_v7 = vmul.f32 0.7978846, %v3752_v51  ;;  %v3755_v45 = vadd.f32 %v3739_v44, %v6533_v37  ;;  %v3706_v41 = vmul.f32 %v6541_v56, %v6541_v56  ;;  %v6547_v22 = vadd.f32 %v3689_v39, %v6493_v8 }
 0xe9f   : > { %v3798_v24 = vadd.f32 1.0, %v5078_v0  ;;  %v3847_v60 = vmul.f32 %v3831_v36, %v3571_v4  ;;  %v3542_v39 = vadd.f32 %v6527_v59, %v6572_v33  ;;  %v3544_v0 = vadd.f32 %v3543_v47, %v6572_v33 }
 0xea0   : > { %v5080_v46 = vpop.eup %5079  ;;  %5081 = vtanh.f32 %v3768_v7  ;;  %v3771_v55 = vmul.f32 0.7978846, %v3755_v45  ;;  %v3722_v13 = vmul.f32 %v3706_v41, %v6541_v56  ;;  %v3709_v19 = vmul.f32 %v6547_v22, %v6547_v22 }
 0xea1   : > { %v3801_v49 = vadd.f32 1.0, %v5080_v46  ;;  %v3814_v17 = vmul.f32 0.5, %v3798_v24 }
 0xea2   : > { %5083 = vtanh.f32 %v3771_v55  ;;  %v3738_v34 = vmul.f32 0.044715, %v3722_v13  ;;  %v3725_v52 = vmul.f32 %v3709_v19, %v6547_v22  ;;  %v3577_v24 = vpop.f32.mrf.mxu2 }
 0xea3   : > { %v3817_v27 = vmul.f32 0.5, %v3801_v49  ;;  %v3660_v20 = vpop.f32.mrf.mxu3  ;;  %v3830_v58 = vmul.f32 %v3814_v17, %v6510_v2 }
 0xea4   : > { %v3754_v29 = vadd.f32 %v3738_v34, %v6541_v56  ;;  %v3741_v62 = vmul.f32 0.044715, %v3725_v52  ;;  %v6561_v25 = vadd.f32 %v3660_v20, %v6505_v38 }
 0xea5   : > { %v3833_v6 = vmul.f32 %v3817_v27, %v6517_v32  ;;  %v3692_v9 = vpop.f32.mrf.mxu0  ;;  %v3846_v14 = vmul.f32 %v3830_v58, %v3542_v39 }
 0xea6   : > { %v5082_v1 = vpop.eup %5081  ;;  %v3770_v63 = vmul.f32 0.7978846, %v3754_v29  ;;  %v3757_v11 = vadd.f32 %v3741_v62, %v6547_v22  ;;  %v3708_v54 = vmul.f32 %v6561_v25, %v6561_v25  ;;  %v6570_v53 = vadd.f32 %v3692_v9, %v6493_v8 }
 0xea7   : > { %v3849_v18 = vmul.f32 %v3833_v6, %v3573_v3  ;;  %v3800_v42 = vadd.f32 1.0, %v5082_v1 }
 0xea8   : > { %v5084_v61 = vpop.eup %5083  ;;  %5085 = vtanh.f32 %v3770_v63  ;;  %v3773_v5 = vmul.f32 0.7978846, %v3757_v11  ;;  %v3724_v32 = vmul.f32 %v3708_v54, %v6561_v25  ;;  %v3711_v50 = vmul.f32 %v6570_v53, %v6570_v53  ;;  %v3548_v63 = vpop.f32.mrf.mxu1 }
 0xea9   : > { %v3863_v31 = vpack.c.bf16 %v3849_v18, %v3847_v60  ;;  %v3816_v43 = vmul.f32 0.5, %v3800_v42  ;;  %v3803_v45 = vadd.f32 1.0, %v5084_v61  ;;  %v3576_v18 = vadd.f32 %v6557_v40, %v6553_v26 }
 0xeaa   : > { %5087 = vtanh.f32 %v3773_v5  ;;  %v3740_v51 = vmul.f32 0.044715, %v3724_v32  ;;  %v3727_v44 = vmul.f32 %v3711_v50, %v6570_v53  ;;  %v3578_v42 = vadd.f32 %v3577_v24, %v6553_v26  ;;  %v3580_v39 = vpop.f32.mrf.mxu2 }
 0xeab   : > { %v3832_v7 = vmul.f32 %v3816_v43, %v6525_v30  ;;  %v3663_v41 = vpop.f32.mrf.mxu3  ;;  %4039 = vmatmul.bf16.vlgmr.msra.gmra.mxu2 %v3863_v31  ;;  %v3819_v34 = vmul.f32 0.5, %v3803_v45 }
 0xeac   : > { %v3756_v2 = vadd.f32 %v3740_v51, %v6561_v25  ;;  %v3743_v23 = vmul.f32 0.044715, %v3727_v44  ;;  %v6587_v46 = vadd.f32 %v3663_v41, %v6505_v38 }
 0xead   : > { %v3848_v55 = vmul.f32 %v3832_v7, %v3544_v0  ;;  %v3694_v13 = vpop.f32.mrf.mxu0  ;;  %v3835_v6 = vmul.f32 %v3819_v34, %v6533_v37 }
 0xeae   : > { %v5086_v19 = vpop.eup %5085  ;;  %v3772_v49 = vmul.f32 0.7978846, %v3756_v2  ;;  %v3759_v59 = vadd.f32 %v3743_v23, %v6570_v53  ;;  %v3710_v30 = vmul.f32 %v6587_v46, %v6587_v46  ;;  %v6593_v47 = vadd.f32 %v3694_v13, %v6493_v8 }
 0xeaf   : > { %v3862_v52 = vpack.c.bf16 %v3848_v55, %v3846_v14  ;;  %v3802_v4 = vadd.f32 1.0, %v5086_v19  ;;  %v3851_v31 = vmul.f32 %v3835_v6, %v3576_v18  ;;  %v3547_v2 = vadd.f32 %v6578_v12, %v6572_v33 }
 0xeb0   : > { %v5088_v36 = vpop.eup %5087  ;;  %5089 = vtanh.f32 %v3772_v49  ;;  %v3775_v27 = vmul.f32 0.7978846, %v3759_v59  ;;  %v3726_v20 = vmul.f32 %v3710_v30, %v6587_v46  ;;  %v3713_v29 = vmul.f32 %v6593_v47, %v6593_v47  ;;  %v3551_v59 = vpop.f32.mrf.mxu1 }
 0xeb1   : > { %v3805_v62 = vadd.f32 1.0, %v5088_v36  ;;  %4010 = vmatmul.bf16.vlgmr.msrb.gmra.mxu1 %v3862_v52  ;;  %v3818_v5 = vmul.f32 0.5, %v3802_v4  ;;  %v3549_v23 = vadd.f32 %v3548_v63, %v6572_v33 }
 0xeb2   : > { %5091 = vtanh.f32 %v3775_v27  ;;  %v3742_v17 = vmul.f32 0.044715, %v3726_v20  ;;  %v3729_v3 = vmul.f32 %v3713_v29, %v6593_v47  ;;  %v3582_v12 = vpop.f32.mrf.mxu2 }
 0xeb3   : > { %v3821_v9 = vmul.f32 0.5, %v3805_v62  ;;  %v3665_v1 = vpop.f32.mrf.mxu3  ;;  %v3834_v41 = vmul.f32 %v3818_v5, %v6541_v56  ;;  %v3581_v62 = vadd.f32 %v3580_v39, %v6553_v26 }
 0xeb4   : > { %v3758_v11 = vadd.f32 %v3742_v17, %v6587_v46  ;;  %v3745_v54 = vmul.f32 0.044715, %v3729_v3  ;;  %v3666_v60 = vadd.f32 %v3665_v1, %v6505_v38 }
 0xeb5   : > { %v3837_v61 = vmul.f32 %v3821_v9, %v6547_v22  ;;  %v3850_v19 = vmul.f32 %v3834_v41, %v3547_v2 }
 0xeb6   : > { %v5090_v32 = vpop.eup %5089  ;;  %v3774_v50 = vmul.f32 0.7978846, %v3758_v11  ;;  %v3761_v37 = vadd.f32 %v3745_v54, %v6593_v47  ;;  %v3712_v58 = vmul.f32 %v3666_v60, %v3666_v60 }
 0xeb7   : > { %v3853_v43 = vmul.f32 %v3837_v61, %v3578_v42  ;;  %v3804_v51 = vadd.f32 1.0, %v5090_v32  ;;  %v3552_v42 = vadd.f32 %v3551_v59, %v6572_v33 }
 0xeb8   : > { %v5092_v44 = vpop.eup %5091  ;;  %5093 = vtanh.f32 %v3774_v50  ;;  %v3777_v0 = vmul.f32 0.7978846, %v3761_v37  ;;  %v3728_v7 = vmul.f32 %v3712_v58, %v3666_v60  ;;  %v3553_v63 = vpop.f32.mrf.mxu1 }
 0xeb9   : > { %v3865_v45 = vpack.c.bf16 %v3853_v43, %v3851_v31  ;;  %v3820_v40 = vmul.f32 0.5, %v3804_v51  ;;  %v3807_v14 = vadd.f32 1.0, %v5092_v44 }
 0xeba   : > { %5095 = vtanh.f32 %v3777_v0  ;;  %v3744_v22 = vmul.f32 0.044715, %v3728_v7 }
 0xebb   : > { %4044 = vmatmul.bf16.gmra.mxu2 %v3865_v45  ;;  %v3836_v55 = vmul.f32 %v3820_v40, %v6561_v25  ;;  %v3823_v34 = vmul.f32 0.5, %v3807_v14  ;;  %v3583_v25 = vadd.f32 %v3582_v12, %v6553_v26  ;;  %v4797_v12 = vld [vmem:[%s5361_s27 + $0x8] sm:$0xff] }
 0xebc   : > { %v3760_v13 = vadd.f32 %v3744_v22, %v3666_v60 }
 0xebd   : > { %v3852_v24 = vmul.f32 %v3836_v55, %v3549_v23  ;;  %v3839_v20 = vmul.f32 %v3823_v34, %v6570_v53  ;;  %v3554_v53 = vadd.f32 %v3553_v63, %v6572_v33 }
 0xebe   : > { %v5094_v49 = vpop.eup %5093  ;;  %v3776_v30 = vmul.f32 0.7978846, %v3760_v13  ;;  %v4799_v13 = vld [vmem:[%s5361_s27 + $0x18] sm:$0xff] }
 0xebf   : > { %v3864_v52 = vpack.c.bf16 %v3852_v24, %v3850_v19  ;;  %v3806_v27 = vadd.f32 1.0, %v5094_v49  ;;  %v3855_v6 = vmul.f32 %v3839_v20, %v3581_v62  ;;  %4124 = vmatpush.bf16.msra.mxu3 %v4799_v13 }
 0xec0   : > { %v5096_v56 = vpop.eup %5095  ;;  %5097 = vtanh.f32 %v3776_v30 }
 0xec1   : > { %v3809_v36 = vadd.f32 1.0, %v5096_v56  ;;  %4015 = vmatmul.bf16.gmra.mxu1 %v3864_v52  ;;  %v3822_v17 = vmul.f32 0.5, %v3806_v27  ;;  %v4798_v52 = vld [vmem:[%s5361_s27 + $0x10] sm:$0xff] }
 0xec3   : > { %v3825_v29 = vmul.f32 0.5, %v3809_v36  ;;  %v3838_v18 = vmul.f32 %v3822_v17, %v6587_v46  ;;  %4125 = vmatpush.bf16.msra.mxu3 %v4798_v52 }
 0xec5   : > { %v3841_v4 = vmul.f32 %v3825_v29, %v6593_v47  ;;  %v3854_v5 = vmul.f32 %v3838_v18, %v3552_v42 }
 0xec6   : > { %v5098_v3 = vpop.eup %5097 }
 0xec7   : > { %v3857_v9 = vmul.f32 %v3841_v4, %v3583_v25  ;;  %v3808_v1 = vadd.f32 1.0, %v5098_v3  ;;  %4126 = vmatpush.bf16.msra.mxu3 %v4797_v12  ;;  %v4796_v4 = vld [vmem:[%s5361_s27] sm:$0xff] }
 0xec9   : > { %v3867_v11 = vpack.c.bf16 %v3857_v9, %v3855_v6  ;;  %v3824_v54 = vmul.f32 0.5, %v3808_v1 }
 0xecb   : > { %4049 = vmatmul.bf16.gmra.mxu2 %v3867_v11  ;;  %v3840_v61 = vmul.f32 %v3824_v54, %v3666_v60  ;;  %4127 = vmatpush.bf16.msra.mxu3 %v4796_v4 }
 0xecd   : > { %v3856_v32 = vmul.f32 %v3840_v61, %v3554_v53 }
 0xecf   : > { %v3866_v50 = vpack.c.bf16 %v3856_v32, %v3854_v5 }
 0xed1   : > { %4020 = vmatmul.bf16.gmra.mxu1 %v3866_v50 }
 0xeff   : > { %v3556_v20 = vpop.f32.mrf.mxu1 }
 0xf00   : > { %v3697_v47 = vpop.f32.mrf.mxu0 }
 0xf01   : > { %v3698_v37 = vadd.f32 %v3697_v47, %v6493_v8 }
 0xf03   : > { %v3715_v58 = vmul.f32 %v3698_v37, %v3698_v37 }
 0xf05   : > { %v3731_v31 = vmul.f32 %v3715_v58, %v3698_v37 }
 0xf06   : > { %v3668_v43 = vpop.f32.mrf.mxu3 }
 0xf07   : > { %v3747_v51 = vmul.f32 0.044715, %v3731_v31  ;;  %v3669_v46 = vadd.f32 %v3668_v43, %v6505_v38  ;;  %v3558_v32 = vpop.f32.mrf.mxu1  ;;  %v3557_v31 = vadd.f32 %v3556_v20, %v6572_v33 }
 0xf08   : > { %v3699_v44 = vpop.f32.mrf.mxu0 }
 0xf09   : > { %v3763_v39 = vadd.f32 %v3747_v51, %v3698_v37  ;;  %v3714_v0 = vmul.f32 %v3669_v46, %v3669_v46  ;;  %v3700_v7 = vadd.f32 %v3699_v44, %v6493_v8  ;;  %v3585_v8 = vpop.f32.mrf.mxu2 }
 0xf0a   : > { %v3586_v63 = vadd.f32 %v3585_v8, %v6553_v26 }
 0xf0b   : > { %v3779_v60 = vmul.f32 0.7978846, %v3763_v39  ;;  %v3730_v45 = vmul.f32 %v3714_v0, %v3669_v46  ;;  %v3717_v40 = vmul.f32 %v3700_v7, %v3700_v7 }
 0xf0d   : > { %5099 = vtanh.f32 %v3779_v60  ;;  %v3746_v41 = vmul.f32 0.044715, %v3730_v45  ;;  %v3733_v22 = vmul.f32 %v3717_v40, %v3700_v7 }
 0xf0e   : > { %v3670_v2 = vpop.f32.mrf.mxu3 }
 0xf0f   : > { %v3762_v23 = vadd.f32 %v3746_v41, %v3669_v46  ;;  %v3749_v14 = vmul.f32 0.044715, %v3733_v22  ;;  %v3671_v55 = vadd.f32 %v3670_v2, %v6505_v38 }
 0xf11   : > { %v3778_v19 = vmul.f32 0.7978846, %v3762_v23  ;;  %v3765_v24 = vadd.f32 %v3749_v14, %v3700_v7  ;;  %v3716_v49 = vmul.f32 %v3671_v55, %v3671_v55  ;;  %v3587_v6 = vpop.f32.mrf.mxu2 }
 0xf12   : > { %v3588_v11 = vadd.f32 %v3587_v6, %v6553_v26 }
 0xf13   : > { %v5100_v59 = vpop.eup %5099  ;;  %5101 = vtanh.f32 %v3778_v19  ;;  %v3781_v30 = vmul.f32 0.7978846, %v3765_v24  ;;  %v3732_v34 = vmul.f32 %v3716_v49, %v3671_v55 }
 0xf14   : > { %v3811_v36 = vadd.f32 1.0, %v5100_v59 }
 0xf15   : > { %5103 = vtanh.f32 %v3781_v30  ;;  %v3748_v56 = vmul.f32 0.044715, %v3732_v34 }
 0xf16   : > { %v3827_v62 = vmul.f32 0.5, %v3811_v36 }
 0xf17   : > { %v3764_v27 = vadd.f32 %v3748_v56, %v3671_v55 }
 0xf18   : > { %v3843_v9 = vmul.f32 %v3827_v62, %v3698_v37  ;;  %v3559_v37 = vadd.f32 %v3558_v32, %v6572_v33 }
 0xf19   : > { %v5102_v38 = vpop.eup %5101  ;;  %v3780_v29 = vmul.f32 0.7978846, %v3764_v27 }
 0xf1a   : > { %v3810_v3 = vadd.f32 1.0, %v5102_v38  ;;  %v3859_v53 = vmul.f32 %v3843_v9, %v3586_v63 }
 0xf1b   : > { %v5104_v25 = vpop.eup %5103  ;;  %5105 = vtanh.f32 %v3780_v29 }
 0xf1c   : > { %v3813_v17 = vadd.f32 1.0, %v5104_v25  ;;  %v3826_v18 = vmul.f32 0.5, %v3810_v3 }
 0xf1e   : > { %v3829_v1 = vmul.f32 0.5, %v3813_v17  ;;  %v3842_v58 = vmul.f32 %v3826_v18, %v3669_v46 }
 0xf20   : > { %v3845_v54 = vmul.f32 %v3829_v1, %v3700_v7  ;;  %v3858_v51 = vmul.f32 %v3842_v58, %v3557_v31  ;;  %v4893_v7 = vld [vmem:[%s6757_s6] ss:$0 sm:$0xff]  ;;  %s4180_s6 = sshll.u32 %s4177_s3, 4  ;;  %s4181_s6 = int_to_ptr.hbm [resolvable:$true] %s4180_s6 }
 0xf21   : > { %v5106_v42 = vpop.eup %5105  ;;  %s5129_s9 = sshra.s32 %s4181_s6, 4  ;;  %s5130_s9 = int_to_ptr.hbm [resolvable:$true] %s5129_s9 }
 0xf22   : > { %v3861_v61 = vmul.f32 %v3845_v54, %v3588_v11  ;;  %v3812_v5 = vadd.f32 1.0, %v5106_v42  ;;  %v4894_v11 = vld [vmem:[%s6758_s4] ss:$0 sm:$0xff]  ;;  %s4178_s4 = sshll.u32 %s6649_s5, 4  ;;  %s5131_s1 = scalar_lea.hbm %s5130_s9, 64  ;;  %s4179_s4 = int_to_ptr.vmem [resolvable:$true] %s4178_s4 }
 0xf23   : > { %v5107_v42 = vld [vmem:[%s5429_s28] sm:$0xff]  ;;  %p5132_p11 = scmp.ne.s32.totalorder %s5130_s9, %s5131_s1  ;;  %p5136_p0 = scmp.lt.s32.totalorder %s5130_s9, %s5371_s12 }
 0xf24   : > { %v3869_v50 = vpack.c.bf16 %v3861_v61, %v3859_v53  ;;  %v3828_v47 = vmul.f32 0.5, %v3812_v5  ;;  %v5108_v61 = vld [vmem:[%s5429_s28 + $0x8] sm:$0xff]  ;;  %p5137_p1 = scmp.lt.s32.totalorder %s5135_s11, %s5131_s1 }
 0xf25   : > { %p5133_p12 = pnand %p5132_p11, %p5411_p5 }
 0xf26   : > { %4054 = vmatmul.bf16.gmra.mxu2 %v3869_v50  ;;  %v3844_v43 = vmul.f32 %v3828_v47, %v3671_v55  ;;  %v5109_v47 = vld [vmem:[%s5429_s28 + $0x10] sm:$0xff]  ;;  %p5138_p2 = por %p5137_p1, %p5136_p0 }
 0xf27   : > { %p5134_p13 = pneg %p5133_p12 }
 0xf28   : > { %v3860_v44 = vmul.f32 %v3844_v43, %v3559_v37  ;;  %v5110_v43 = vld [vmem:[%s5429_s28 + $0x18] sm:$0xff] }
 0xf29   : > { %p5139_p3 = pnand %p5138_p2, %p5134_p13 }
 0xf2a   : > { %v3868_v26 = vpack.c.bf16 %v3860_v44, %v3858_v51 }
 0xf2c   : > { %4025 = vmatmul.bf16.gmra.mxu1 %v3868_v26 }
 0xf2e   : > { %v4011_v39 = vpop.f32.mrf.mxu1  ;;  %v4040_v0 = vpop.f32.mrf.mxu2 }
 0xf2f   : > { %v4012_v60 = vadd.f32 %v4893_v7, %v4011_v39  ;;  %v5111_v39 = vld [vmem:[%s5429_s28 + $0x20] sm:$0xff] }
 0xf31   : > { %v4041_v41 = vadd.f32 %v4040_v0, %v4012_v60 }
 0xf33   : > { %v4060_v46 = vadd.f32 %v4041_v41, %v6302_v48 }
 0xf36   : > { %v4013_v45 = vpop.f32.mrf.mxu1  ;;  %v4042_v40 = vpop.f32.mrf.mxu2 }
 0xf37   : > { %v4014_v22 = vadd.f32 %v4893_v7, %v4013_v45  ;;  %v5112_v45 = vld [vmem:[%s5429_s28 + $0x28] sm:$0xff] }
 0xf39   : > { %v4043_v2 = vadd.f32 %v4042_v40, %v4014_v22 }
 0xf3b   : > { %v4061_v23 = vadd.f32 %v4043_v2, %v6307_v21  ;;  %v5113_v2 = vld [vmem:[%s5429_s28 + $0x30] sm:$0xff] }
 0xf3d   : > { %v4068_v33 = vpack.c.bf16 %v4061_v23, %v4060_v46 }
 0xf3e   : > { %v4016_v14 = vpop.f32.mrf.mxu1  ;;  %v4045_v55 = vpop.f32.mrf.mxu2 }
 0xf3f   : > { %4718 = vmatmul.msk.bf16.vlgmr.msra.gmra.mxu3 %vm938_vm0, %v4068_v33  ;;  %v4017_v13 = vadd.f32 %v4893_v7, %v4016_v14  ;;  %v5114_v14 = vld [vmem:[%s5429_s28 + $0x38] sm:$0xff] }
 0xf41   : > { %v4046_v49 = vadd.f32 %v4045_v55, %v4017_v13 }
 0xf43   : > { %v4062_v30 = vadd.f32 %v4046_v49, %v6312_v10 }
 0xf46   : > { %v4018_v19 = vpop.f32.mrf.mxu1  ;;  %v4047_v24 = vpop.f32.mrf.mxu2 }
 0xf47   : > { %v4019_v59 = vadd.f32 %v4893_v7, %v4018_v19 }
 0xf49   : > { %v4048_v8 = vadd.f32 %v4047_v24, %v4019_v59 }
 0xf4b   : > { %v4063_v34 = vadd.f32 %v4048_v8, %v6317_v57 }
 0xf4d   : > { %v4069_v52 = vpack.c.bf16 %v4063_v34, %v4062_v30 }
 0xf4e   : > { %v4021_v56 = vpop.f32.mrf.mxu1  ;;  %v4050_v48 = vpop.f32.mrf.mxu2 }
 0xf4f   : > { %4719 = vmatmul.msk.bf16.gmra.mxu3 %vm938_vm0, %v4069_v52  ;;  %v4022_v21 = vadd.f32 %v4893_v7, %v4021_v56 }
 0xf51   : > { %v4051_v27 = vadd.f32 %v4050_v48, %v4022_v21 }
 0xf53   : > { %v4064_v29 = vadd.f32 %v4051_v27, %v6322_v15 }
 0xf56   : > { %v4023_v36 = vpop.f32.mrf.mxu1  ;;  %v4052_v38 = vpop.f32.mrf.mxu2 }
 0xf57   : > { %v4024_v12 = vadd.f32 %v4893_v7, %v4023_v36 }
 0xf59   : > { %v4053_v20 = vadd.f32 %v4052_v38, %v4024_v12 }
 0xf5b   : > { %v4065_v62 = vadd.f32 %v4053_v20, %v6327_v35 }
 0xf5d   : > { %v4070_v10 = vpack.c.bf16 %v4065_v62, %v4064_v29 }
 0xf5f   : > { %4720 = vmatmul.msk.bf16.gmra.mxu3 %vm938_vm0, %v4070_v10 }
 0xfa9   : > { %v4026_v57 = vpop.f32.mrf.mxu1  ;;  %v4055_v25 = vpop.f32.mrf.mxu2 }
 0xfaa   : > { %v4027_v4 = vadd.f32 %v4893_v7, %v4026_v57 }
 0xfac   : > { %v4056_v3 = vadd.f32 %v4055_v25, %v4027_v4 }
 0xfae   : > { %v4066_v15 = vadd.f32 %v4056_v3, %v6332_v28 }
 0xfb1   : > { %v4028_v17 = vpop.f32.mrf.mxu1  ;;  %v4057_v9 = vpop.f32.mrf.mxu2 }
 0xfb2   : > { %v4029_v6 = vadd.f32 %v4893_v7, %v4028_v17 }
 0xfb4   : > { %v4058_v1 = vadd.f32 %v4057_v9, %v4029_v6 }
 0xfb6   : > { %v4067_v63 = vadd.f32 %v4058_v1, %v6345_v16 }
 0xfb8   : > { %v4071_v35 = vpack.c.bf16 %v4067_v63, %v4066_v15 }
 0xfba   : > { %4721 = vmatmul.msk.bf16.gmra.mxu3 %vm938_vm0, %v4071_v35 }
 0xfc2   : > { %v4129_v54 = vpop.f32.mrf.mxu3 }
 0xfc3   : > { %v4130_v18 = vadd.f32 %v4894_v11, %v4129_v54 }
 0xfc5   : > { %v4149_v53 = vadd.f32 %v5107_v42, %v4130_v18 }
 0xfc7   : > { %4157 = vst.msk [vmem:[%s6649_s5] sm:$0xff] %vm938_vm0, %v4149_v53 }
 0xfca   : > { %v4131_v28 = vpop.f32.mrf.mxu3 }
 0xfcb   : > { %v4132_v16 = vadd.f32 %v4894_v11, %v4131_v28 }
 0xfcd   : > { %v4150_v5 = vadd.f32 %v5108_v61, %v4132_v16 }
 0xfcf   : > { %4158 = vst.msk [vmem:[%s6649_s5 + $0x8] sm:$0xff] %vm938_vm0, %v4150_v5 }
 0xfd2   : > { %v4134_v32 = vpop.f32.mrf.mxu3 }
 0xfd3   : > { %v4135_v50 = vadd.f32 %v4894_v11, %v4134_v32 }
 0xfd5   : > { %v4151_v58 = vadd.f32 %v5109_v47, %v4135_v50 }
 0xfd7   : > { %4159 = vst.msk [vmem:[%s6649_s5 + $0x10] sm:$0xff] %vm938_vm0, %v4151_v58 }
 0xfda   : > { %v4136_v31 = vpop.f32.mrf.mxu3 }
 0xfdb   : > { %v4137_v37 = vadd.f32 %v4894_v11, %v4136_v31 }
 0xfdd   : > { %v4152_v51 = vadd.f32 %v5110_v43, %v4137_v37 }
 0xfdf   : > { %4160 = vst.msk [vmem:[%s6649_s5 + $0x18] sm:$0xff] %vm938_vm0, %v4152_v51 }
 0xfe2   : > { %v4139_v44 = vpop.f32.mrf.mxu3 }
 0xfe3   : > { %v4140_v26 = vadd.f32 %v4894_v11, %v4139_v44 }
 0xfe5   : > { %v4153_v0 = vadd.f32 %v5111_v39, %v4140_v26 }
 0xfe7   : > { %4161 = vst.msk [vmem:[%s6649_s5 + $0x20] sm:$0xff] %vm938_vm0, %v4153_v0 }
 0xfea   : > { %v4141_v7 = vpop.f32.mrf.mxu3 }
 0xfeb   : > { %v4142_v60 = vadd.f32 %v4894_v11, %v4141_v7 }
 0xfed   : > { %v4154_v40 = vadd.f32 %v5112_v45, %v4142_v60 }
 0xfef   : > { %4162 = vst.msk [vmem:[%s6649_s5 + $0x28] sm:$0xff] %vm938_vm0, %v4154_v40 }
0x103d   : > { %v4144_v41 = vpop.f32.mrf.mxu3 }
0x103e   : > { %v4145_v22 = vadd.f32 %v4894_v11, %v4144_v41 }
0x1040   : > { %v4155_v46 = vadd.f32 %v5113_v2, %v4145_v22 }
0x1042   : > { %4163 = vst.msk [vmem:[%s6649_s5 + $0x30] sm:$0xff] %vm938_vm0, %v4155_v46 }
0x1045   : > { %v4146_v23 = vpop.f32.mrf.mxu3 }
0x1046   : > { %v4147_v33 = vadd.f32 %v4894_v11, %v4146_v23 }
0x1048   : > { %v4156_v55 = vadd.f32 %v5114_v14, %v4147_v33 }
0x104a   : > { %4164 = vst.msk [vmem:[%s6649_s5 + $0x38] sm:$0xff] %vm938_vm0, %v4156_v55 }
0x104b   : > { %5142 = shalt.err (!%p5139_p3)
}
0x104c   : > { %s5211_s3 = smov 128   ;;  %s5212_s28 = smov 8  }
0x104d   : > { %4809 = dma.vmem_to_hbm [thread:$0]  (%p5411_p5), %s4179_s4, 1024, %s4181_s6, %s4166_s0, %s5211_s3, %s5211_s3, %s5212_s28  }
0x104e PF: > { %p4815_p4 = scmp.ge.s32.totalorder %s5177_s22, 2  ;;  %s4195_s5 = sand.u32 1, %s5165_s15  }
0x104f   : > { %s4196_s8 = scalar_lea.sflag [#allocation3], %s4195_s5 }
0x1050   : > { %p4812_p7 = pnand %p4815_p4, %p5415_p6 }
0x1052   : > { %p4813_p8 = pneg %p4812_p7 }
0x1054   : > { %5160 = dma.done.wait (%p4813_p8), %s4196_s8, 1024  }
0x1055   : > { %5162 = vsyncadd (%p4813_p8), %s4196_s8, 4294966272  ;;  %p71_p9 = scmp.ge.s32.totalorder %s5398_s26, 4   ;;  %s6760_s15 = smov %s5169_s16 }
0x1056   : > { %s6761_s16 = smov %s5173_s18  ;;  %s6762_s18 = smov %s5409_s2 }
0x1057   : > { %s6763_s22 = smov %s5398_s26  ;;  %73 = sbr.rel (!%p71_p9) target bundleno = 60 (0x3c), region = 207 }
0x105c   :  { %4202 = vsyncpa [#allocation3], 1 }
0x105d   :  { %4204 = vsyncpa [#allocation3 + $0x1], 1 }

</bundles_post_ra>
